<compile_context>
chip_gen: v5e
topology: v5e:2x2
jax: 0.10.0
libtpu: 0.0.40
codegen_flags: <defaults>
</compile_context>

<pallas_src>
import numpy as np
import jax
import jax.numpy as jnp
from jax.experimental import pallas as pl
from jax.experimental.pallas import tpu as pltpu

# --- scaled-down hyper-parameters of the torch module ---
N_BATCH = 2
C_IN, C_OUT = 16, 32
H_IN = W_IN = 8
KSIZE = 7
STRIDE = 3
PAD = 1
OUT_PAD = 5
POOL_OUT = (13, 13)
NEG_SLOPE = 0.03
EPS = 1e-5
BIG = 1e30

# derived (phase decomposition of the transposed conv)
H_OUT = (H_IN - 1) * STRIDE - 2 * PAD + (KSIZE - 1) + OUT_PAD + 1   # 31
W_OUT = H_OUT
NPH = STRIDE                                        # output phases per axis (3)
PAD_LO = (KSIZE - 1 - PAD) // STRIDE                # left halo of phase grid (1)
N_TAP = PAD_LO + (STRIDE - 1 + PAD) // STRIDE + 1   # taps per axis (3)
NQ = -(-H_OUT // STRIDE)                            # phase-grid positions per axis (11)
X_PAD = NQ + N_TAP - 1                              # padded input extent (13)
KDIM = N_TAP * N_TAP * C_IN                         # conv matmul K (144)
MROW = NPH * NPH * C_OUT                            # conv matmul M (288): rows=(phase,chan)
NPHASE = NPH * NPH                                  # 9
NPOOL = POOL_OUT[0] * POOL_OUT[1]                   # 169
PPAD = 256                                          # pool positions lane-padded

assert H_OUT == W_OUT and H_IN == W_IN and POOL_OUT[0] == POOL_OUT[1]


def _adaptive_windows(in_size, out_size):
    """PyTorch adaptive pooling window boundaries (start, end) per output index."""
    return [((i * in_size) // out_size, -((-(i + 1) * in_size) // out_size))
            for i in range(out_size)]


# -----------------------------------------------------------------------------
# Host-side constant builders (run ONCE, outside the jitted forward)
# -----------------------------------------------------------------------------
def _transform_weight(w_torch):
    """torch (Cin,Cout,Kh,Kw) -> phase-packed, channel-major matmul weight.

    Returns (NPH^2*Cout, N_TAP^2*Cin) = (288, 144) bf16: rows are (rh, rw, co)
    output phases/channels, columns are (dh, dw, ci) im2col taps.
    """
    w_flip = jnp.transpose(jnp.flip(w_torch, (2, 3)), (2, 3, 0, 1))  # (K,K,Cin,Cout)
    d = np.arange(N_TAP)
    r = np.arange(NPH)
    kk = STRIDE * (d[:, None] - PAD_LO) + (KSIZE - 1 - PAD) - r[None, :]   # (d, r)
    ok = (kk >= 0) & (kk < KSIZE)
    kk = np.clip(kk, 0, KSIZE - 1)
    # (dh, dw, rh, rw, ci, co)
    w6 = w_flip[kk[:, None, :, None], kk[None, :, None, :]]
    mask = (ok[:, None, :, None] & ok[None, :, None, :]).astype(np.float32)
    w6 = w6 * mask[..., None, None]
    w6 = jnp.transpose(w6, (0, 1, 4, 2, 3, 5))                 # (dh,dw,ci,rh,rw,co)
    w_all = w6.reshape(KDIM, MROW)                             # (144, 288)
    return jnp.transpose(w_all).astype(jnp.bfloat16)           # (288, 144)


def _axis_pool_constants(in_size, out_size):
    """Per-axis corner selection (which phase-grid cell) + in-window phase mask."""
    win = _adaptive_windows(in_size, out_size)
    qsel = np.zeros((2, out_size), np.int64)
    valid = np.zeros((2, out_size, NPH), bool)
    for i, (s, e) in enumerate(win):
        assert e - s <= STRIDE + 1          # each window spans <= 2 phase cells
        qlo, qhi = s // STRIDE, (e - 1) // STRIDE
        for k in range(2):
            q = min(qlo + k, qhi)
            qsel[k, i] = q
            for r in range(NPH):
                valid[k, i, r] = s <= STRIDE * q + r < e
    return qsel, valid


def _pool_constants():
    """Constants for (phase de-interleave + adaptive max pool) as ONE matmul.

    sel_t : (NQ*NQ, 4*PPAD)  0/1 stacked corner-gather matrix (columns grouped
            per corner, pool positions lane-padded 169->256).
    mask  : (9, 4*PPAD)      0 where phase t is inside the pooling window of a
            (corner, pool position) column, else -1e30 (broadcast over channels
            in-kernel).
    """
    qh, vh = _axis_pool_constants(H_OUT, POOL_OUT[0])
    qw, vw = _axis_pool_constants(W_OUT, POOL_OUT[1])
    ph, pw = POOL_OUT
    sel_t = np.zeros((NQ * NQ, 4 * PPAD), np.float32)
    mask = np.full((NPHASE, 4 * PPAD), -BIG, np.float32)
    for kh in range(2):
        for kw in range(2):
            k = kh * 2 + kw
            for i in range(ph):
                for j in range(pw):
                    col = k * PPAD + i * pw + j
                    sel_t[qh[kh, i] * NQ + qw[kw, j], col] = 1.0
                    for rh in range(NPH):
                        for rw in range(NPH):
                            if vh[kh, i, rh] and vw[kw, j, rw]:
                                mask[rh * NPH + rw, col] = 0.0
    return sel_t, mask


# -----------------------------------------------------------------------------
# Fused kernel: conv-transpose (+leaky) -> adaptive max-pool -> double LN
# -----------------------------------------------------------------------------
def _fused_kernel(patch_ref, w_ref, sel_ref, mask_ref, o_ref):
    # patch_ref: (1, 144, 121) bf16   K-major im2col slab of one batch item
    # w_ref    : (288, 144)    bf16   rows = (phase, channel)
    # sel_ref  : (121, 1024)   bf16   stacked 0/1 corner-gather matrix
    # mask_ref : (9, 1024)     f32    0 / -1e30 in-window phase mask
    # o_ref    : (1, 32, 169)  f32    channel-major pooled+normalized output

    # conv-transpose as a single bf16 MXU matmul (f32 accumulation)
    y = jnp.dot(w_ref[...], patch_ref[0],
                preferred_element_type=jnp.float32)            # (288, 121) f32
    y = jnp.where(y > 0, y, y * NEG_SLOPE)                     # leaky select, f32

    # phase de-interleave + 4-corner gather of the adaptive max pool:
    # one stacked matmul, columns = (corner, padded pool position)
    g = jnp.dot(y.astype(jnp.bfloat16), sel_ref[...],
                preferred_element_type=jnp.float32)            # (288, 1024) f32

    # masked max over the 9 phases (sublane-aligned 32-row chunks of g)
    mask = mask_ref[...]                                       # (9, 1024)
    acc = g[0:C_OUT, :] + mask[0:1, :]
    for t in range(1, NPHASE):
        acc = jnp.maximum(acc, g[t * C_OUT:(t + 1) * C_OUT, :] + mask[t:t + 1, :])

    # max over the 4 corners (lane-aligned 256-wide slices)
    p = jnp.maximum(jnp.maximum(acc[:, 0:PPAD], acc[:, PPAD:2 * PPAD]),
                    jnp.maximum(acc[:, 2 * PPAD:3 * PPAD], acc[:, 3 * PPAD:4 * PPAD]))
    pooled = p[:, :NPOOL]                                      # (32, 169)

    # double layer-norm over the spatial axis per channel, fused algebraically:
    #   LN(LN(x)) = (x - m) * rsqrt(var * (1 + eps) + eps^2)
    m = jnp.mean(pooled, axis=1, keepdims=True)
    c = pooled - m
    var = jnp.mean(c * c, axis=1, keepdims=True)
    o_ref[0] = (c * jax.lax.rsqrt(var * (1.0 + EPS) + EPS * EPS)).astype(o_ref.dtype)


# -----------------------------------------------------------------------------
# Wrapper: build patches (pad + im2col) outside the kernel, call pallas
# -----------------------------------------------------------------------------
def _build_patches(x_nhwc):
    """(n, H, W, Cin) -> K-major bf16 patch slab (n, 144, 121)."""
    n = x_nhwc.shape[0]
    pad_hi = X_PAD - H_IN - PAD_LO
    xpad = jnp.pad(x_nhwc, ((0, 0), (PAD_LO, pad_hi), (PAD_LO, pad_hi), (0, 0)))
    taps = []
    for dh in range(N_TAP):
        for dw in range(N_TAP):
            taps.append(xpad[:, dh:dh + NQ, dw:dw + NQ, :].reshape(n, NQ * NQ, C_IN))
    patch = jnp.concatenate(taps, axis=-1)                     # (n, 121, 144)
    return jnp.transpose(patch, (0, 2, 1)).astype(jnp.bfloat16)  # (n, 144, 121)


@jax.jit
def model_forward(x_nchw, w_t, sel_t, mask_add):
    n = x_nchw.shape[0]
    x = jnp.transpose(x_nchw, (0, 2, 3, 1))                    # NCHW -> NHWC
    patch_t = _build_patches(x)

    out = pl.pallas_call(
        _fused_kernel,
        out_shape=jax.ShapeDtypeStruct((n, C_OUT, NPOOL), jnp.float32),
        grid=(n,),
        in_specs=[
            pl.BlockSpec((1, KDIM, NQ * NQ), lambda i: (i, 0, 0)),
            pl.BlockSpec((MROW, KDIM), lambda i: (0, 0)),
            pl.BlockSpec((NQ * NQ, 4 * PPAD), lambda i: (0, 0)),
            pl.BlockSpec((NPHASE, 4 * PPAD), lambda i: (0, 0)),
        ],
        out_specs=pl.BlockSpec((1, C_OUT, NPOOL), lambda i: (i, 0, 0)),
        compiler_params=pltpu.CompilerParams(dimension_semantics=("parallel",)),
    )(patch_t, w_t, sel_t, mask_add)

    # channel-major output -> free reshape to NCHW (no transpose needed)
    return out.reshape(n, C_OUT, POOL_OUT[0], POOL_OUT[1])


# -----------------------------------------------------------------------------
# Pure-JAX reference (for correctness check)
# -----------------------------------------------------------------------------
def reference_forward(x_nchw, w_torch):
    # The kernel feeds bf16 operands to the MXU; round the reference operands
    # identically (accumulation stays f32 in both) so the comparison isolates
    # structural correctness.
    xr = x_nchw.astype(jnp.bfloat16).astype(jnp.float32)
    wr = w_torch.astype(jnp.bfloat16).astype(jnp.float32)
    x = jnp.transpose(xr, (0, 2, 3, 1))
    w_flip = jnp.transpose(jnp.flip(wr, (2, 3)), (2, 3, 0, 1))
    out = jax.lax.conv_general_dilated(
        x, w_flip, window_strides=(1, 1),
        padding=[(KSIZE - 1 - PAD, KSIZE - 1 - PAD + OUT_PAD)] * 2,
        lhs_dilation=(STRIDE, STRIDE), rhs_dilation=(1, 1),
        dimension_numbers=("NHWC", "HWIO", "NHWC"))
    out = jnp.where(out > 0, out, out * NEG_SLOPE)
    h, w = out.shape[1], out.shape[2]
    rows = []
    for (hs, he) in _adaptive_windows(h, POOL_OUT[0]):
        cols = []
        for (ws, we) in _adaptive_windows(w, POOL_OUT[1]):
            cols.append(jnp.max(out[:, hs:he, ws:we, :], axis=(1, 2)))
        rows.append(jnp.stack(cols, axis=1))
    pooled = jnp.stack(rows, axis=1)

    def _ln(v):
        m = jnp.mean(v, axis=(1, 2), keepdims=True)
        var = jnp.mean((v - m) ** 2, axis=(1, 2), keepdims=True)
        return (v - m) / jnp.sqrt(var + EPS)

    y = _ln(_ln(pooled))
    return jnp.transpose(y, (0, 3, 1, 2))


if __name__ == "__main__":
    key = jax.random.PRNGKey(0)
    kx, kw = jax.random.split(key)
    x = jax.random.normal(kx, (N_BATCH, C_IN, H_IN, W_IN), jnp.float32)         # NCHW
    w = jax.random.normal(kw, (C_IN, C_OUT, KSIZE, KSIZE), jnp.float32) * 0.05  # torch layout

    # constants built ONCE (hoisted out of the jitted forward)
    w_t = _transform_weight(w)                       # (288, 144) bf16
    sel_np, mask_np = _pool_constants()
    sel_t = jnp.asarray(sel_np, jnp.bfloat16)        # (121, 1024) bf16
    mask_add = jnp.asarray(mask_np, jnp.float32)     # (9, 1024) f32

    out = jax.block_until_ready(model_forward(x, w_t, sel_t, mask_add))
    ref = jax.block_until_ready(reference_forward(x, w))
    np.testing.assert_allclose(np.asarray(out), np.asarray(ref),
                               rtol=2e-2, atol=2e-2)
    print("KERNEL_OK")
</pallas_src>

<mosaic_0001>
module attributes {stable_mosaic.version = 11 : i64} {
  func.func @_fused_kernel(%arg0: i32, %arg1: memref<1x144x121xbf16, #tpu.memory_space<vmem>>, %arg2: memref<288x144xbf16, #tpu.memory_space<vmem>>, %arg3: memref<121x1024xbf16, #tpu.memory_space<vmem>>, %arg4: memref<9x1024xf32, #tpu.memory_space<vmem>>, %arg5: memref<1x32x169xf32, #tpu.memory_space<vmem>>) attributes {dimension_semantics = [#tpu.dimension_semantics<parallel>], iteration_bounds = array<i64: 2>, scalar_prefetch = 0 : i64, scratch_operands = 0 : i64, tpu.core_type = #tpu.core_type<tc>, window_params = [{transform_indices = @transform_0, window_bounds = array<i64: 1, 144, 121>}, {pipeline_mode = #tpu.pipeline_mode<synchronous>, transform_indices = @transform_1, window_bounds = array<i64: 288, 144>}, {pipeline_mode = #tpu.pipeline_mode<synchronous>, transform_indices = @transform_2, window_bounds = array<i64: 121, 1024>}, {pipeline_mode = #tpu.pipeline_mode<synchronous>, transform_indices = @transform_3, window_bounds = array<i64: 9, 1024>}, {transform_indices = @transform_4, window_bounds = array<i64: 1, 32, 169>}]} {
    %c0 = arith.constant 0 : index
    %c0_0 = arith.constant 0 : index
    %0 = vector.load %arg2[%c0, %c0_0] : memref<288x144xbf16, #tpu.memory_space<vmem>>, vector<288x144xbf16>
    %c0_1 = arith.constant 0 : index
    %c0_2 = arith.constant 0 : index
    %c0_3 = arith.constant 0 : index
    %1 = vector.load %arg1[%c0_1, %c0_2, %c0_3] : memref<1x144x121xbf16, #tpu.memory_space<vmem>>, vector<1x144x121xbf16>
    %2 = vector.shape_cast %1 : vector<1x144x121xbf16> to vector<144x121xbf16>
    %cst = arith.constant dense<0.000000e+00> : vector<288x121xf32>
    %3 = tpu.matmul %0, %2, %cst {dimension_numbers = #tpu.dot_dimension_numbers<[1], [0], [0], [1], [0, 0, 1, 1], [], []>} : vector<288x144xbf16>, vector<144x121xbf16>, vector<288x121xf32> -> vector<288x121xf32>
    %cst_4 = arith.constant 0.000000e+00 : f32
    %4 = vector.broadcast %cst_4 : f32 to vector<288x121xf32>
    %5 = arith.cmpf ogt, %3, %4 : vector<288x121xf32>
    %cst_5 = arith.constant 3.000000e-02 : f32
    %6 = vector.broadcast %cst_5 : f32 to vector<288x121xf32>
    %7 = arith.mulf %3, %6 : vector<288x121xf32>
    %8 = arith.select %5, %3, %7 : vector<288x121xi1>, vector<288x121xf32>
    %9 = arith.truncf %8 : vector<288x121xf32> to vector<288x121xbf16>
    %c0_6 = arith.constant 0 : index
    %c0_7 = arith.constant 0 : index
    %10 = vector.load %arg3[%c0_6, %c0_7] : memref<121x1024xbf16, #tpu.memory_space<vmem>>, vector<121x1024xbf16>
    %cst_8 = arith.constant dense<0.000000e+00> : vector<288x1024xf32>
    %11 = tpu.matmul %9, %10, %cst_8 {dimension_numbers = #tpu.dot_dimension_numbers<[1], [0], [0], [1], [0, 0, 1, 1], [], []>} : vector<288x121xbf16>, vector<121x1024xbf16>, vector<288x1024xf32> -> vector<288x1024xf32>
    %c0_9 = arith.constant 0 : index
    %c0_10 = arith.constant 0 : index
    %12 = vector.load %arg4[%c0_9, %c0_10] : memref<9x1024xf32, #tpu.memory_space<vmem>>, vector<9x1024xf32>
    %13 = vector.extract_strided_slice %11 {offsets = [0, 0], sizes = [32, 1024], strides = [1, 1]} : vector<288x1024xf32> to vector<32x1024xf32>
    %14 = vector.extract_strided_slice %12 {offsets = [0, 0], sizes = [1, 1024], strides = [1, 1]} : vector<9x1024xf32> to vector<1x1024xf32>
    %15 = vector.broadcast %14 : vector<1x1024xf32> to vector<32x1024xf32>
    %16 = arith.addf %13, %15 : vector<32x1024xf32>
    %17 = vector.extract_strided_slice %11 {offsets = [32, 0], sizes = [32, 1024], strides = [1, 1]} : vector<288x1024xf32> to vector<32x1024xf32>
    %18 = vector.extract_strided_slice %12 {offsets = [1, 0], sizes = [1, 1024], strides = [1, 1]} : vector<9x1024xf32> to vector<1x1024xf32>
    %19 = vector.broadcast %18 : vector<1x1024xf32> to vector<32x1024xf32>
    %20 = arith.addf %17, %19 : vector<32x1024xf32>
    %21 = arith.maximumf %16, %20 : vector<32x1024xf32>
    %22 = vector.extract_strided_slice %11 {offsets = [64, 0], sizes = [32, 1024], strides = [1, 1]} : vector<288x1024xf32> to vector<32x1024xf32>
    %23 = vector.extract_strided_slice %12 {offsets = [2, 0], sizes = [1, 1024], strides = [1, 1]} : vector<9x1024xf32> to vector<1x1024xf32>
    %24 = vector.broadcast %23 : vector<1x1024xf32> to vector<32x1024xf32>
    %25 = arith.addf %22, %24 : vector<32x1024xf32>
    %26 = arith.maximumf %21, %25 : vector<32x1024xf32>
    %27 = vector.extract_strided_slice %11 {offsets = [96, 0], sizes = [32, 1024], strides = [1, 1]} : vector<288x1024xf32> to vector<32x1024xf32>
    %28 = vector.extract_strided_slice %12 {offsets = [3, 0], sizes = [1, 1024], strides = [1, 1]} : vector<9x1024xf32> to vector<1x1024xf32>
    %29 = vector.broadcast %28 : vector<1x1024xf32> to vector<32x1024xf32>
    %30 = arith.addf %27, %29 : vector<32x1024xf32>
    %31 = arith.maximumf %26, %30 : vector<32x1024xf32>
    %32 = vector.extract_strided_slice %11 {offsets = [128, 0], sizes = [32, 1024], strides = [1, 1]} : vector<288x1024xf32> to vector<32x1024xf32>
    %33 = vector.extract_strided_slice %12 {offsets = [4, 0], sizes = [1, 1024], strides = [1, 1]} : vector<9x1024xf32> to vector<1x1024xf32>
    %34 = vector.broadcast %33 : vector<1x1024xf32> to vector<32x1024xf32>
    %35 = arith.addf %32, %34 : vector<32x1024xf32>
    %36 = arith.maximumf %31, %35 : vector<32x1024xf32>
    %37 = vector.extract_strided_slice %11 {offsets = [160, 0], sizes = [32, 1024], strides = [1, 1]} : vector<288x1024xf32> to vector<32x1024xf32>
    %38 = vector.extract_strided_slice %12 {offsets = [5, 0], sizes = [1, 1024], strides = [1, 1]} : vector<9x1024xf32> to vector<1x1024xf32>
    %39 = vector.broadcast %38 : vector<1x1024xf32> to vector<32x1024xf32>
    %40 = arith.addf %37, %39 : vector<32x1024xf32>
    %41 = arith.maximumf %36, %40 : vector<32x1024xf32>
    %42 = vector.extract_strided_slice %11 {offsets = [192, 0], sizes = [32, 1024], strides = [1, 1]} : vector<288x1024xf32> to vector<32x1024xf32>
    %43 = vector.extract_strided_slice %12 {offsets = [6, 0], sizes = [1, 1024], strides = [1, 1]} : vector<9x1024xf32> to vector<1x1024xf32>
    %44 = vector.broadcast %43 : vector<1x1024xf32> to vector<32x1024xf32>
    %45 = arith.addf %42, %44 : vector<32x1024xf32>
    %46 = arith.maximumf %41, %45 : vector<32x1024xf32>
    %47 = vector.extract_strided_slice %11 {offsets = [224, 0], sizes = [32, 1024], strides = [1, 1]} : vector<288x1024xf32> to vector<32x1024xf32>
    %48 = vector.extract_strided_slice %12 {offsets = [7, 0], sizes = [1, 1024], strides = [1, 1]} : vector<9x1024xf32> to vector<1x1024xf32>
    %49 = vector.broadcast %48 : vector<1x1024xf32> to vector<32x1024xf32>
    %50 = arith.addf %47, %49 : vector<32x1024xf32>
    %51 = arith.maximumf %46, %50 : vector<32x1024xf32>
    %52 = vector.extract_strided_slice %11 {offsets = [256, 0], sizes = [32, 1024], strides = [1, 1]} : vector<288x1024xf32> to vector<32x1024xf32>
    %53 = vector.extract_strided_slice %12 {offsets = [8, 0], sizes = [1, 1024], strides = [1, 1]} : vector<9x1024xf32> to vector<1x1024xf32>
    %54 = vector.broadcast %53 : vector<1x1024xf32> to vector<32x1024xf32>
    %55 = arith.addf %52, %54 : vector<32x1024xf32>
    %56 = arith.maximumf %51, %55 : vector<32x1024xf32>
    %57 = vector.extract_strided_slice %56 {offsets = [0, 0], sizes = [32, 256], strides = [1, 1]} : vector<32x1024xf32> to vector<32x256xf32>
    %58 = vector.extract_strided_slice %56 {offsets = [0, 256], sizes = [32, 256], strides = [1, 1]} : vector<32x1024xf32> to vector<32x256xf32>
    %59 = arith.maximumf %57, %58 : vector<32x256xf32>
    %60 = vector.extract_strided_slice %56 {offsets = [0, 512], sizes = [32, 256], strides = [1, 1]} : vector<32x1024xf32> to vector<32x256xf32>
    %61 = vector.extract_strided_slice %56 {offsets = [0, 768], sizes = [32, 256], strides = [1, 1]} : vector<32x1024xf32> to vector<32x256xf32>
    %62 = arith.maximumf %60, %61 : vector<32x256xf32>
    %63 = arith.maximumf %59, %62 : vector<32x256xf32>
    %64 = vector.extract_strided_slice %63 {offsets = [0, 0], sizes = [32, 169], strides = [1, 1]} : vector<32x256xf32> to vector<32x169xf32>
    %cst_11 = arith.constant dense<0.000000e+00> : vector<32xf32>
    %65 = vector.multi_reduction <add>, %64, %cst_11 [1] : vector<32x169xf32> to vector<32xf32>
    %66 = vector.shape_cast %65 : vector<32xf32> to vector<32x1xf32>
    %cst_12 = arith.constant 1.690000e+02 : f32
    %67 = vector.broadcast %cst_12 : f32 to vector<32x1xf32>
    %68 = arith.divf %66, %67 : vector<32x1xf32>
    %69 = vector.broadcast %68 : vector<32x1xf32> to vector<32x169xf32>
    %70 = arith.subf %64, %69 : vector<32x169xf32>
    %71 = arith.mulf %70, %70 : vector<32x169xf32>
    %cst_13 = arith.constant dense<0.000000e+00> : vector<32xf32>
    %72 = vector.multi_reduction <add>, %71, %cst_13 [1] : vector<32x169xf32> to vector<32xf32>
    %73 = vector.shape_cast %72 : vector<32xf32> to vector<32x1xf32>
    %cst_14 = arith.constant 1.690000e+02 : f32
    %74 = vector.broadcast %cst_14 : f32 to vector<32x1xf32>
    %75 = arith.divf %73, %74 : vector<32x1xf32>
    %cst_15 = arith.constant 1.000010e+00 : f32
    %76 = vector.broadcast %cst_15 : f32 to vector<32x1xf32>
    %77 = arith.mulf %75, %76 : vector<32x1xf32>
    %cst_16 = arith.constant 1.000000e-10 : f32
    %78 = vector.broadcast %cst_16 : f32 to vector<32x1xf32>
    %79 = arith.addf %77, %78 : vector<32x1xf32>
    %80 = math.rsqrt %79 : vector<32x1xf32>
    %81 = vector.broadcast %80 : vector<32x1xf32> to vector<32x169xf32>
    %82 = arith.mulf %70, %81 : vector<32x169xf32>
    %c0_17 = arith.constant 0 : index
    %c0_18 = arith.constant 0 : index
    %c0_19 = arith.constant 0 : index
    %83 = vector.load %arg5[%c0_17, %c0_18, %c0_19] : memref<1x32x169xf32, #tpu.memory_space<vmem>>, vector<1x32x169xf32>
    %84 = vector.shape_cast %83 : vector<1x32x169xf32> to vector<32x169xf32>
    %85 = vector.shape_cast %82 : vector<32x169xf32> to vector<1x32x169xf32>
    tpu.vector_store %arg5[%c0_17, %c0_18, %c0_19], %85 {strides = array<i32>} : memref<1x32x169xf32, #tpu.memory_space<vmem>>, vector<1x32x169xf32>,
    return
  }
  func.func @transform_0(%arg0: i32) -> (i32, i32, i32) {
    %c0_i32 = arith.constant 0 : i32
    %c0_i32_0 = arith.constant 0 : i32
    %c0_i32_1 = arith.constant 0 : i32
    return %arg0, %c0_i32, %c0_i32_0 : i32, i32, i32
  }
  func.func @transform_1(%arg0: i32) -> (i32, i32) {
    %c0_i32 = arith.constant 0 : i32
    %c0_i32_0 = arith.constant 0 : i32
    %c0_i32_1 = arith.constant 0 : i32
    return %c0_i32, %c0_i32_0 : i32, i32
  }
  func.func @transform_2(%arg0: i32) -> (i32, i32) {
    %c0_i32 = arith.constant 0 : i32
    %c0_i32_0 = arith.constant 0 : i32
    %c0_i32_1 = arith.constant 0 : i32
    return %c0_i32, %c0_i32_0 : i32, i32
  }
  func.func @transform_3(%arg0: i32) -> (i32, i32) {
    %c0_i32 = arith.constant 0 : i32
    %c0_i32_0 = arith.constant 0 : i32
    %c0_i32_1 = arith.constant 0 : i32
    return %c0_i32, %c0_i32_0 : i32, i32
  }
  func.func @transform_4(%arg0: i32) -> (i32, i32, i32) {
    %c0_i32 = arith.constant 0 : i32
    %c0_i32_0 = arith.constant 0 : i32
    %c0_i32_1 = arith.constant 0 : i32
    return %arg0, %c0_i32, %c0_i32_0 : i32, i32, i32
  }
}

</mosaic_0001>

<bundles_post_ra>
// kernel: model_forward.1
= control target key start
LH: loop header
LB: loop body
LE: loop exit
PB: predicated region body
PF: predicated region fallthrough
CT: control target
= control target key end

     0   :  { %s3729_s15 = smov 0   ;;  %s5753_s0 = inlined_call_operand.vmem [shape: bf16[2,144,121], index: 0, kind: input, shape index: {}]   ;;  %s5754_s1 = inlined_call_operand.vmem [shape: bf16[288,144], index: 1, kind: input, shape index: {}]   ;;  %s5755_s2 = inlined_call_operand.vmem [shape: bf16[121,1024], index: 2, kind: input, shape index: {}]   ;;  %s5756_s3 = inlined_call_operand.vmem [shape: f32[9,1024], index: 3, kind: input, shape index: {}]   ;;  %s5757_s4 = inlined_call_operand.vmem [shape: f32[2,32,169], index: 4, kind: output, shape index: {}]  }
   0x1 LB: > { %s2938_s16 = sadd.s32 4294967295, %s3700_s15   ;;  %p2942_p0 = scmp.ge.s32.totalorder %s3700_s15, 1  ;;  %s3700_s15 = sphi %s3729_s15, %s14_s15  }
   0x2   : > { %p162_p1 = scmp.lt.s32.totalorder %s3700_s15, 3 }
   0x4   : > { %p163_p2 = pnand %p2942_p0, %p162_p1 }
   0x6   : > { %166 = sbr.rel (%p163_p2) target bundleno = 1169 (0x491), region = 36 }
   0xb   : > { %p188_p3 = scmp.lt.s32.totalorder %s2938_s16, 1  ;;  %v3378_v0 = vld [vmem:[%s5755_s2 + $0x1c8] sm:$0xf]  ;;  %vm1279_vm0 = vcmask 1043456   ;;  %vm1280_vm1 = vcmask 1044480   ;;  %v3702_v3 = vmov 65535  }
   0xc   : > { %v3653_v1 = vld [vmem:[%s5755_s2 + $0x1e4] sm:$0x10]  ;;  %v1281_v4 = vsel %vm1279_vm0, 4294967295, %v3702_v3  ;;  %v3547_v6 = vld [vmem:[%s5754_s1 + $0x4] sm:$0xf]  ;;  %vm469_vm2 = vcmask 130048  }
   0xd   : > { %s5825_s16 = smov (!%p188_p3, %s2938_s16), 1  ;;  %v3379_v2 = vor.u32 %v3653_v1, %v3378_v0  ;;  %v3746_v5 = vsel %vm1280_vm1, %v1281_v4, 0  ;;  %v2950_v7 = vld [vmem:[%s5754_s1 + $0x8] sm:$0xf0]  ;;  %v3567_v14 = vld [vmem:[%s5754_s1 + $0xa4] sm:$0xf] }
   0xe   : > { %s3665_s21 = smul.u32 72, %s5825_s16  ;;  %v2953_v11 = vor.u32 %v3547_v6, %v2950_v7  ;;  %v3030_v15 = vld [vmem:[%s5754_s1 + $0xa8] sm:$0xf0]  ;;  %v3346_v16 = vld [vmem:[%s5755_s2 + $0x188] sm:$0xf]  ;;  %vm1224_vm5 = vcmask 990208  }
   0xf   : > { %v1290_v10 = vand.u32 %v3379_v2, %v3746_v5  ;;  %v3645_v17 = vld [vmem:[%s5755_s2 + $0x1a4] sm:$0xf0]  ;;  %v3033_v18 = vor.u32 %v3567_v14, %v3030_v15  ;;  %v3648_v20 = vld [vmem:[%s5755_s2 + $0x1c4] sm:$0xf]  ;;  %v3549_v26 = vld [vmem:[%s5754_s1 + $0x14] sm:$0xf] }
  0x10   : > { %s3751_s24 = scalar_lea.vmem %s5753_s0, %s3665_s21  ;;  %v3347_v19 = vor.u32 %v3645_v17, %v3346_v16  ;;  %v3372_v21 = vld [vmem:[%s5755_s2 + $0x1e0] sm:$0x10]  ;;  %v2958_v27 = vld [vmem:[%s5754_s1 + $0x18] sm:$0xf0]  ;;  %v3649_v30 = vld [vmem:[%s5755_s2 + $0x1cc] sm:$0xf] }
  0x11   : > { %v3590_v8 = vld [vmem:[%s3751_s24 + $0x38] sm:$0xff]  ;;  %v3591_v9 = vld [vmem:[%s3751_s24 + $0x40] sm:$0xff]  ;;  %v3589_v12 = vld [vmem:[%s3751_s24 + $0x30] sm:$0xff]  ;;  %v3375_v22 = vor.u32 %v3648_v20, %v3372_v21  ;;  %v2961_v28 = vor.u32 %v3549_v26, %v2958_v27  ;;  %s3546_s22 = sshll.u32 %s5825_s16, 6 }
  0x12   : > { %524 = vmatpush.bf16.msra.mxu0 %v3590_v8  ;;  %3656 = vmatpush.bf16.msra.mxu2 %v3590_v8  ;;  %v3588_v13 = vld [vmem:[%s3751_s24 + $0x28] sm:$0xff]  ;;  %v3587_v23 = vld [vmem:[%s3751_s24 + $0x20] sm:$0xff]  ;;  %v3586_v25 = vld [vmem:[%s3751_s24 + $0x18] sm:$0xff]  ;;  %s5728_s26 = scalar_lea.vmem %s5757_s4, %s3546_s22 }
  0x13   : > { %630 = vmatpush.bf16.msra.mxu1 %v3591_v9  ;;  %3664 = vmatpush.bf16.msra.mxu3 %v3591_v9  ;;  %v1287_v24 = vand.u32 %v3375_v22, %v3746_v5  ;;  %v3585_v29 = vld [vmem:[%s3751_s24 + $0x10] sm:$0xff]  ;;  %v3380_v31 = vld [vmem:[%s5755_s2 + $0x1e8] sm:$0x10]  ;;  %v3370_v32 = vld [vmem:[%s5755_s2 + $0x1c0] sm:$0xf] }
  0x14   : > { %v3652_v33 = vld [vmem:[%s5755_s2 + $0x1dc] sm:$0x10]  ;;  %v3584_v34 = vld [vmem:[%s3751_s24 + $0x8] sm:$0xff]  ;;  %v3569_v35 = vld [vmem:[%s5754_s1 + $0xb4] sm:$0xf]  ;;  %v3383_v37 = vor.u32 %v3649_v30, %v3380_v31 }
  0x15   : > { %v3038_v36 = vld [vmem:[%s5754_s1 + $0xb8] sm:$0xf0]  ;;  %v3314_v39 = vld [vmem:[%s5755_s2 + $0x148] sm:$0xf]  ;;  %v3371_v41 = vor.u32 %v3652_v33, %v3370_v32  ;;  %v3640_v43 = vld [vmem:[%s5755_s2 + $0x184] sm:$0xf] }
  0x16   : > { %3126 = vmatmul.msk.bf16.vlgmr.msra.gmra.mxu1 %vm469_vm2, %v2953_v11  ;;  %525 = vmatpush.bf16.msra.mxu0 %v3589_v12  ;;  %v3041_v38 = vor.u32 %v3569_v35, %v3038_v36  ;;  %v3637_v40 = vld [vmem:[%s5755_s2 + $0x164] sm:$0xf0]  ;;  %v3340_v44 = vld [vmem:[%s5755_s2 + $0x1a0] sm:$0xf0]  ;;  %v2948_v47 = vld [vmem:[%s5754_s1] sm:$0xf]  ;;  %v1293_v51 = vand.u32 %v3383_v37, %v3746_v5 }
  0x17   : > { %1505 = vmatpush.bf16.msrb.mxu1 %v1290_v10  ;;  %3657 = vmatpush.bf16.msra.mxu2 %v3589_v12  ;;  %v3315_v42 = vor.u32 %v3637_v40, %v3314_v39  ;;  %v3343_v45 = vor.u32 %v3640_v43, %v3340_v44  ;;  %v3583_v46 = vld [vmem:[%s3751_s24] sm:$0xff]  ;;  %v3548_v48 = vld [vmem:[%s5754_s1 + $0x4] sm:$0xf0]  ;;  %v3020_v49 = vld [vmem:[%s5754_s1 + $0x90] sm:$0xf]  ;;  %v1284_v52 = vand.u32 %v3371_v41, %v3746_v5 }
  0x18   : > { %3136 = vmatmul.msk.bf16.vlgmr.msra.gmra.mxu3 %vm469_vm2, %v3033_v18  ;;  %v3566_v50 = vld [vmem:[%s5754_s1 + $0x94] sm:$0xf0]  ;;  %v3641_v53 = vld [vmem:[%s5755_s2 + $0x18c] sm:$0xf]  ;;  %v2949_v55 = vor.u32 %v3548_v48, %v2948_v47  ;;  %v3338_v56 = vld [vmem:[%s5755_s2 + $0x180] sm:$0xf] }
  0x19   : > { %1406 = vmatpush.bf16.msrb.mxu3 %v1287_v24  ;;  %v3348_v54 = vld [vmem:[%s5755_s2 + $0x1a8] sm:$0xf0]  ;;  %v3644_v57 = vld [vmem:[%s5755_s2 + $0x19c] sm:$0xf0]  ;;  %v3021_v58 = vor.u32 %v3566_v50, %v3020_v49  ;;  %v3551_v59 = vld [vmem:[%s5754_s1 + $0x24] sm:$0xf] }
  0x1a   : > { %526 = vmatpush.bf16.msra.mxu0 %v3588_v13  ;;  %v2966_v60 = vld [vmem:[%s5754_s1 + $0x28] sm:$0xf0]  ;;  %v3351_v61 = vor.u32 %v3641_v53, %v3348_v54  ;;  %v3339_v62 = vor.u32 %v3644_v57, %v3338_v56  ;;  %v3306_v0 = vld [vmem:[%s5755_s2 + $0x140] sm:$0xf]  ;;  %v3571_v2 = vld [vmem:[%s5754_s1 + $0xc4] sm:$0xf] }
  0x1b   : > { %3658 = vmatpush.bf16.msra.mxu2 %v3588_v13  ;;  %1506 = vmatpush.bf16.msrb.mxu1 %v3347_v19  ;;  %v2969_v63 = vor.u32 %v3551_v59, %v2966_v60  ;;  %v3636_v1 = vld [vmem:[%s5755_s2 + $0x15c] sm:$0xf0]  ;;  %v3046_v4 = vld [vmem:[%s5754_s1 + $0xc8] sm:$0xf0]  ;;  %v3632_v10 = vld [vmem:[%s5755_s2 + $0x144] sm:$0xf] }
  0x1c   : > { %v3307_v3 = vor.u32 %v3636_v1, %v3306_v0  ;;  %v3633_v6 = vld [vmem:[%s5755_s2 + $0x14c] sm:$0xf]  ;;  %v3049_v8 = vor.u32 %v3571_v2, %v3046_v4  ;;  %v3308_v11 = vld [vmem:[%s5755_s2 + $0x160] sm:$0xf0]  ;;  %v2956_v13 = vld [vmem:[%s5754_s1 + $0x10] sm:$0xf] }
  0x1d   : > { %1407 = vmatpush.bf16.msrb.mxu3 %v3343_v45  ;;  %v3316_v7 = vld [vmem:[%s5755_s2 + $0x168] sm:$0xf0]  ;;  %v3311_v12 = vor.u32 %v3632_v10, %v3308_v11  ;;  %v3550_v14 = vld [vmem:[%s5754_s1 + $0x14] sm:$0xf0]  ;;  %v3028_v15 = vld [vmem:[%s5754_s1 + $0xa0] sm:$0xf] }
  0x1e   : > { %527 = vmatpush.bf16.msra.mxu0 %v3587_v23  ;;  %v3319_v9 = vor.u32 %v3633_v6, %v3316_v7  ;;  %v3568_v16 = vld [vmem:[%s5754_s1 + $0xa4] sm:$0xf0]  ;;  %v2957_v17 = vor.u32 %v3550_v14, %v2956_v13  ;;  %v3553_v19 = vld [vmem:[%s5754_s1 + $0x34] sm:$0xf]  ;;  %v2974_v20 = vld [vmem:[%s5754_s1 + $0x38] sm:$0xf0] }
  0x1f   : > { %3659 = vmatpush.bf16.msra.mxu2 %v3587_v23  ;;  %1507 = vmatpush.bf16.msrb.mxu1 %v3315_v42  ;;  %v3029_v18 = vor.u32 %v3568_v16, %v3028_v15  ;;  %v2977_v21 = vor.u32 %v3553_v19, %v2974_v20  ;;  %v3282_v22 = vld [vmem:[%s5755_s2 + $0x108] sm:$0xf]  ;;  %v3628_v26 = vld [vmem:[%s5755_s2 + $0x11c] sm:$0xf0]  ;;  %v3573_v27 = vld [vmem:[%s5754_s1 + $0xd4] sm:$0xf] }
  0x20   : > { %v3629_v23 = vld [vmem:[%s5755_s2 + $0x124] sm:$0xf0]  ;;  %v3625_v30 = vld [vmem:[%s5755_s2 + $0x10c] sm:$0xf]  ;;  %v3276_v35 = vld [vmem:[%s5755_s2 + $0x120] sm:$0xf0] }
  0x21   : > { %1408 = vmatpush.bf16.msrb.mxu3 %v3311_v12  ;;  %v3283_v24 = vor.u32 %v3629_v23, %v3282_v22  ;;  %v3284_v31 = vld [vmem:[%s5755_s2 + $0x128] sm:$0xf0]  ;;  %v2964_v37 = vld [vmem:[%s5754_s1 + $0x20] sm:$0xf]  ;;  %v3036_v39 = vld [vmem:[%s5754_s1 + $0xb0] sm:$0xf] }
  0x22   : > { %528 = vmatpush.bf16.msra.mxu0 %v3586_v25  ;;  %v3287_v33 = vor.u32 %v3625_v30, %v3284_v31  ;;  %v3570_v40 = vld [vmem:[%s5754_s1 + $0xb4] sm:$0xf0]  ;;  %v3555_v43 = vld [vmem:[%s5754_s1 + $0x44] sm:$0xf]  ;;  %v2982_v44 = vld [vmem:[%s5754_s1 + $0x48] sm:$0xf0] }
  0x23   : > { %3660 = vmatpush.bf16.msra.mxu2 %v3586_v25  ;;  %1508 = vmatpush.bf16.msrb.mxu1 %v3283_v24  ;;  %v3274_v25 = vld [vmem:[%s5755_s2 + $0x100] sm:$0xf]  ;;  %v3037_v42 = vor.u32 %v3570_v40, %v3036_v39  ;;  %v2985_v45 = vor.u32 %v3555_v43, %v2982_v44  ;;  %v3621_v47 = vld [vmem:[%s5755_s2 + $0xe4] sm:$0xf0]  ;;  %v3575_v48 = vld [vmem:[%s5754_s1 + $0xe4] sm:$0xf] }
  0x24   : > { %v3062_v50 = vld [vmem:[%s5754_s1 + $0xe8] sm:$0xf0]  ;;  %v3616_v57 = vld [vmem:[%s5755_s2 + $0xc4] sm:$0xf]  ;;  %v2972_v60 = vld [vmem:[%s5754_s1 + $0x30] sm:$0xf] }
  0x25   : > { %v3065_v53 = vor.u32 %v3575_v48, %v3062_v50  ;;  %v3252_v56 = vld [vmem:[%s5755_s2 + $0xe8] sm:$0xf0]  ;;  %v3244_v59 = vld [vmem:[%s5755_s2 + $0xe0] sm:$0xf0]  ;;  %v3572_v0 = vld [vmem:[%s5754_s1 + $0xc4] sm:$0xf0] }
  0x26   : > { %3127 = vmatmul.msk.bf16.gmra.mxu1 %vm469_vm2, %v2961_v28  ;;  %529 = vmatpush.bf16.msra.mxu0 %v3585_v29  ;;  %v3275_v28 = vor.u32 %v3628_v26, %v3274_v25  ;;  %v2990_v4 = vld [vmem:[%s5754_s1 + $0x58] sm:$0xf0]  ;;  %v3577_v7 = vld [vmem:[%s5754_s1 + $0xf4] sm:$0xf]  ;;  %v3612_v11 = vld [vmem:[%s5755_s2 + $0x9c] sm:$0xf0] }
  0x27   : > { %3661 = vmatpush.bf16.msra.mxu2 %v3585_v29  ;;  %v3054_v29 = vld [vmem:[%s5754_s1 + $0xd8] sm:$0xf0]  ;;  %v3218_v12 = vld [vmem:[%s5755_s2 + $0x88] sm:$0xf]  ;;  %v3608_v16 = vld [vmem:[%s5755_s2 + $0x84] sm:$0xf] }
  0x28   : > { %3137 = vmatmul.msk.bf16.gmra.mxu3 %vm469_vm2, %v3041_v38  ;;  %v3057_v32 = vor.u32 %v3573_v27, %v3054_v29  ;;  %v3552_v38 = vld [vmem:[%s5754_s1 + $0x24] sm:$0xf0]  ;;  %v3220_v20 = vld [vmem:[%s5755_s2 + $0xa8] sm:$0xf0]  ;;  %v3052_v24 = vld [vmem:[%s5754_s1 + $0xd0] sm:$0xf] }
  0x29   : > { %v2965_v41 = vor.u32 %v3552_v38, %v2964_v37  ;;  %v3613_v13 = vld [vmem:[%s5755_s2 + $0xa4] sm:$0xf0]  ;;  %v3574_v25 = vld [vmem:[%s5754_s1 + $0xd4] sm:$0xf0]  ;;  %v2998_v29 = vld [vmem:[%s5754_s1 + $0x68] sm:$0xf0] }
  0x2a   : > { %530 = vmatpush.bf16.msra.mxu0 %v3584_v34  ;;  %v3219_v15 = vor.u32 %v3613_v13, %v3218_v12  ;;  %v3556_v22 = vld [vmem:[%s5754_s1 + $0x44] sm:$0xf0]  ;;  %v3053_v27 = vor.u32 %v3574_v25, %v3052_v24  ;;  %v3579_v31 = vld [vmem:[%s5754_s1 + $0x104] sm:$0xf]  ;;  %v3178_v38 = vld [vmem:[%s5755_s2 + $0x40] sm:$0xf] }
  0x2b   : > { %3662 = vmatpush.bf16.msra.mxu2 %v3584_v34  ;;  %v3624_v34 = vld [vmem:[%s5755_s2 + $0x104] sm:$0xf]  ;;  %v3576_v37 = vld [vmem:[%s5754_s1 + $0xe4] sm:$0xf0]  ;;  %v3604_v39 = vld [vmem:[%s5755_s2 + $0x5c] sm:$0xf0] }
  0x2c   : > { %v3279_v36 = vor.u32 %v3624_v34, %v3276_v35  ;;  %v2988_v34 = vld [vmem:[%s5754_s1 + $0x50] sm:$0xf]  ;;  %v3558_v35 = vld [vmem:[%s5754_s1 + $0x54] sm:$0xf0]  ;;  %v3186_v40 = vld [vmem:[%s5755_s2 + $0x48] sm:$0xf] }
  0x2d   : > { %v3600_v43 = vld [vmem:[%s5755_s2 + $0x44] sm:$0xf]  ;;  %v3006_v50 = vld [vmem:[%s5754_s1 + $0x78] sm:$0xf0]  ;;  %v3565_v24 = vld [vmem:[%s5754_s1 + $0x94] sm:$0xf] }
  0x2e   : > { %531 = vmatpush.bf16.msra.mxu0 %v3583_v46  ;;  %1409 = vmatpush.bf16.msrb.mxu3 %v3279_v36  ;;  %v3060_v36 = vld [vmem:[%s5754_s1 + $0xe0] sm:$0xf]  ;;  %v3180_v44 = vld [vmem:[%s5755_s2 + $0x60] sm:$0xf0]  ;;  %v3022_v25 = vld [vmem:[%s5754_s1 + $0x98] sm:$0xf0] }
  0x2f   : > { %3663 = vmatpush.bf16.msra.mxu2 %v3583_v46  ;;  %v3250_v46 = vld [vmem:[%s5755_s2 + $0xc8] sm:$0xf]  ;;  %v3061_v48 = vor.u32 %v3576_v37, %v3060_v36  ;;  %v3012_v37 = vld [vmem:[%s5754_s1 + $0x80] sm:$0xf] }
  0x30   : > { %v3251_v49 = vor.u32 %v3621_v47, %v3250_v46  ;;  %v3183_v47 = vor.u32 %v3600_v43, %v3180_v44  ;;  %v3396_v43 = vld [vmem:[%s5755_s2 + $0x1f8] sm:$0x10]  ;;  %v3394_v44 = vld [vmem:[%s5755_s2 + $0x1d8] sm:$0xf] }
  0x31   : > { %532 = vmatmul.bf16.vlgmr.msra.gmra.mxu0 %v2949_v55  ;;  %v3617_v55 = vld [vmem:[%s5755_s2 + $0xcc] sm:$0xf] }
  0x32   : > { %1604 = vmatpush.bf16.msrb.mxu0 %v1293_v51  ;;  %577 = vmatmul.bf16.vlgmr.msra.gmra.mxu2 %v3021_v58  ;;  %v3242_v51 = vld [vmem:[%s5755_s2 + $0xc0] sm:$0xf]  ;;  %v3255_v58 = vor.u32 %v3617_v55, %v3252_v56  ;;  %v3581_v55 = vld [vmem:[%s5754_s1 + $0x114] sm:$0xf]  ;;  %v3086_v56 = vld [vmem:[%s5754_s1 + $0x118] sm:$0xf0] }
  0x33   : > { %1307 = vmatpush.bf16.msrb.mxu2 %v1284_v52  ;;  %v3620_v52 = vld [vmem:[%s5755_s2 + $0xdc] sm:$0xf0]  ;;  %1509 = vmatpush.bf16.msrb.mxu1 %v3251_v49  ;;  %v3561_v49 = vld [vmem:[%s5754_s1 + $0x74] sm:$0xf] }
  0x34   : > { %v3243_v54 = vor.u32 %v3620_v52, %v3242_v51  ;;  %v3009_v51 = vor.u32 %v3561_v49, %v3006_v50  ;;  %v3601_v52 = vld [vmem:[%s5755_s2 + $0x4c] sm:$0xf] }
  0x36   : > { %1605 = vmatpush.bf16.msrb.mxu0 %v3351_v61  ;;  %3128 = vmatmul.msk.bf16.gmra.mxu1 %vm469_vm2, %v2969_v63  ;;  %v3554_v61 = vld [vmem:[%s5754_s1 + $0x34] sm:$0xf0]  ;;  %v3044_v63 = vld [vmem:[%s5754_s1 + $0xc0] sm:$0xf] }
  0x37   : > { %1308 = vmatpush.bf16.msrb.mxu2 %v3339_v62  ;;  %v3247_v62 = vor.u32 %v3616_v57, %v3244_v59  ;;  %v2973_v1 = vor.u32 %v3554_v61, %v2972_v60  ;;  %v3045_v2 = vor.u32 %v3572_v0, %v3044_v63  ;;  %1510 = vmatpush.bf16.msrb.mxu1 %v3219_v15  ;;  %v3560_v59 = vld [vmem:[%s5754_s1 + $0x64] sm:$0xf0]  ;;  %v3068_v60 = vld [vmem:[%s5754_s1 + $0xf0] sm:$0xf]  ;;  %v3578_v61 = vld [vmem:[%s5754_s1 + $0xf4] sm:$0xf0] }
  0x38   : > { %3138 = vmatmul.msk.bf16.gmra.mxu3 %vm469_vm2, %v3049_v8  ;;  %v3070_v8 = vld [vmem:[%s5754_s1 + $0xf8] sm:$0xf0]  ;;  %v3089_v57 = vor.u32 %v3581_v55, %v3086_v56  ;;  %v3069_v63 = vor.u32 %v3578_v61, %v3068_v60  ;;  %v3563_v0 = vld [vmem:[%s5754_s1 + $0x84] sm:$0xf]  ;;  %v3156_v15 = vld [vmem:[%s5755_s2 + $0x28] sm:$0xf0] }
  0x39   : > { %1410 = vmatpush.bf16.msrb.mxu3 %v3247_v62  ;;  %v3073_v10 = vor.u32 %v3577_v7, %v3070_v8  ;;  %v3592_v7 = vld [vmem:[%s5755_s2 + $0x4] sm:$0xf] }
  0x3a   : > { %1606 = vmatpush.bf16.msrb.mxu0 %v3319_v9  ;;  %v3210_v9 = vld [vmem:[%s5755_s2 + $0x80] sm:$0xf] }
  0x3b   : > { %1309 = vmatpush.bf16.msrb.mxu2 %v3307_v3  ;;  %v3557_v3 = vld [vmem:[%s5754_s1 + $0x54] sm:$0xf]  ;;  %v3211_v14 = vor.u32 %v3612_v11, %v3210_v9  ;;  %v3148_v9 = vld [vmem:[%s5755_s2 + $0x20] sm:$0xf0]  ;;  %v3597_v11 = vld [vmem:[%s5755_s2 + $0x24] sm:$0xf0] }
  0x3c   : > { %v2993_v6 = vor.u32 %v3557_v3, %v2990_v4  ;;  %v3146_v4 = vld [vmem:[%s5755_s2] sm:$0xf]  ;;  %v3151_v12 = vor.u32 %v3592_v7, %v3148_v9 }
  0x3e   : > { %1607 = vmatpush.bf16.msrb.mxu0 %v3287_v33 }
  0x3f   : > { %1310 = vmatpush.bf16.msrb.mxu2 %v3275_v28  ;;  %v3559_v28 = vld [vmem:[%s5754_s1 + $0x64] sm:$0xf] }
  0x40   : > { %v3001_v30 = vor.u32 %v3559_v28, %v2998_v29  ;;  %v3650_v29 = vld [vmem:[%s5755_s2 + $0x1d4] sm:$0xf] }
  0x41   : > { %537 = vmatmul.bf16.gmra.mxu0 %v2957_v17  ;;  %v3212_v17 = vld [vmem:[%s5755_s2 + $0xa0] sm:$0xf0] }
  0x42   : > { %582 = vmatmul.bf16.gmra.mxu2 %v3029_v18  ;;  %1608 = vmatpush.bf16.msrb.mxu0 %v3255_v58  ;;  %v3609_v18 = vld [vmem:[%s5755_s2 + $0x8c] sm:$0xf]  ;;  %v3215_v19 = vor.u32 %v3608_v16, %v3212_v17  ;;  %v2996_v58 = vld [vmem:[%s5754_s1 + $0x60] sm:$0xf]  ;;  %v3004_v17 = vld [vmem:[%s5754_s1 + $0x70] sm:$0xf] }
  0x43   : > { %1311 = vmatpush.bf16.msrb.mxu2 %v3243_v54  ;;  %v3223_v23 = vor.u32 %v3609_v18, %v3220_v20  ;;  %v2997_v62 = vor.u32 %v3560_v59, %v2996_v58  ;;  %v3562_v18 = vld [vmem:[%s5754_s1 + $0x74] sm:$0xf0]  ;;  %v3076_v20 = vld [vmem:[%s5754_s1 + $0x100] sm:$0xf] }
  0x44   : > { %1411 = vmatpush.bf16.msrb.mxu3 %v3215_v19 }
  0x46   : > { %3129 = vmatmul.msk.bf16.gmra.mxu1 %vm469_vm2, %v2977_v21  ;;  %v2980_v21 = vld [vmem:[%s5754_s1 + $0x40] sm:$0xf]  ;;  %1609 = vmatpush.bf16.msrb.mxu0 %v3223_v23 }
  0x47   : > { %1312 = vmatpush.bf16.msrb.mxu2 %v3211_v14  ;;  %v2981_v26 = vor.u32 %v3556_v22, %v2980_v21  ;;  %v3593_v14 = vld [vmem:[%s5755_s2 + $0xc] sm:$0xf]  ;;  %v3580_v21 = vld [vmem:[%s5754_s1 + $0x104] sm:$0xf0]  ;;  %v3005_v22 = vor.u32 %v3562_v18, %v3004_v17 }
  0x48   : > { %3139 = vmatmul.msk.bf16.gmra.mxu3 %vm469_vm2, %v3057_v32  ;;  %v3078_v32 = vld [vmem:[%s5754_s1 + $0x108] sm:$0xf0]  ;;  %v3159_v16 = vor.u32 %v3593_v14, %v3156_v15  ;;  %v3077_v23 = vor.u32 %v3580_v21, %v3076_v20  ;;  %v3356_v14 = vld [vmem:[%s5755_s2 + $0x1b0] sm:$0xf0]  ;;  %v3354_v15 = vld [vmem:[%s5755_s2 + $0x190] sm:$0xf] }
  0x49   : > { %v3081_v33 = vor.u32 %v3579_v31, %v3078_v32  ;;  %1412 = vmatpush.bf16.msrb.mxu3 %v3183_v47  ;;  %v3386_v31 = vld [vmem:[%s5755_s2 + $0x1d0] sm:$0xf] }
  0x4a   : > { %v3646_v21 = vld [vmem:[%s5755_s2 + $0x1ac] sm:$0xf0] }
  0x4d   : > { %1413 = vmatpush.bf16.msrb.mxu3 %v3151_v12 }
  0x51   : > { %542 = vmatmul.bf16.gmra.mxu0 %v2965_v41  ;;  %v3179_v41 = vor.u32 %v3604_v39, %v3178_v38  ;;  %v3564_v38 = vld [vmem:[%s5754_s1 + $0x84] sm:$0xf0] }
  0x52   : > { %587 = vmatmul.bf16.gmra.mxu2 %v3037_v42  ;;  %v3605_v42 = vld [vmem:[%s5755_s2 + $0x64] sm:$0xf0] }
  0x53   : > { %v3187_v46 = vor.u32 %v3605_v42, %v3186_v40  ;;  %1313 = vmatpush.bf16.msrb.mxu2 %v3179_v41  ;;  %v3084_v40 = vld [vmem:[%s5754_s1 + $0x110] sm:$0xf]  ;;  %v3582_v41 = vld [vmem:[%s5754_s1 + $0x114] sm:$0xf0]  ;;  %v3651_v42 = vld [vmem:[%s5755_s2 + $0x1dc] sm:$0xf] }
  0x54   : > { %v3399_v47 = vor.u32 %v3651_v42, %v3396_v43  ;;  %v3085_v50 = vor.u32 %v3582_v41, %v3084_v40 }
  0x55   : > { %1511 = vmatpush.bf16.msrb.mxu1 %v3187_v46 }
  0x56   : > { %3130 = vmatmul.msk.bf16.gmra.mxu1 %vm469_vm2, %v2985_v45  ;;  %v2989_v45 = vor.u32 %v3558_v35, %v2988_v34 }
  0x58   : > { %3140 = vmatmul.msk.bf16.gmra.mxu3 %vm469_vm2, %v3065_v53  ;;  %v3188_v53 = vld [vmem:[%s5755_s2 + $0x68] sm:$0xf0] }
  0x59   : > { %v3191_v54 = vor.u32 %v3601_v52, %v3188_v53  ;;  %v1305_v52 = vand.u32 %v3399_v47, %v3746_v5 }
  0x5b   : > { %1610 = vmatpush.bf16.msrb.mxu0 %v3191_v54 }
  0x5f   : > { %1611 = vmatpush.bf16.msrb.mxu0 %v3159_v16 }
  0x61   : > { %547 = vmatmul.bf16.gmra.mxu0 %v2973_v1  ;;  %v3014_v1 = vld [vmem:[%s5754_s1 + $0x88] sm:$0xf0] }
  0x62   : > { %592 = vmatmul.bf16.gmra.mxu2 %v3045_v2  ;;  %v3017_v2 = vor.u32 %v3563_v0, %v3014_v1 }
  0x63   : > { %2000 = vmatpush.bf16.msra.mxu0 %v1305_v52 }
  0x66   : > { %3131 = vmatmul.msk.bf16.gmra.mxu1 %vm469_vm2, %v2993_v6  ;;  %v3596_v6 = vld [vmem:[%s5755_s2 + $0x1c] sm:$0xf0] }
  0x67   : > { %v3147_v8 = vor.u32 %v3596_v6, %v3146_v4 }
  0x68   : > { %3141 = vmatmul.msk.bf16.gmra.mxu3 %vm469_vm2, %v3073_v10  ;;  %v3154_v10 = vld [vmem:[%s5755_s2 + $0x8] sm:$0xf] }
  0x69   : > { %v3155_v13 = vor.u32 %v3597_v11, %v3154_v10  ;;  %1314 = vmatpush.bf16.msrb.mxu2 %v3147_v8 }
  0x6b   : > { %1512 = vmatpush.bf16.msrb.mxu1 %v3155_v13  ;;  %v3642_v13 = vld [vmem:[%s5755_s2 + $0x194] sm:$0xf] }
  0x6c   : > { %v3359_v20 = vor.u32 %v3642_v13, %v3356_v14  ;;  %v3324_v13 = vld [vmem:[%s5755_s2 + $0x170] sm:$0xf0]  ;;  %v3322_v14 = vld [vmem:[%s5755_s2 + $0x150] sm:$0xf] }
  0x71   : > { %552 = vmatmul.bf16.gmra.mxu0 %v2981_v26  ;;  %v3025_v26 = vor.u32 %v3565_v24, %v3022_v25  ;;  %v3643_v24 = vld [vmem:[%s5755_s2 + $0x19c] sm:$0xf] }
  0x72   : > { %597 = vmatmul.bf16.gmra.mxu2 %v3053_v27  ;;  %v3364_v25 = vld [vmem:[%s5755_s2 + $0x1b8] sm:$0xf0] }
  0x76   : > { %3132 = vmatmul.msk.bf16.gmra.mxu1 %vm469_vm2, %v3001_v30  ;;  %v3388_v30 = vld [vmem:[%s5755_s2 + $0x1f0] sm:$0x10] }
  0x77   : > { %v3391_v32 = vor.u32 %v3650_v29, %v3388_v30  ;;  %v3647_v29 = vld [vmem:[%s5755_s2 + $0x1b4] sm:$0xf0] }
  0x78   : > { %3142 = vmatmul.msk.bf16.gmra.mxu3 %vm469_vm2, %v3081_v33  ;;  %v3654_v33 = vld [vmem:[%s5755_s2 + $0x1ec] sm:$0x10] }
  0x79   : > { %v3387_v34 = vor.u32 %v3654_v33, %v3386_v31  ;;  %v1299_v35 = vand.u32 %v3391_v32, %v3746_v5 }
  0x7b   : > { %v1296_v36 = vand.u32 %v3387_v34, %v3746_v5  ;;  %1802 = vmatpush.bf16.msra.mxu3 %v1299_v35 }
  0x7d   : > { %1703 = vmatpush.bf16.msra.mxu2 %v1296_v36 }
  0x7f   : > { %1803 = vmatpush.bf16.msra.mxu3 %v3359_v20 }
  0x81   : > { %557 = vmatmul.bf16.gmra.mxu0 %v2989_v45  ;;  %v3013_v45 = vor.u32 %v3564_v38, %v3012_v37 }
  0x82   : > { %602 = vmatmul.bf16.gmra.mxu2 %v3061_v48  ;;  %v3655_v48 = vld [vmem:[%s5755_s2 + $0x1f4] sm:$0x10] }
  0x86   : > { %3133 = vmatmul.msk.bf16.gmra.mxu1 %vm469_vm2, %v3009_v51  ;;  %v3395_v51 = vor.u32 %v3655_v48, %v3394_v44 }
  0x88   : > { %3143 = vmatmul.msk.bf16.gmra.mxu3 %vm469_vm2, %v3089_v57  ;;  %v1302_v53 = vand.u32 %v3395_v51, %v3746_v5 }
  0x8a   : > { %1901 = vmatpush.bf16.msra.mxu1 %v1302_v53 }
  0x91   : > { %562 = vmatmul.bf16.gmra.mxu0 %v2997_v62 }
  0x92   : > { %607 = vmatmul.bf16.gmra.mxu2 %v3069_v63 }
  0x93   : > { %v4130_v3 = vpop.f32.mrf.mxu1 }
  0x96   : > { %3134 = vmatmul.msk.bf16.gmra.mxu1 %vm469_vm2, %v3017_v2 }
  0x9b   : > { %v634_v19 = vpop.f32.mrf.mxu1  ;;  %v682_v28 = vpop.f32.mrf.mxu3 }
  0xa1   : > { %567 = vmatmul.bf16.gmra.mxu0 %v3005_v22 }
  0xa2   : > { %612 = vmatmul.bf16.gmra.mxu2 %v3077_v23  ;;  %v3355_v23 = vor.u32 %v3646_v21, %v3354_v15 }
  0xa3   : > { %v637_v27 = vpop.f32.mrf.mxu1  ;;  %v4211_v46 = vpop.f32.mrf.mxu3 }
  0xa4   : > { %1704 = vmatpush.bf16.msra.mxu2 %v3355_v23 }
  0xa6   : > { %3135 = vmatmul.msk.bf16.gmra.mxu1 %vm469_vm2, %v3025_v26  ;;  %v3362_v26 = vld [vmem:[%s5755_s2 + $0x198] sm:$0xf] }
  0xa7   : > { %v3363_v33 = vor.u32 %v3647_v29, %v3362_v26 }
  0xa9   : > { %1902 = vmatpush.bf16.msra.mxu1 %v3363_v33 }
  0xab   : > { %v639_v39 = vpop.f32.mrf.mxu1  ;;  %v4223_v60 = vpop.f32.mrf.mxu3 }
  0xae   : > { %v533_v49 = vpop.f32.mrf.mxu0 }
  0xaf   : > { %v633_v54 = vadd.f32 %v4130_v3, %v533_v49 }
  0xb1   : > { %572 = vmatmul.bf16.gmra.mxu0 %v3013_v45  ;;  %v758_v58 = vmul.f32 0.03, %v633_v54  ;;  %vm722_vm3 = vcmp.gt.f32.partialorder %v633_v54, 0.0 }
  0xb2   : > { %617 = vmatmul.bf16.gmra.mxu2 %v3085_v50 }
  0xb3   : > { %v4219_v55 = vpop.f32.mrf.mxu1  ;;  %v794_v62 = vsel %vm722_vm3, %v633_v54, %v758_v58  ;;  %v4235_v3 = vpop.f32.mrf.mxu3 }
  0xb5   : > { %v4221_v56 = vpop.f32.mrf.mxu2 }
  0xb6   : > { %v535_v57 = vpop.f32.mrf.mxu0 }
  0xb7   : > { %v635_v59 = vadd.f32 %v634_v19, %v535_v57 }
  0xb9   : > { %vm723_vm4 = vcmp.gt.f32.partialorder %v635_v59, 0.0  ;;  %v759_v61 = vmul.f32 0.03, %v635_v59 }
  0xbb   : > { %v795_v5 = vsel %vm723_vm4, %v635_v59, %v759_v61  ;;  %v644_v63 = vpop.f32.mrf.mxu1  ;;  %v692_v19 = vpop.f32.mrf.mxu3 }
  0xbc   : > { %v4225_v0 = vpack.c.bf16 %v795_v5, %v794_v62 }
  0xbd   : > { %v4227_v1 = vpop.f32.mrf.mxu2 }
  0xbe   : > { %v538_v2 = vpop.f32.mrf.mxu0  ;;  %3418 = vmatmul.msk.bf16.vlgmr.msrb.gmra.mxu3 %vm1224_vm5, %v4225_v0  ;;  %3436 = vmatmul.msk.bf16.vlgmr.msrb.gmra.mxu1 %vm1224_vm5, %v4225_v0 }
  0xbf   : > { %v638_v4 = vadd.f32 %v637_v27, %v538_v2 }
  0xc1   : > { %3454 = vmatmul.msk.bf16.vlgmr.msrb.gmra.mxu0 %vm1224_vm5, %v4225_v0  ;;  %v760_v10 = vmul.f32 0.03, %v638_v4  ;;  %vm724_vm6 = vcmp.gt.f32.partialorder %v638_v4, 0.0 }
  0xc2   : > { %3400 = vmatmul.msk.bf16.vlgmr.msrb.gmra.mxu2 %vm1224_vm5, %v4225_v0 }
  0xc3   : > { %v4239_v6 = vpop.f32.mrf.mxu1  ;;  %v796_v16 = vsel %vm724_vm6, %v638_v4, %v760_v10  ;;  %v694_v41 = vpop.f32.mrf.mxu3 }
  0xc5   : > { %v583_v7 = vpop.f32.mrf.mxu2 }
  0xc6   : > { %v683_v8 = vadd.f32 %v682_v28, %v583_v7  ;;  %v540_v9 = vpop.f32.mrf.mxu0  ;;  %v3367_v28 = vor.u32 %v3643_v24, %v3364_v25 }
  0xc7   : > { %v640_v11 = vadd.f32 %v639_v39, %v540_v9 }
  0xc8   : > { %v778_v30 = vmul.f32 0.03, %v683_v8  ;;  %vm742_vm8 = vcmp.gt.f32.partialorder %v683_v8, 0.0  ;;  %2001 = vmatpush.bf16.msra.mxu0 %v3367_v28 }
  0xc9   : > { %vm725_vm7 = vcmp.gt.f32.partialorder %v640_v11, 0.0  ;;  %v761_v12 = vmul.f32 0.03, %v640_v11 }
  0xca   : > { %v814_v35 = vsel %vm742_vm8, %v683_v8, %v778_v30  ;;  %v3635_v30 = vld [vmem:[%s5755_s2 + $0x15c] sm:$0xf] }
  0xcb   : > { %v797_v17 = vsel %vm725_vm7, %v640_v11, %v761_v12  ;;  %v4250_v18 = vpop.f32.mrf.mxu1 }
  0xcc   : > { %v4255_v22 = vpack.c.bf16 %v797_v17, %v796_v16  ;;  %v3638_v17 = vld [vmem:[%s5755_s2 + $0x16c] sm:$0xf0] }
  0xcd   : > { %v585_v27 = vpop.f32.mrf.mxu2  ;;  %v3323_v21 = vor.u32 %v3638_v17, %v3322_v14 }
  0xce   : > { %v685_v31 = vadd.f32 %v4211_v46, %v585_v27  ;;  %v543_v32 = vpop.f32.mrf.mxu0  ;;  %3419 = vmatmul.msk.bf16.gmra.mxu3 %vm1224_vm5, %v4255_v22  ;;  %3437 = vmatmul.msk.bf16.gmra.mxu1 %vm1224_vm5, %v4255_v22 }
  0xcf   : > { %v643_v38 = vadd.f32 %v4219_v55, %v543_v32  ;;  %v697_v55 = vpop.f32.mrf.mxu3  ;;  %1705 = vmatpush.bf16.msra.mxu2 %v3323_v21  ;;  %v3330_v32 = vld [vmem:[%s5755_s2 + $0x158] sm:$0xf]  ;;  %v3626_v21 = vld [vmem:[%s5755_s2 + $0x114] sm:$0xf] }
  0xd0   : > { %vm743_vm9 = vcmp.gt.f32.partialorder %v685_v31, 0.0  ;;  %v779_v34 = vmul.f32 0.03, %v685_v31 }
  0xd1   : > { %3455 = vmatmul.msk.bf16.gmra.mxu0 %vm1224_vm5, %v4255_v22  ;;  %v762_v44 = vmul.f32 0.03, %v643_v38  ;;  %vm726_vm10 = vcmp.gt.f32.partialorder %v643_v38, 0.0 }
  0xd2   : > { %v815_v36 = vsel %vm743_vm9, %v685_v31, %v779_v34  ;;  %3401 = vmatmul.msk.bf16.gmra.mxu2 %vm1224_vm5, %v4255_v22  ;;  %v3332_v31 = vld [vmem:[%s5755_s2 + $0x178] sm:$0xf0]  ;;  %v3639_v34 = vld [vmem:[%s5755_s2 + $0x174] sm:$0xf0] }
  0xd3   : > { %v4278_v37 = vpack.c.bf16 %v815_v36, %v814_v35  ;;  %v4281_v39 = vpop.f32.mrf.mxu1  ;;  %v798_v47 = vsel %vm726_vm10, %v643_v38, %v762_v44  ;;  %v3335_v33 = vor.u32 %v3635_v30, %v3332_v31  ;;  %v3331_v36 = vor.u32 %v3639_v34, %v3330_v32  ;;  %v3298_v34 = vld [vmem:[%s5755_s2 + $0x118] sm:$0xf] }
  0xd5   : > { %v588_v40 = vpop.f32.mrf.mxu2  ;;  %2002 = vmatpush.bf16.msra.mxu0 %v3335_v33  ;;  %1903 = vmatpush.bf16.msra.mxu1 %v3331_v36 }
  0xd6   : > { %v688_v42 = vadd.f32 %v4223_v60, %v588_v40  ;;  %v545_v43 = vpop.f32.mrf.mxu0 }
  0xd7   : > { %v645_v45 = vadd.f32 %v644_v63, %v545_v43  ;;  %v699_v8 = vpop.f32.mrf.mxu3 }
  0xd8   : > { %v780_v52 = vmul.f32 0.03, %v688_v42  ;;  %vm744_vm12 = vcmp.gt.f32.partialorder %v688_v42, 0.0 }
  0xd9   : > { %vm727_vm11 = vcmp.gt.f32.partialorder %v645_v45, 0.0  ;;  %v763_v46 = vmul.f32 0.03, %v645_v45 }
  0xda   : > { %v816_v58 = vsel %vm744_vm12, %v688_v42, %v780_v52 }
  0xdb   : > { %v799_v48 = vsel %vm727_vm11, %v645_v45, %v763_v46  ;;  %v4284_v49 = vpop.f32.mrf.mxu1 }
  0xdc   : > { %v4286_v50 = vpack.c.bf16 %v799_v48, %v798_v47 }
  0xdd   : > { %v590_v51 = vpop.f32.mrf.mxu2 }
  0xde   : > { %v690_v53 = vadd.f32 %v4235_v3, %v590_v51  ;;  %v548_v54 = vpop.f32.mrf.mxu0  ;;  %3420 = vmatmul.msk.bf16.gmra.mxu3 %vm1224_vm5, %v4286_v50  ;;  %3438 = vmatmul.msk.bf16.gmra.mxu1 %vm1224_vm5, %v4286_v50 }
  0xdf   : > { %v648_v61 = vadd.f32 %v4239_v6, %v548_v54  ;;  %v3634_v6 = vld [vmem:[%s5755_s2 + $0x154] sm:$0xf]  ;;  %v702_v29 = vpop.f32.mrf.mxu3 }
  0xe0   : > { %vm745_vm13 = vcmp.gt.f32.partialorder %v690_v53, 0.0  ;;  %v781_v57 = vmul.f32 0.03, %v690_v53  ;;  %v3327_v16 = vor.u32 %v3634_v6, %v3324_v13 }
  0xe1   : > { %3456 = vmatmul.msk.bf16.gmra.mxu0 %vm1224_vm5, %v4286_v50  ;;  %v764_v3 = vmul.f32 0.03, %v648_v61  ;;  %vm728_vm14 = vcmp.gt.f32.partialorder %v648_v61, 0.0 }
  0xe2   : > { %v817_v59 = vsel %vm745_vm13, %v690_v53, %v781_v57  ;;  %3402 = vmatmul.msk.bf16.gmra.mxu2 %vm1224_vm5, %v4286_v50  ;;  %1804 = vmatpush.bf16.msra.mxu3 %v3327_v16 }
  0xe3   : > { %v4297_v60 = vpack.c.bf16 %v817_v59, %v816_v58  ;;  %v4300_v62 = vpop.f32.mrf.mxu1  ;;  %v800_v9 = vsel %vm728_vm14, %v648_v61, %v764_v3 }
  0xe5   : > { %v593_v5 = vpop.f32.mrf.mxu2 }
  0xe6   : > { %v693_v63 = vadd.f32 %v692_v19, %v593_v5  ;;  %v550_v2 = vpop.f32.mrf.mxu0 }
  0xe7   : > { %v650_v4 = vadd.f32 %v4250_v18, %v550_v2  ;;  %v704_v48 = vpop.f32.mrf.mxu3 }
  0xe8   : > { %v782_v18 = vmul.f32 0.03, %v693_v63  ;;  %vm746_vm0 = vcmp.gt.f32.partialorder %v693_v63, 0.0 }
  0xe9   : > { %vm729_vm15 = vcmp.gt.f32.partialorder %v650_v4, 0.0  ;;  %v765_v7 = vmul.f32 0.03, %v650_v4 }
  0xea   : > { %v818_v24 = vsel %vm746_vm0, %v693_v63, %v782_v18 }
  0xeb   : > { %v801_v10 = vsel %vm729_vm15, %v650_v4, %v765_v7  ;;  %v4303_v11 = vpop.f32.mrf.mxu1 }
  0xec   : > { %v4305_v12 = vpack.c.bf16 %v801_v10, %v800_v9 }
  0xed   : > { %v595_v15 = vpop.f32.mrf.mxu2 }
  0xee   : > { %v695_v19 = vadd.f32 %v694_v41, %v595_v15  ;;  %v553_v20 = vpop.f32.mrf.mxu0  ;;  %3421 = vmatmul.msk.bf16.gmra.mxu3 %vm1224_vm5, %v4305_v12  ;;  %3439 = vmatmul.msk.bf16.gmra.mxu1 %vm1224_vm5, %v4305_v12 }
  0xef   : > { %v653_v27 = vadd.f32 %v4281_v39, %v553_v20  ;;  %v707_v4 = vpop.f32.mrf.mxu3 }
  0xf0   : > { %vm747_vm1 = vcmp.gt.f32.partialorder %v695_v19, 0.0  ;;  %v783_v23 = vmul.f32 0.03, %v695_v19 }
  0xf1   : > { %3457 = vmatmul.msk.bf16.gmra.mxu0 %vm1224_vm5, %v4305_v12  ;;  %v766_v40 = vmul.f32 0.03, %v653_v27  ;;  %vm730_vm2 = vcmp.gt.f32.partialorder %v653_v27, 0.0 }
  0xf2   : > { %v819_v25 = vsel %vm747_vm1, %v695_v19, %v783_v23  ;;  %3403 = vmatmul.msk.bf16.gmra.mxu2 %vm1224_vm5, %v4305_v12  ;;  %v3292_v23 = vld [vmem:[%s5755_s2 + $0x130] sm:$0xf0] }
  0xf3   : > { %v4327_v26 = vpack.c.bf16 %v819_v25, %v818_v24  ;;  %v4330_v28 = vpop.f32.mrf.mxu1  ;;  %v802_v43 = vsel %vm730_vm2, %v653_v27, %v766_v40  ;;  %v3290_v24 = vld [vmem:[%s5755_s2 + $0x110] sm:$0xf]  ;;  %v3295_v25 = vor.u32 %v3626_v21, %v3292_v23 }
  0xf4   : > { %v3630_v27 = vld [vmem:[%s5755_s2 + $0x12c] sm:$0xf0] }
  0xf5   : > { %v598_v35 = vpop.f32.mrf.mxu2  ;;  %v3291_v32 = vor.u32 %v3630_v27, %v3290_v24  ;;  %1805 = vmatpush.bf16.msra.mxu3 %v3295_v25 }
  0xf6   : > { %v698_v38 = vadd.f32 %v697_v55, %v598_v35  ;;  %v555_v39 = vpop.f32.mrf.mxu0  ;;  %v3631_v35 = vld [vmem:[%s5755_s2 + $0x134] sm:$0xf0] }
  0xf7   : > { %v655_v41 = vadd.f32 %v4284_v49, %v555_v39  ;;  %v709_v16 = vpop.f32.mrf.mxu3  ;;  %v3299_v39 = vor.u32 %v3631_v35, %v3298_v34  ;;  %1706 = vmatpush.bf16.msra.mxu2 %v3291_v32  ;;  %v3622_v32 = vld [vmem:[%s5755_s2 + $0xec] sm:$0xf0] }
  0xf8   : > { %v784_v51 = vmul.f32 0.03, %v698_v38  ;;  %vm748_vm4 = vcmp.gt.f32.partialorder %v698_v38, 0.0 }
  0xf9   : > { %vm731_vm3 = vcmp.gt.f32.partialorder %v655_v41, 0.0  ;;  %v767_v42 = vmul.f32 0.03, %v655_v41  ;;  %1904 = vmatpush.bf16.msra.mxu1 %v3299_v39  ;;  %v3619_v39 = vld [vmem:[%s5755_s2 + $0xdc] sm:$0xf] }
  0xfa   : > { %v820_v54 = vsel %vm748_vm4, %v698_v38, %v784_v51 }
  0xfb   : > { %v803_v44 = vsel %vm731_vm3, %v655_v41, %v767_v42  ;;  %v4345_v45 = vpop.f32.mrf.mxu1 }
  0xfc   : > { %v4347_v46 = vpack.c.bf16 %v803_v44, %v802_v43 }
  0xfd   : > { %v600_v47 = vpop.f32.mrf.mxu2 }
  0xfe   : > { %v700_v52 = vadd.f32 %v699_v8, %v600_v47  ;;  %v558_v53 = vpop.f32.mrf.mxu0  ;;  %3422 = vmatmul.msk.bf16.gmra.mxu3 %vm1224_vm5, %v4347_v46  ;;  %3440 = vmatmul.msk.bf16.gmra.mxu1 %vm1224_vm5, %v4347_v46 }
  0xff   : > { %v658_v58 = vadd.f32 %v4300_v62, %v558_v53  ;;  %v712_v47 = vpop.f32.mrf.mxu3 }
 0x100   : > { %vm749_vm6 = vcmp.gt.f32.partialorder %v700_v52, 0.0  ;;  %v785_v49 = vmul.f32 0.03, %v700_v52 }
 0x101   : > { %3458 = vmatmul.msk.bf16.gmra.mxu0 %vm1224_vm5, %v4347_v46  ;;  %v768_v2 = vmul.f32 0.03, %v658_v58  ;;  %vm732_vm7 = vcmp.gt.f32.partialorder %v658_v58, 0.0 }
 0x102   : > { %v821_v55 = vsel %vm749_vm6, %v700_v52, %v785_v49  ;;  %3404 = vmatmul.msk.bf16.gmra.mxu2 %vm1224_vm5, %v4347_v46 }
 0x103   : > { %v4357_v57 = vpack.c.bf16 %v821_v55, %v820_v54  ;;  %v4360_v59 = vpop.f32.mrf.mxu1  ;;  %v804_v8 = vsel %vm732_vm7, %v658_v58, %v768_v2 }
 0x105   : > { %v603_v61 = vpop.f32.mrf.mxu2 }
 0x106   : > { %v703_v5 = vadd.f32 %v702_v29, %v603_v61  ;;  %v560_v63 = vpop.f32.mrf.mxu0  ;;  %v3300_v29 = vld [vmem:[%s5755_s2 + $0x138] sm:$0xf0] }
 0x107   : > { %v660_v3 = vadd.f32 %v4303_v11, %v560_v63  ;;  %v714_v63 = vpop.f32.mrf.mxu3 }
 0x108   : > { %v786_v62 = vmul.f32 0.03, %v703_v5  ;;  %vm750_vm9 = vcmp.gt.f32.partialorder %v703_v5, 0.0 }
 0x109   : > { %vm733_vm8 = vcmp.gt.f32.partialorder %v660_v3, 0.0  ;;  %v769_v7 = vmul.f32 0.03, %v660_v3 }
 0x10a   : > { %v822_v17 = vsel %vm750_vm9, %v703_v5, %v786_v62 }
 0x10b   : > { %v805_v9 = vsel %vm733_vm8, %v660_v3, %v769_v7  ;;  %v4363_v10 = vpop.f32.mrf.mxu1 }
 0x10c   : > { %v4365_v6 = vpack.c.bf16 %v805_v9, %v804_v8 }
 0x10d   : > { %v605_v13 = vpop.f32.mrf.mxu2 }
 0x10e   : > { %v705_v14 = vadd.f32 %v704_v48, %v605_v13  ;;  %v563_v15 = vpop.f32.mrf.mxu0  ;;  %3423 = vmatmul.msk.bf16.gmra.mxu3 %vm1224_vm5, %v4365_v6  ;;  %3441 = vmatmul.msk.bf16.gmra.mxu1 %vm1224_vm5, %v4365_v6 }
 0x10f   : > { %v663_v20 = vadd.f32 %v4330_v28, %v563_v15  ;;  %v3627_v28 = vld [vmem:[%s5755_s2 + $0x11c] sm:$0xf] }
 0x110   : > { %vm751_vm10 = vcmp.gt.f32.partialorder %v705_v14, 0.0  ;;  %v787_v11 = vmul.f32 0.03, %v705_v14  ;;  %v3303_v33 = vor.u32 %v3627_v28, %v3300_v29 }
 0x111   : > { %3459 = vmatmul.msk.bf16.gmra.mxu0 %vm1224_vm5, %v4365_v6  ;;  %v770_v40 = vmul.f32 0.03, %v663_v20  ;;  %vm734_vm11 = vcmp.gt.f32.partialorder %v663_v20, 0.0 }
 0x112   : > { %v823_v18 = vsel %vm751_vm10, %v705_v14, %v787_v11  ;;  %3405 = vmatmul.msk.bf16.gmra.mxu2 %vm1224_vm5, %v4365_v6  ;;  %2003 = vmatpush.bf16.msra.mxu0 %v3303_v33 }
 0x113   : > { %v4375_v19 = vpack.c.bf16 %v823_v18, %v822_v17  ;;  %v4396_v30 = vpop.f32.mrf.mxu1  ;;  %v806_v43 = vsel %vm734_vm11, %v663_v20, %v770_v40  ;;  %v3618_v18 = vld [vmem:[%s5755_s2 + $0xd4] sm:$0xf]  ;;  %v3268_v40 = vld [vmem:[%s5755_s2 + $0xf8] sm:$0xf0] }
 0x114   : > { %v3260_v20 = vld [vmem:[%s5755_s2 + $0xf0] sm:$0xf0] }
 0x115   : > { %v608_v31 = vpop.f32.mrf.mxu2  ;;  %v3263_v23 = vor.u32 %v3618_v18, %v3260_v20 }
 0x116   : > { %v708_v36 = vadd.f32 %v707_v4, %v608_v31  ;;  %v565_v38 = vpop.f32.mrf.mxu0  ;;  %v3258_v31 = vld [vmem:[%s5755_s2 + $0xd0] sm:$0xf] }
 0x117   : > { %v665_v41 = vadd.f32 %v4345_v45, %v565_v38  ;;  %1806 = vmatpush.bf16.msra.mxu3 %v3263_v23  ;;  %v3259_v34 = vor.u32 %v3622_v32, %v3258_v31 }
 0x118   : > { %v788_v52 = vmul.f32 0.03, %v708_v36  ;;  %vm752_vm13 = vcmp.gt.f32.partialorder %v708_v36, 0.0 }
 0x119   : > { %vm735_vm12 = vcmp.gt.f32.partialorder %v665_v41, 0.0  ;;  %v771_v42 = vmul.f32 0.03, %v665_v41  ;;  %1707 = vmatpush.bf16.msra.mxu2 %v3259_v34 }
 0x11a   : > { %v824_v55 = vsel %vm752_vm13, %v708_v36, %v788_v52 }
 0x11b   : > { %v807_v44 = vsel %vm735_vm12, %v665_v41, %v771_v42  ;;  %v674_v45 = vpop.f32.mrf.mxu1  ;;  %v3266_v41 = vld [vmem:[%s5755_s2 + $0xd8] sm:$0xf]  ;;  %v3271_v42 = vor.u32 %v3619_v39, %v3268_v40 }
 0x11c   : > { %v4405_v48 = vpack.c.bf16 %v807_v44, %v806_v43  ;;  %v3623_v43 = vld [vmem:[%s5755_s2 + $0xf4] sm:$0xf0] }
 0x11d   : > { %v610_v51 = vpop.f32.mrf.mxu2  ;;  %2004 = vmatpush.bf16.msra.mxu0 %v3271_v42 }
 0x11e   : > { %v710_v53 = vadd.f32 %v709_v16, %v610_v51  ;;  %v568_v49 = vpop.f32.mrf.mxu0  ;;  %3424 = vmatmul.msk.bf16.gmra.mxu3 %vm1224_vm5, %v4405_v48  ;;  %3442 = vmatmul.msk.bf16.gmra.mxu1 %vm1224_vm5, %v4405_v48  ;;  %v3267_v51 = vor.u32 %v3623_v43, %v3266_v41 }
 0x11f   : > { %v668_v5 = vadd.f32 %v4360_v59, %v568_v49 }
 0x120   : > { %vm753_vm14 = vcmp.gt.f32.partialorder %v710_v53, 0.0  ;;  %v789_v54 = vmul.f32 0.03, %v710_v53  ;;  %1905 = vmatpush.bf16.msra.mxu1 %v3267_v51  ;;  %v3228_v51 = vld [vmem:[%s5755_s2 + $0xb0] sm:$0xf0] }
 0x121   : > { %3460 = vmatmul.msk.bf16.gmra.mxu0 %vm1224_vm5, %v4405_v48  ;;  %v772_v7 = vmul.f32 0.03, %v668_v5  ;;  %vm736_vm15 = vcmp.gt.f32.partialorder %v668_v5, 0.0 }
 0x122   : > { %v825_v58 = vsel %vm753_vm14, %v710_v53, %v789_v54  ;;  %3406 = vmatmul.msk.bf16.gmra.mxu2 %vm1224_vm5, %v4405_v48 }
 0x123   : > { %v4415_v61 = vpack.c.bf16 %v825_v58, %v824_v55  ;;  %v4419_v9 = vpop.f32.mrf.mxu1  ;;  %v808_v62 = vsel %vm736_vm15, %v668_v5, %v772_v7 }
 0x125   : > { %v613_v2 = vpop.f32.mrf.mxu2 }
 0x126   : > { %v713_v3 = vadd.f32 %v712_v47, %v613_v2  ;;  %v570_v4 = vpop.f32.mrf.mxu0 }
 0x127   : > { %v670_v8 = vadd.f32 %v4363_v10, %v570_v4  ;;  %v717_v10 = vpop.f32.mrf.mxu3 }
 0x128   : > { %v790_v16 = vmul.f32 0.03, %v713_v3  ;;  %vm754_vm1 = vcmp.gt.f32.partialorder %v713_v3, 0.0 }
 0x129   : > { %vm737_vm0 = vcmp.gt.f32.partialorder %v670_v8, 0.0  ;;  %v773_v13 = vmul.f32 0.03, %v670_v8 }
 0x12a   : > { %v826_v24 = vsel %vm754_vm1, %v713_v3, %v790_v16 }
 0x12b   : > { %v809_v14 = vsel %vm737_vm0, %v670_v8, %v773_v13  ;;  %v679_v28 = vpop.f32.mrf.mxu1  ;;  %v678_v8 = vadd.f32 %v4419_v9, %v4221_v56 }
 0x12c   : > { %v4421_v15 = vpack.c.bf16 %v809_v14, %v808_v62  ;;  %v680_v2 = vadd.f32 %v679_v28, %v4227_v1  ;;  %v4484_v1 = vld [vmem:[%s5756_s3 + $0x18] sm:$0xff] }
 0x12d   : > { %v615_v11 = vpop.f32.mrf.mxu2  ;;  %v776_v56 = vmul.f32 0.03, %v678_v8  ;;  %vm740_vm9 = vcmp.gt.f32.partialorder %v678_v8, 0.0  ;;  %v2118_v9 = vperm.slane %v4484_v1, 0 }
 0x12e   : > { %v715_v17 = vadd.f32 %v714_v63, %v615_v11  ;;  %v573_v59 = vpop.f32.mrf.mxu0  ;;  %3425 = vmatmul.msk.bf16.gmra.mxu3 %vm1224_vm5, %v4421_v15  ;;  %3443 = vmatmul.msk.bf16.gmra.mxu1 %vm1224_vm5, %v4421_v15  ;;  %v777_v14 = vmul.f32 0.03, %v680_v2  ;;  %v4489_v11 = vld [vmem:[%s5756_s3 + $0x8] sm:$0xff]  ;;  %vm741_vm8 = vcmp.gt.f32.partialorder %v680_v2, 0.0 }
 0x12f   : > { %v673_v27 = vadd.f32 %v4396_v30, %v573_v59  ;;  %v719_v44 = vpop.f32.mrf.mxu3  ;;  %v2116_v59 = vperm.slane %v4489_v11, 0  ;;  %v812_v23 = vsel %vm740_vm9, %v678_v8, %v776_v56  ;;  %v3611_v8 = vld [vmem:[%s5755_s2 + $0x9c] sm:$0xf] }
 0x130   : > { %vm755_vm2 = vcmp.gt.f32.partialorder %v715_v17, 0.0  ;;  %v791_v21 = vmul.f32 0.03, %v715_v17 }
 0x131   : > { %3461 = vmatmul.msk.bf16.gmra.mxu0 %vm1224_vm5, %v4421_v15  ;;  %v774_v35 = vmul.f32 0.03, %v673_v27  ;;  %vm738_vm3 = vcmp.gt.f32.partialorder %v673_v27, 0.0 }
 0x132   : > { %v827_v25 = vsel %vm755_vm2, %v715_v17, %v791_v21  ;;  %3407 = vmatmul.msk.bf16.gmra.mxu2 %vm1224_vm5, %v4421_v15 }
 0x133   : > { %v4438_v29 = vpack.c.bf16 %v827_v25, %v826_v24  ;;  %v810_v52 = vsel %vm738_vm3, %v673_v27, %v774_v35 }
 0x135   : > { %v618_v33 = vpop.f32.mrf.mxu2 }
 0x136   : > { %v718_v36 = vadd.f32 %v717_v10, %v618_v33  ;;  %v575_v30 = vpop.f32.mrf.mxu0  ;;  %v813_v10 = vsel %vm741_vm8, %v680_v2, %v777_v14  ;;  %v3236_v14 = vld [vmem:[%s5755_s2 + $0xb8] sm:$0xf0] }
 0x137   : > { %v675_v38 = vadd.f32 %v674_v45, %v575_v30  ;;  %v4501_v25 = vpack.c.bf16 %v813_v10, %v812_v23  ;;  %v4526_v30 = vld [vmem:[%s5756_s3 + $0x10] sm:$0xff]  ;;  %v3239_v56 = vor.u32 %v3611_v8, %v3236_v14  ;;  %v4578_v23 = vperm.slane %v4489_v11, 1 }
 0x138   : > { %v792_v55 = vmul.f32 0.03, %v718_v36  ;;  %vm756_vm6 = vcmp.gt.f32.partialorder %v718_v36, 0.0  ;;  %v4531_v40 = vperm.slane %v4526_v30, 0  ;;  %v4534_v41 = vperm.slane %v4526_v30, 1 }
 0x139   : > { %vm739_vm4 = vcmp.gt.f32.partialorder %v675_v38, 0.0  ;;  %v775_v47 = vmul.f32 0.03, %v675_v38  ;;  %2005 = vmatpush.bf16.msra.mxu0 %v3239_v56 }
 0x13a   : > { %v828_v4 = vsel %vm756_vm6, %v718_v36, %v792_v55 }
 0x13b   : > { %v811_v53 = vsel %vm739_vm4, %v675_v38, %v775_v47  ;;  %v4458_v49 = vpop.f32.mrf.mxu1  ;;  %v3610_v47 = vld [vmem:[%s5755_s2 + $0x94] sm:$0xf] }
 0x13c   : > { %v4460_v45 = vpack.c.bf16 %v811_v53, %v810_v52  ;;  %v3226_v52 = vld [vmem:[%s5755_s2 + $0x90] sm:$0xf]  ;;  %v3231_v55 = vor.u32 %v3610_v47, %v3228_v51 }
 0x13d   : > { %v620_v54 = vpop.f32.mrf.mxu2 }
 0x13e   : > { %v720_v58 = vadd.f32 %v719_v44, %v620_v54  ;;  %3426 = vmatmul.msk.bf16.gmra.mxu3 %vm1224_vm5, %v4460_v45  ;;  %3444 = vmatmul.msk.bf16.gmra.mxu1 %vm1224_vm5, %v4460_v45  ;;  %v4466_v5 = vpop.f32.mrf.mxu0  ;;  %v4550_v54 = vperm.slane %v4484_v1, 1 }
 0x13f   : > { %1807 = vmatpush.bf16.msra.mxu3 %v3231_v55 }
 0x140   : > { %vm757_vm7 = vcmp.gt.f32.partialorder %v720_v58, 0.0  ;;  %v793_v63 = vmul.f32 0.03, %v720_v58 }
 0x141   : > { %v4469_v3 = vpop.f32.mrf.mxu3  ;;  %3462 = vmatmul.msk.bf16.gmra.mxu0 %vm1224_vm5, %v4460_v45 }
 0x142   : > { %v829_v7 = vsel %vm757_vm7, %v720_v58, %v793_v63  ;;  %3408 = vmatmul.msk.bf16.gmra.mxu2 %vm1224_vm5, %v4460_v45  ;;  %v3614_v58 = vld [vmem:[%s5755_s2 + $0xac] sm:$0xf0]  ;;  %v2125_v63 = vadd.f32 %v4531_v40, %v4458_v49  ;;  %v4571_v49 = vld [vmem:[%s5756_s3] sm:$0xff]  ;;  %v2124_v55 = vadd.f32 %v2116_v59, %v4469_v3 }
 0x143   : > { %v4477_v13 = vpack.c.bf16 %v829_v7, %v828_v4  ;;  %v4479_v62 = vpop.f32.mrf.mxu1  ;;  %v3227_v7 = vor.u32 %v3614_v58, %v3226_v52  ;;  %v2115_v51 = vperm.slane %v4571_v49, 0 }
 0x145   : > { %v4491_v16 = vpop.f32.mrf.mxu2  ;;  %1708 = vmatpush.bf16.msra.mxu2 %v3227_v7 }
 0x146   : > { %v1615_v17 = vpop.f32.mrf.mxu0  ;;  %v2123_v8 = vadd.f32 %v2115_v51, %v4491_v16 }
 0x147   : > { %v4495_v20 = vadd.f32 %v2118_v9, %v1615_v17 }
 0x149   : > { %v1417_v18 = vpop.f32.mrf.mxu3 }
 0x14a   : > { %v4497_v21 = vadd.f32 %v2116_v59, %v1417_v18 }
 0x14b   : > { %v4499_v24 = vpop.f32.mrf.mxu1 }
 0x14c   : > { %v2206_v27 = vmax.f32 %v4495_v20, %v4497_v21 }
 0x14d   : > { %v4505_v28 = vpop.f32.mrf.mxu2 }
 0x14e   : > { %3427 = vmatmul.msk.bf16.gmra.mxu3 %vm1224_vm5, %v4501_v25  ;;  %3445 = vmatmul.msk.bf16.gmra.mxu1 %vm1224_vm5, %v4501_v25  ;;  %v1618_v31 = vpop.f32.mrf.mxu0  ;;  %v2131_v3 = vadd.f32 %v2115_v51, %v4505_v28 }
 0x14f   : > { %v4513_v33 = vadd.f32 %v2118_v9, %v1618_v31  ;;  %v3234_v31 = vld [vmem:[%s5755_s2 + $0x98] sm:$0xf] }
 0x151   : > { %v1420_v32 = vpop.f32.mrf.mxu3  ;;  %3463 = vmatmul.msk.bf16.gmra.mxu0 %vm1224_vm5, %v4501_v25 }
 0x152   : > { %3409 = vmatmul.msk.bf16.gmra.mxu2 %vm1224_vm5, %v4501_v25  ;;  %v4517_v34 = vadd.f32 %v2116_v59, %v1420_v32  ;;  %v3615_v32 = vld [vmem:[%s5755_s2 + $0xb4] sm:$0xf0] }
 0x153   : > { %v4519_v35 = vpop.f32.mrf.mxu1  ;;  %v3235_v47 = vor.u32 %v3615_v32, %v3234_v31 }
 0x154   : > { %v2214_v36 = vmax.f32 %v4513_v33, %v4517_v34 }
 0x155   : > { %v4528_v38 = vpop.f32.mrf.mxu2  ;;  %1906 = vmatpush.bf16.msra.mxu1 %v3235_v47 }
 0x156   : > { %v1620_v39 = vpop.f32.mrf.mxu0 }
 0x157   : > { %v4536_v43 = vadd.f32 %v2118_v9, %v1620_v39  ;;  %v2126_v39 = vadd.f32 %v2118_v9, %v4466_v5  ;;  %v4596_v9 = vperm.slane %v4571_v49, 1 }
 0x159   : > { %v1422_v42 = vpop.f32.mrf.mxu3 }
 0x15a   : > { %v4538_v44 = vadd.f32 %v2116_v59, %v1422_v42 }
 0x15b   : > { %v1524_v53 = vpop.f32.mrf.mxu1 }
 0x15c   : > { %v2222_v2 = vmax.f32 %v4536_v43, %v4538_v44  ;;  %v2165_v4 = vadd.f32 %v4534_v41, %v1524_v53  ;;  %v4677_v43 = vperm.slane %v4484_v1, 2 }
 0x15d   : > { %v4566_v17 = vpop.f32.mrf.mxu2 }
 0x15e   : > { %v2197_v10 = vmax.f32 %v2125_v63, %v2165_v4  ;;  %3428 = vmatmul.msk.bf16.gmra.mxu3 %vm1224_vm5, %v4278_v37  ;;  %3446 = vmatmul.msk.bf16.gmra.mxu1 %vm1224_vm5, %v4278_v37  ;;  %v1623_v18 = vpop.f32.mrf.mxu0  ;;  %v2133_v63 = vadd.f32 %v4531_v40, %v4479_v62 }
 0x15f   : > { %v2166_v42 = vadd.f32 %v4550_v54, %v1623_v18 }
 0x161   : > { %v2198_v52 = vmax.f32 %v2126_v39, %v2166_v42  ;;  %v1425_v53 = vpop.f32.mrf.mxu3  ;;  %3464 = vmatmul.msk.bf16.gmra.mxu0 %vm1224_vm5, %v4278_v37 }
 0x162   : > { %3410 = vmatmul.msk.bf16.gmra.mxu2 %vm1224_vm5, %v4278_v37  ;;  %v2164_v5 = vadd.f32 %v4578_v23, %v1425_v53  ;;  %v2141_v53 = vadd.f32 %v4531_v40, %v4499_v24 }
 0x163   : > { %v1526_v58 = vpop.f32.mrf.mxu1 }
 0x164   : > { %v2196_v4 = vmax.f32 %v2124_v55, %v2164_v5  ;;  %v2173_v7 = vadd.f32 %v4534_v41, %v1526_v58 }
 0x165   : > { %v1326_v14 = vpop.f32.mrf.mxu2 }
 0x166   : > { %v4603_v59 = vmax.f32 %v2198_v52, %v2196_v4  ;;  %v2205_v56 = vmax.f32 %v2133_v63, %v2173_v7  ;;  %v2163_v18 = vadd.f32 %v4596_v9, %v1326_v14  ;;  %v1625_v31 = vpop.f32.mrf.mxu0  ;;  %v2149_v14 = vadd.f32 %v4531_v40, %v4519_v35 }
 0x167   : > { %v2174_v32 = vadd.f32 %v4550_v54, %v1625_v31  ;;  %v4658_v35 = vperm.slane %v4526_v30, 2 }
 0x168   : > { %v4607_v39 = vmax.f32 %v2131_v3, %v2205_v56  ;;  %v2195_v42 = vmax.f32 %v2123_v8, %v2163_v18  ;;  %v2147_v56 = vadd.f32 %v2115_v51, %v4566_v17 }
 0x169   : > { %v4612_v62 = vmax.f32 %v2174_v32, %v2206_v27  ;;  %v1427_v16 = vpop.f32.mrf.mxu3 }
 0x16a   : > { %v4614_v47 = vmax.f32 %v2197_v10, %v2195_v42  ;;  %v4617_v28 = vadd.f32 %v4578_v23, %v1427_v16 }
 0x16b   : > { %v1529_v52 = vpop.f32.mrf.mxu1 }
 0x16c   : > { %v2278_v55 = vmax.f32 %v4617_v28, %v4612_v62  ;;  %v2181_v5 = vadd.f32 %v4534_v41, %v1529_v52 }
 0x16d   : > { %v1328_v58 = vpop.f32.mrf.mxu2 }
 0x16e   : > { %v2213_v63 = vmax.f32 %v2141_v53, %v2181_v5  ;;  %v4625_v20 = vadd.f32 %v4596_v9, %v1328_v58  ;;  %3429 = vmatmul.msk.bf16.gmra.mxu3 %vm1224_vm5, %v4297_v60  ;;  %3447 = vmatmul.msk.bf16.gmra.mxu1 %vm1224_vm5, %v4297_v60  ;;  %v1628_v21 = vpop.f32.mrf.mxu0  ;;  %v3194_v58 = vld [vmem:[%s5755_s2 + $0x50] sm:$0xf] }
 0x16f   : > { %v2182_v27 = vadd.f32 %v4550_v54, %v1628_v21 }
 0x170   : > { %v2277_v24 = vmax.f32 %v4625_v20, %v4607_v39 }
 0x171   : > { %v4637_v10 = vmax.f32 %v2182_v27, %v2214_v36  ;;  %v1430_v4 = vpop.f32.mrf.mxu3  ;;  %3465 = vmatmul.msk.bf16.gmra.mxu0 %vm1224_vm5, %v4297_v60  ;;  %v2139_v36 = vadd.f32 %v2115_v51, %v4528_v38 }
 0x172   : > { %3411 = vmatmul.msk.bf16.gmra.mxu2 %vm1224_vm5, %v4297_v60  ;;  %v4644_v7 = vadd.f32 %v4578_v23, %v1430_v4 }
 0x173   : > { %v1531_v8 = vpop.f32.mrf.mxu1 }
 0x174   : > { %v2286_v3 = vmax.f32 %v4644_v7, %v4637_v10  ;;  %v2189_v33 = vadd.f32 %v4534_v41, %v1531_v8  ;;  %v3602_v41 = vld [vmem:[%s5755_s2 + $0x54] sm:$0xf] }
 0x175   : > { %v1331_v34 = vpop.f32.mrf.mxu2 }
 0x176   : > { %v2221_v18 = vmax.f32 %v2149_v14, %v2189_v33  ;;  %v2179_v31 = vadd.f32 %v4596_v9, %v1331_v34  ;;  %v1630_v32 = vpop.f32.mrf.mxu0  ;;  %v2228_v14 = vperm.slane %v4489_v11, 2 }
 0x177   : > { %v2190_v42 = vadd.f32 %v4550_v54, %v1630_v32  ;;  %v3196_v54 = vld [vmem:[%s5755_s2 + $0x70] sm:$0xf0] }
 0x178   : > { %v4655_v16 = vmax.f32 %v2147_v56, %v2221_v18  ;;  %v2211_v52 = vmax.f32 %v2139_v36, %v2179_v31  ;;  %v3199_v53 = vor.u32 %v3602_v41, %v3196_v54  ;;  %v3202_v18 = vld [vmem:[%s5755_s2 + $0x58] sm:$0xf]  ;;  %v2227_v31 = vperm.slane %v4571_v49, 2 }
 0x179   : > { %v4663_v40 = vmax.f32 %v2190_v42, %v2222_v2  ;;  %v1432_v38 = vpop.f32.mrf.mxu3  ;;  %v3607_v42 = vld [vmem:[%s5755_s2 + $0x74] sm:$0xf0] }
 0x17a   : > { %v4671_v17 = vmax.f32 %v2213_v63, %v2211_v52  ;;  %v4674_v51 = vadd.f32 %v4578_v23, %v1432_v38  ;;  %1808 = vmatpush.bf16.msra.mxu3 %v3199_v53  ;;  %v3606_v23 = vld [vmem:[%s5755_s2 + $0x6c] sm:$0xf0]  ;;  %v3203_v52 = vor.u32 %v3607_v42, %v3202_v18 }
 0x17b   : > { %v1534_v5 = vpop.f32.mrf.mxu1  ;;  %v3195_v21 = vor.u32 %v3606_v23, %v3194_v58 }
 0x17c   : > { %v2294_v44 = vmax.f32 %v4674_v51, %v4663_v40  ;;  %v2237_v2 = vadd.f32 %v4658_v35, %v1534_v5  ;;  %1907 = vmatpush.bf16.msra.mxu1 %v3203_v52  ;;  %v4784_v51 = vperm.slane %v4489_v11, 3 }
 0x17d   : > { %v1333_v63 = vpop.f32.mrf.mxu2  ;;  %1709 = vmatpush.bf16.msra.mxu2 %v3195_v21 }
 0x17e   : > { %v2267_v27 = vmax.f32 %v2237_v2, %v4614_v47  ;;  %v2187_v4 = vadd.f32 %v4596_v9, %v1333_v63  ;;  %3430 = vmatmul.msk.bf16.gmra.mxu3 %vm1224_vm5, %v4327_v26  ;;  %3448 = vmatmul.msk.bf16.gmra.mxu1 %vm1224_vm5, %v4327_v26  ;;  %v1633_v8 = vpop.f32.mrf.mxu0  ;;  %v3603_v9 = vld [vmem:[%s5755_s2 + $0x5c] sm:$0xf] }
 0x17f   : > { %v2238_v33 = vadd.f32 %v4677_v43, %v1633_v8  ;;  %v3204_v47 = vld [vmem:[%s5755_s2 + $0x78] sm:$0xf0] }
 0x180   : > { %v2293_v34 = vmax.f32 %v2187_v4, %v4655_v16  ;;  %v3207_v32 = vor.u32 %v3603_v9, %v3204_v47 }
 0x181   : > { %v2268_v36 = vmax.f32 %v2238_v33, %v4603_v59  ;;  %v1435_v56 = vpop.f32.mrf.mxu3  ;;  %3466 = vmatmul.msk.bf16.gmra.mxu0 %vm1224_vm5, %v4327_v26 }
 0x182   : > { %3412 = vmatmul.msk.bf16.gmra.mxu2 %vm1224_vm5, %v4327_v26  ;;  %v2236_v59 = vadd.f32 %v2228_v14, %v1435_v56  ;;  %2006 = vmatpush.bf16.msra.mxu0 %v3207_v32 }
 0x183   : > { %v1536_v16 = vpop.f32.mrf.mxu1 }
 0x184   : > { %v4715_v38 = vmax.f32 %v2236_v59, %v2268_v36  ;;  %v2245_v41 = vadd.f32 %v4658_v35, %v1536_v16  ;;  %v4763_v16 = vperm.slane %v4526_v30, 3 }
 0x185   : > { %v1336_v54 = vpop.f32.mrf.mxu2 }
 0x186   : > { %v4721_v53 = vmax.f32 %v2245_v41, %v2277_v24  ;;  %v2235_v5 = vadd.f32 %v2227_v31, %v1336_v54  ;;  %v1635_v2 = vpop.f32.mrf.mxu0 }
 0x187   : > { %v2246_v58 = vadd.f32 %v4677_v43, %v1635_v2 }
 0x188   : > { %v4724_v23 = vmax.f32 %v2235_v5, %v2267_v27 }
 0x189   : > { %v4729_v63 = vmax.f32 %v2246_v58, %v2278_v55  ;;  %v1437_v21 = vpop.f32.mrf.mxu3 }
 0x18a   : > { %v4731_v4 = vadd.f32 %v2228_v14, %v1437_v21  ;;  %v3594_v21 = vld [vmem:[%s5755_s2 + $0x14] sm:$0xf] }
 0x18b   : > { %v1539_v8 = vpop.f32.mrf.mxu1 }
 0x18c   : > { %v2350_v39 = vmax.f32 %v4731_v4, %v4729_v63  ;;  %v2253_v20 = vadd.f32 %v4658_v35, %v1539_v8 }
 0x18d   : > { %v1338_v24 = vpop.f32.mrf.mxu2 }
 0x18e   : > { %v2283_v33 = vmax.f32 %v2253_v20, %v4671_v17  ;;  %v2243_v36 = vadd.f32 %v2227_v31, %v1338_v24  ;;  %3431 = vmatmul.msk.bf16.gmra.mxu3 %vm1224_vm5, %v4357_v57  ;;  %3449 = vmatmul.msk.bf16.gmra.mxu1 %vm1224_vm5, %v4357_v57  ;;  %v1638_v62 = vpop.f32.mrf.mxu0 }
 0x18f   : > { %v2254_v28 = vadd.f32 %v4677_v43, %v1638_v62  ;;  %v2299_v62 = vperm.slane %v4571_v49, 3 }
 0x190   : > { %v2349_v55 = vmax.f32 %v2243_v36, %v4721_v53 }
 0x191   : > { %v4746_v27 = vmax.f32 %v2254_v28, %v2286_v3  ;;  %v1440_v56 = vpop.f32.mrf.mxu3  ;;  %3467 = vmatmul.msk.bf16.gmra.mxu0 %vm1224_vm5, %v4357_v57 }
 0x192   : > { %3413 = vmatmul.msk.bf16.gmra.mxu2 %vm1224_vm5, %v4357_v57  ;;  %v4752_v17 = vadd.f32 %v2228_v14, %v1440_v56 }
 0x193   : > { %v1541_v9 = vpop.f32.mrf.mxu1 }
 0x194   : > { %v2358_v47 = vmax.f32 %v4752_v17, %v4746_v27  ;;  %v2261_v18 = vadd.f32 %v4658_v35, %v1541_v9 }
 0x195   : > { %v1341_v59 = vpop.f32.mrf.mxu2 }
 0x196   : > { %v4757_v32 = vmax.f32 %v2261_v18, %v2293_v34  ;;  %v2251_v10 = vadd.f32 %v2227_v31, %v1341_v59  ;;  %v1640_v7 = vpop.f32.mrf.mxu0  ;;  %v4773_v34 = vperm.slane %v4484_v1, 3  ;;  %v3595_v18 = vld [vmem:[%s5755_s2 + $0x1c] sm:$0xf] }
 0x197   : > { %v2262_v3 = vadd.f32 %v4677_v43, %v1640_v7  ;;  %v3172_v59 = vld [vmem:[%s5755_s2 + $0x38] sm:$0xf0] }
 0x198   : > { %v4760_v42 = vmax.f32 %v2251_v10, %v2283_v33  ;;  %v3598_v33 = vld [vmem:[%s5755_s2 + $0x2c] sm:$0xf0]  ;;  %v3175_v10 = vor.u32 %v3595_v18, %v3172_v59 }
 0x199   : > { %v4768_v52 = vmax.f32 %v2262_v3, %v2294_v44  ;;  %v1442_v41 = vpop.f32.mrf.mxu3 }
 0x19a   : > { %v4770_v54 = vadd.f32 %v2228_v14, %v1442_v41  ;;  %2007 = vmatpush.bf16.msra.mxu0 %v3175_v10 }
 0x19b   : > { %v1544_v35 = vpop.f32.mrf.mxu1 }
 0x19c   : > { %v2366_v43 = vmax.f32 %v4770_v54, %v4768_v52  ;;  %v2309_v53 = vadd.f32 %v4763_v16, %v1544_v35  ;;  %v3170_v35 = vld [vmem:[%s5755_s2 + $0x18] sm:$0xf]  ;;  %v2372_v52 = vperm.slane %v4489_v11, 4 }
 0x19d   : > { %v1343_v5 = vpop.f32.mrf.mxu2 }
 0x19e   : > { %v2339_v2 = vmax.f32 %v2309_v53, %v4724_v23  ;;  %v2259_v58 = vadd.f32 %v2227_v31, %v1343_v5  ;;  %3432 = vmatmul.msk.bf16.gmra.mxu3 %vm1224_vm5, %v4375_v19  ;;  %3450 = vmatmul.msk.bf16.gmra.mxu1 %vm1224_vm5, %v4375_v19  ;;  %v1643_v40 = vpop.f32.mrf.mxu0  ;;  %v3164_v31 = vld [vmem:[%s5755_s2 + $0x30] sm:$0xf0]  ;;  %v3162_v23 = vld [vmem:[%s5755_s2 + $0x10] sm:$0xf]  ;;  %v3599_v53 = vld [vmem:[%s5755_s2 + $0x34] sm:$0xf0] }
 0x19f   : > { %v2310_v44 = vadd.f32 %v4773_v34, %v1643_v40  ;;  %v3167_v24 = vor.u32 %v3594_v21, %v3164_v31  ;;  %v3163_v28 = vor.u32 %v3598_v33, %v3162_v23 }
 0x1a0   : > { %v2365_v14 = vmax.f32 %v2259_v58, %v4757_v32  ;;  %v3171_v58 = vor.u32 %v3599_v53, %v3170_v35  ;;  %v2374_v53 = vperm.slane %v4484_v1, 4 }
 0x1a1   : > { %v2340_v8 = vmax.f32 %v2310_v44, %v4715_v38  ;;  %v1445_v20 = vpop.f32.mrf.mxu3  ;;  %3468 = vmatmul.msk.bf16.gmra.mxu0 %vm1224_vm5, %v4375_v19  ;;  %1809 = vmatpush.bf16.msra.mxu3 %v3167_v24 }
 0x1a2   : > { %3414 = vmatmul.msk.bf16.gmra.mxu2 %vm1224_vm5, %v4375_v19  ;;  %v2308_v36 = vadd.f32 %v4784_v51, %v1445_v20  ;;  %1908 = vmatpush.bf16.msra.mxu1 %v3171_v58 }
 0x1a3   : > { %v1546_v56 = vpop.f32.mrf.mxu1  ;;  %1710 = vmatpush.bf16.msra.mxu2 %v3163_v28 }
 0x1a4   : > { %v4807_v38 = vmax.f32 %v2308_v36, %v2340_v8  ;;  %v2317_v9 = vadd.f32 %v4763_v16, %v1546_v56 }
 0x1a5   : > { %v1346_v32 = vpop.f32.mrf.mxu2 }
 0x1a6   : > { %v4816_v7 = vmax.f32 %v2317_v9, %v2349_v55  ;;  %v2307_v3 = vadd.f32 %v2299_v62, %v1346_v32  ;;  %v1645_v41 = vpop.f32.mrf.mxu0 }
 0x1a7   : > { %v2318_v5 = vadd.f32 %v4773_v34, %v1645_v41 }
 0x1a8   : > { %v2413_v40 = vmax.f32 %v2307_v3, %v2339_v2 }
 0x1a9   : > { %v2348_v55 = vmax.f32 %v2318_v5, %v2350_v39  ;;  %v1447_v44 = vpop.f32.mrf.mxu3 }
 0x1aa   : > { %v2316_v21 = vadd.f32 %v4784_v51, %v1447_v44 }
 0x1ab   : > { %v1549_v31 = vpop.f32.mrf.mxu1 }
 0x1ac   : > { %v2422_v23 = vmax.f32 %v2316_v21, %v2348_v55  ;;  %v2325_v8 = vadd.f32 %v4763_v16, %v1549_v31 }
 0x1ad   : > { %v1348_v20 = vpop.f32.mrf.mxu2 }
 0x1ae   : > { %v2355_v24 = vmax.f32 %v2325_v8, %v4760_v42  ;;  %v2315_v33 = vadd.f32 %v2299_v62, %v1348_v20  ;;  %3433 = vmatmul.msk.bf16.gmra.mxu3 %vm1224_vm5, %v4415_v61  ;;  %3451 = vmatmul.msk.bf16.gmra.mxu1 %vm1224_vm5, %v4415_v61  ;;  %v1648_v63 = vpop.f32.mrf.mxu0 }
 0x1af   : > { %v2326_v4 = vadd.f32 %v4773_v34, %v1648_v63 }
 0x1b0   : > { %v2421_v39 = vmax.f32 %v2315_v33, %v4816_v7 }
 0x1b1   : > { %v2356_v2 = vmax.f32 %v2326_v4, %v2358_v47  ;;  %v1450_v36 = vpop.f32.mrf.mxu3  ;;  %3469 = vmatmul.msk.bf16.gmra.mxu0 %vm1224_vm5, %v4415_v61  ;;  %v2373_v47 = vperm.slane %v4526_v30, 4 }
 0x1b2   : > { %3415 = vmatmul.msk.bf16.gmra.mxu2 %vm1224_vm5, %v4415_v61  ;;  %v2324_v42 = vadd.f32 %v4784_v51, %v1450_v36 }
 0x1b3   : > { %v1551_v28 = vpop.f32.mrf.mxu1 }
 0x1b4   : > { %v2430_v56 = vmax.f32 %v2324_v42, %v2356_v2  ;;  %v2333_v9 = vadd.f32 %v4763_v16, %v1551_v28 }
 0x1b5   : > { %v1351_v18 = vpop.f32.mrf.mxu2 }
 0x1b6   : > { %v2363_v59 = vmax.f32 %v2333_v9, %v2365_v14  ;;  %v2323_v32 = vadd.f32 %v2299_v62, %v1351_v18  ;;  %v1650_v10 = vpop.f32.mrf.mxu0 }
 0x1b7   : > { %v2334_v27 = vadd.f32 %v4773_v34, %v1650_v10 }
 0x1b8   : > { %v2429_v17 = vmax.f32 %v2323_v32, %v2355_v24 }
 0x1b9   : > { %v2364_v7 = vmax.f32 %v2334_v27, %v2366_v43  ;;  %v1452_v3 = vpop.f32.mrf.mxu3 }
 0x1ba   : > { %v2332_v41 = vadd.f32 %v4784_v51, %v1452_v3 }
 0x1bb   : > { %v1554_v35 = vpop.f32.mrf.mxu1 }
 0x1bc   : > { %v2438_v16 = vmax.f32 %v2332_v41, %v2364_v7  ;;  %v2381_v5 = vadd.f32 %v2373_v47, %v1554_v35 }
 0x1bd   : > { %v1353_v14 = vpop.f32.mrf.mxu2 }
 0x1be   : > { %v2411_v58 = vmax.f32 %v2381_v5, %v2413_v40  ;;  %v2331_v55 = vadd.f32 %v2299_v62, %v1353_v14  ;;  %3434 = vmatmul.msk.bf16.gmra.mxu3 %vm1224_vm5, %v4438_v29  ;;  %3452 = vmatmul.msk.bf16.gmra.mxu1 %vm1224_vm5, %v4438_v29  ;;  %v1653_v34 = vpop.f32.mrf.mxu0  ;;  %v2371_v40 = vperm.slane %v4571_v49, 4 }
 0x1bf   : > { %v2382_v54 = vadd.f32 %v2374_v53, %v1653_v34 }
 0x1c0   : > { %v2437_v43 = vmax.f32 %v2331_v55, %v2363_v59 }
 0x1c1   : > { %v2412_v51 = vmax.f32 %v2382_v54, %v4807_v38  ;;  %v1455_v44 = vpop.f32.mrf.mxu3  ;;  %3470 = vmatmul.msk.bf16.gmra.mxu0 %vm1224_vm5, %v4438_v29 }
 0x1c2   : > { %3416 = vmatmul.msk.bf16.gmra.mxu2 %vm1224_vm5, %v4438_v29  ;;  %v2380_v62 = vadd.f32 %v2372_v52, %v1455_v44  ;;  %v2445_v44 = vperm.slane %v4526_v30, 5 }
 0x1c3   : > { %v1556_v21 = vpop.f32.mrf.mxu1 }
 0x1c4   : > { %v2486_v31 = vmax.f32 %v2380_v62, %v2412_v51  ;;  %v2389_v8 = vadd.f32 %v2373_v47, %v1556_v21 }
 0x1c5   : > { %v1356_v20 = vpop.f32.mrf.mxu2 }
 0x1c6   : > { %v2419_v24 = vmax.f32 %v2389_v8, %v2421_v39  ;;  %v2379_v33 = vadd.f32 %v2371_v40, %v1356_v20  ;;  %v1655_v63 = vpop.f32.mrf.mxu0  ;;  %v2446_v20 = vperm.slane %v4484_v1, 5 }
 0x1c7   : > { %v2390_v4 = vadd.f32 %v2374_v53, %v1655_v63 }
 0x1c8   : > { %v2485_v2 = vmax.f32 %v2379_v33, %v2411_v58 }
 0x1c9   : > { %v2420_v38 = vmax.f32 %v2390_v4, %v2422_v23  ;;  %v1457_v36 = vpop.f32.mrf.mxu3 }
 0x1ca   : > { %v2388_v42 = vadd.f32 %v2372_v52, %v1457_v36 }
 0x1cb   : > { %v1559_v28 = vpop.f32.mrf.mxu1 }
 0x1cc   : > { %v2494_v9 = vmax.f32 %v2388_v42, %v2420_v38  ;;  %v2397_v18 = vadd.f32 %v2373_v47, %v1559_v28 }
 0x1cd   : > { %v1358_v59 = vpop.f32.mrf.mxu2 }
 0x1ce   : > { %v2427_v32 = vmax.f32 %v2397_v18, %v2429_v17  ;;  %v2387_v10 = vadd.f32 %v2371_v40, %v1358_v59  ;;  %3435 = vmatmul.msk.bf16.gmra.mxu3 %vm1224_vm5, %v4477_v13  ;;  %3453 = vmatmul.msk.bf16.gmra.mxu1 %vm1224_vm5, %v4477_v13  ;;  %v1658_v39 = vpop.f32.mrf.mxu0 }
 0x1cf   : > { %v2398_v27 = vadd.f32 %v2374_v53, %v1658_v39 }
 0x1d0   : > { %v2493_v7 = vmax.f32 %v2387_v10, %v2419_v24 }
 0x1d1   : > { %v2428_v3 = vmax.f32 %v2398_v27, %v2430_v56  ;;  %v1460_v41 = vpop.f32.mrf.mxu3  ;;  %3471 = vmatmul.msk.bf16.gmra.mxu0 %vm1224_vm5, %v4477_v13 }
 0x1d2   : > { %3417 = vmatmul.msk.bf16.gmra.mxu2 %vm1224_vm5, %v4477_v13  ;;  %v2396_v23 = vadd.f32 %v2372_v52, %v1460_v41 }
 0x1d3   : > { %v1561_v17 = vpop.f32.mrf.mxu1 }
 0x1d4   : > { %v2502_v35 = vmax.f32 %v2396_v23, %v2428_v3  ;;  %v2405_v5 = vadd.f32 %v2373_v47, %v1561_v17 }
 0x1d5   : > { %v1361_v14 = vpop.f32.mrf.mxu2 }
 0x1d6   : > { %v2435_v58 = vmax.f32 %v2405_v5, %v2437_v43  ;;  %v2395_v55 = vadd.f32 %v2371_v40, %v1361_v14  ;;  %v1660_v34 = vpop.f32.mrf.mxu0 }
 0x1d7   : > { %v2406_v54 = vadd.f32 %v2374_v53, %v1660_v34  ;;  %v2444_v53 = vperm.slane %v4489_v11, 5 }
 0x1d8   : > { %v2501_v51 = vmax.f32 %v2395_v55, %v2427_v32 }
 0x1d9   : > { %v2436_v56 = vmax.f32 %v2406_v54, %v2438_v16  ;;  %v1462_v62 = vpop.f32.mrf.mxu3 }
 0x1da   : > { %v2404_v21 = vadd.f32 %v2372_v52, %v1462_v62 }
 0x1db   : > { %v1564_v8 = vpop.f32.mrf.mxu1 }
 0x1dc   : > { %v2510_v24 = vmax.f32 %v2404_v21, %v2436_v56  ;;  %v2453_v33 = vadd.f32 %v2445_v44, %v1564_v8 }
 0x1dd   : > { %v1363_v63 = vpop.f32.mrf.mxu2 }
 0x1de   : > { %v2483_v4 = vmax.f32 %v2453_v33, %v2485_v2  ;;  %v2403_v38 = vadd.f32 %v2371_v40, %v1363_v63  ;;  %v1663_v47 = vpop.f32.mrf.mxu0  ;;  %3490 = vmatmul.msk.bf16.vlgmr.msra.gmra.mxu3 %vm1224_vm5, %v4225_v0  ;;  %3508 = vmatmul.msk.bf16.vlgmr.msra.gmra.mxu1 %vm1224_vm5, %v4225_v0  ;;  %v2443_v40 = vperm.slane %v4571_v49, 5 }
 0x1df   : > { %v2454_v16 = vadd.f32 %v2446_v20, %v1663_v47 }
 0x1e0   : > { %v2509_v43 = vmax.f32 %v2403_v38, %v2435_v58 }
 0x1e1   : > { %v2484_v52 = vmax.f32 %v2454_v16, %v2486_v31  ;;  %v1465_v36 = vpop.f32.mrf.mxu3  ;;  %3526 = vmatmul.msk.bf16.vlgmr.msra.gmra.mxu0 %vm1224_vm5, %v4225_v0 }
 0x1e2   : > { %v2452_v42 = vadd.f32 %v2444_v53, %v1465_v36  ;;  %3472 = vmatmul.msk.bf16.vlgmr.msra.gmra.mxu2 %vm1224_vm5, %v4225_v0 }
 0x1e3   : > { %v1566_v2 = vpop.f32.mrf.mxu1 }
 0x1e4   : > { %v2558_v28 = vmax.f32 %v2452_v42, %v2484_v52  ;;  %v2461_v18 = vadd.f32 %v2445_v44, %v1566_v2  ;;  %v2517_v52 = vperm.slane %v4526_v30, 6 }
 0x1e5   : > { %v1366_v59 = vpop.f32.mrf.mxu2 }
 0x1e6   : > { %v2491_v32 = vmax.f32 %v2461_v18, %v2493_v7  ;;  %v2451_v10 = vadd.f32 %v2443_v40, %v1366_v59  ;;  %v1665_v39 = vpop.f32.mrf.mxu0  ;;  %v2518_v18 = vperm.slane %v4484_v1, 6 }
 0x1e7   : > { %v2462_v27 = vadd.f32 %v2446_v20, %v1665_v39 }
 0x1e8   : > { %v2557_v3 = vmax.f32 %v2451_v10, %v2483_v4 }
 0x1e9   : > { %v2492_v31 = vmax.f32 %v2462_v27, %v2494_v9  ;;  %v1467_v41 = vpop.f32.mrf.mxu3 }
 0x1ea   : > { %v2460_v23 = vadd.f32 %v2444_v53, %v1467_v41 }
 0x1eb   : > { %v1569_v17 = vpop.f32.mrf.mxu1 }
 0x1ec   : > { %v2566_v5 = vmax.f32 %v2460_v23, %v2492_v31  ;;  %v2469_v14 = vadd.f32 %v2445_v44, %v1569_v17 }
 0x1ed   : > { %v1368_v58 = vpop.f32.mrf.mxu2 }
 0x1ee   : > { %v2499_v55 = vmax.f32 %v2469_v14, %v2501_v51  ;;  %v2459_v0 = vadd.f32 %v2443_v40, %v1368_v58  ;;  %v1668_v34 = vpop.f32.mrf.mxu0  ;;  %3491 = vmatmul.msk.bf16.gmra.mxu3 %vm1224_vm5, %v4255_v22  ;;  %3509 = vmatmul.msk.bf16.gmra.mxu1 %vm1224_vm5, %v4255_v22 }
 0x1ef   : > { %v2470_v7 = vadd.f32 %v2446_v20, %v1668_v34 }
 0x1f0   : > { %v2565_v54 = vmax.f32 %v2459_v0, %v2491_v32 }
 0x1f1   : > { %v2500_v56 = vmax.f32 %v2470_v7, %v2502_v35  ;;  %v1470_v62 = vpop.f32.mrf.mxu3  ;;  %3527 = vmatmul.msk.bf16.gmra.mxu0 %vm1224_vm5, %v4255_v22 }
 0x1f2   : > { %v2468_v9 = vadd.f32 %v2444_v53, %v1470_v62  ;;  %3473 = vmatmul.msk.bf16.gmra.mxu2 %vm1224_vm5, %v4255_v22 }
 0x1f3   : > { %v1571_v51 = vpop.f32.mrf.mxu1 }
 0x1f4   : > { %v2574_v21 = vmax.f32 %v2468_v9, %v2500_v56  ;;  %v2477_v8 = vadd.f32 %v2445_v44, %v1571_v51 }
 0x1f5   : > { %v1371_v33 = vpop.f32.mrf.mxu2 }
 0x1f6   : > { %v2507_v63 = vmax.f32 %v2477_v8, %v2509_v43  ;;  %v2467_v4 = vadd.f32 %v2443_v40, %v1371_v33  ;;  %v1670_v38 = vpop.f32.mrf.mxu0 }
 0x1f7   : > { %v2478_v47 = vadd.f32 %v2446_v20, %v1670_v38  ;;  %v2516_v20 = vperm.slane %v4489_v11, 6 }
 0x1f8   : > { %v2573_v16 = vmax.f32 %v2467_v4, %v2499_v55 }
 0x1f9   : > { %v2508_v35 = vmax.f32 %v2478_v47, %v2510_v24  ;;  %v1472_v36 = vpop.f32.mrf.mxu3 }
 0x1fa   : > { %v2476_v42 = vadd.f32 %v2444_v53, %v1472_v36 }
 0x1fb   : > { %v1574_v2 = vpop.f32.mrf.mxu1 }
 0x1fc   : > { %v2582_v59 = vmax.f32 %v2476_v42, %v2508_v35  ;;  %v2525_v32 = vadd.f32 %v2517_v52, %v1574_v2 }
 0x1fd   : > { %v1373_v22 = vpop.f32.mrf.mxu2 }
 0x1fe   : > { %v2555_v10 = vmax.f32 %v2525_v32, %v2557_v3  ;;  %v2475_v39 = vadd.f32 %v2443_v40, %v1373_v22  ;;  %v1673_v44 = vpop.f32.mrf.mxu0  ;;  %3492 = vmatmul.msk.bf16.gmra.mxu3 %vm1224_vm5, %v4286_v50  ;;  %3510 = vmatmul.msk.bf16.gmra.mxu1 %vm1224_vm5, %v4286_v50  ;;  %v2515_v40 = vperm.slane %v4571_v49, 6 }
 0x1ff   : > { %v2526_v24 = vadd.f32 %v2518_v18, %v1673_v44  ;;  %v2589_v44 = vperm.slane %v4526_v30, 7  ;;  %v2588_v30 = vperm.slane %v4489_v11, 7 }
 0x200   : > { %v2581_v43 = vmax.f32 %v2475_v39, %v2507_v63 }
 0x201   : > { %v2556_v53 = vmax.f32 %v2526_v24, %v2558_v28  ;;  %v1475_v27 = vpop.f32.mrf.mxu3  ;;  %3528 = vmatmul.msk.bf16.gmra.mxu0 %vm1224_vm5, %v4286_v50 }
 0x202   : > { %v2524_v31 = vadd.f32 %v2516_v20, %v1475_v27  ;;  %3474 = vmatmul.msk.bf16.gmra.mxu2 %vm1224_vm5, %v4286_v50 }
 0x203   : > { %v1576_v3 = vpop.f32.mrf.mxu1 }
 0x204   : > { %v2630_v41 = vmax.f32 %v2524_v31, %v2556_v53  ;;  %v2533_v23 = vadd.f32 %v2517_v52, %v1576_v3  ;;  %v2590_v31 = vperm.slane %v4484_v1, 7 }
 0x205   : > { %v1376_v17 = vpop.f32.mrf.mxu2 }
 0x206   : > { %v2563_v14 = vmax.f32 %v2533_v23, %v2565_v54  ;;  %v2523_v58 = vadd.f32 %v2515_v40, %v1376_v17  ;;  %v1675_v55 = vpop.f32.mrf.mxu0 }
 0x207   : > { %v2534_v0 = vadd.f32 %v2518_v18, %v1675_v55 }
 0x208   : > { %v2629_v34 = vmax.f32 %v2523_v58, %v2555_v10 }
 0x209   : > { %v2564_v28 = vmax.f32 %v2534_v0, %v2566_v5  ;;  %v1477_v7 = vpop.f32.mrf.mxu3 }
 0x20a   : > { %v2532_v56 = vadd.f32 %v2516_v20, %v1477_v7 }
 0x20b   : > { %v1579_v62 = vpop.f32.mrf.mxu1 }
 0x20c   : > { %v2638_v9 = vmax.f32 %v2532_v56, %v2564_v28  ;;  %v2541_v51 = vadd.f32 %v2517_v52, %v1579_v62 }
 0x20d   : > { %v1378_v8 = vpop.f32.mrf.mxu2 }
 0x20e   : > { %v2571_v33 = vmax.f32 %v2541_v51, %v2573_v16  ;;  %v2531_v50 = vadd.f32 %v2515_v40, %v1378_v8  ;;  %v1678_v63 = vpop.f32.mrf.mxu0  ;;  %3493 = vmatmul.msk.bf16.gmra.mxu3 %vm1224_vm5, %v4305_v12  ;;  %3511 = vmatmul.msk.bf16.gmra.mxu1 %vm1224_vm5, %v4305_v12 }
 0x20f   : > { %v2542_v54 = vadd.f32 %v2518_v18, %v1678_v63 }
 0x210   : > { %v2637_v4 = vmax.f32 %v2531_v50, %v2563_v14 }
 0x211   : > { %v2572_v38 = vmax.f32 %v2542_v54, %v2574_v21  ;;  %v1480_v47 = vpop.f32.mrf.mxu3  ;;  %3529 = vmatmul.msk.bf16.gmra.mxu0 %vm1224_vm5, %v4305_v12 }
 0x212   : > { %v2540_v5 = vadd.f32 %v2516_v20, %v1480_v47  ;;  %3475 = vmatmul.msk.bf16.gmra.mxu2 %vm1224_vm5, %v4305_v12 }
 0x213   : > { %v1581_v16 = vpop.f32.mrf.mxu1 }
 0x214   : > { %v2646_v35 = vmax.f32 %v2540_v5, %v2572_v38  ;;  %v2549_v36 = vadd.f32 %v2517_v52, %v1581_v16 }
 0x215   : > { %v1381_v42 = vpop.f32.mrf.mxu2 }
 0x216   : > { %v2579_v2 = vmax.f32 %v2549_v36, %v2581_v43  ;;  %v2539_v32 = vadd.f32 %v2515_v40, %v1381_v42  ;;  %v1680_v22 = vpop.f32.mrf.mxu0 }
 0x217   : > { %v2550_v10 = vadd.f32 %v2518_v18, %v1680_v22 }
 0x218   : > { %v2645_v39 = vmax.f32 %v2539_v32, %v2571_v33 }
 0x219   : > { %v2580_v21 = vmax.f32 %v2550_v10, %v2582_v59  ;;  %v1482_v24 = vpop.f32.mrf.mxu3 }
 0x21a   : > { %v2548_v53 = vadd.f32 %v2516_v20, %v1482_v24 }
 0x21b   : > { %v1584_v27 = vpop.f32.mrf.mxu1 }
 0x21c   : > { %v2654_v3 = vmax.f32 %v2548_v53, %v2580_v21  ;;  %v2597_v23 = vadd.f32 %v2589_v44, %v1584_v27 }
 0x21d   : > { %v1383_v12 = vpop.f32.mrf.mxu2 }
 0x21e   : > { %v2627_v17 = vmax.f32 %v2597_v23, %v2629_v34  ;;  %v2547_v14 = vadd.f32 %v2515_v40, %v1383_v12  ;;  %v1683_v52 = vpop.f32.mrf.mxu0  ;;  %3494 = vmatmul.msk.bf16.gmra.mxu3 %vm1224_vm5, %v4347_v46  ;;  %3512 = vmatmul.msk.bf16.gmra.mxu1 %vm1224_vm5, %v4347_v46  ;;  %v2587_v40 = vperm.slane %v4571_v49, 7 }
 0x21f   : > { %v2598_v18 = vadd.f32 %v2590_v31, %v1683_v52 }
 0x220   : > { %v2653_v59 = vmax.f32 %v2547_v14, %v2579_v2 }
 0x221   : > { %v2628_v20 = vmax.f32 %v2598_v18, %v2630_v41  ;;  %v1485_v43 = vpop.f32.mrf.mxu3  ;;  %3530 = vmatmul.msk.bf16.gmra.mxu0 %vm1224_vm5, %v4347_v46 }
 0x222   : > { %v2596_v1 = vadd.f32 %v2588_v30, %v1485_v43  ;;  %3476 = vmatmul.msk.bf16.gmra.mxu2 %vm1224_vm5, %v4347_v46 }
 0x223   : > { %v1586_v58 = vpop.f32.mrf.mxu1 }
 0x224   : > { %v2702_v55 = vmax.f32 %v2596_v1, %v2628_v20  ;;  %v2605_v0 = vadd.f32 %v2589_v44, %v1586_v58 }
 0x225   : > { %v1386_v34 = vpop.f32.mrf.mxu2 }
 0x226   : > { %v2635_v28 = vmax.f32 %v2605_v0, %v2637_v4  ;;  %v2595_v7 = vadd.f32 %v2587_v40, %v1386_v34  ;;  %v1685_v11 = vpop.f32.mrf.mxu0 }
 0x227   : > { %v2606_v56 = vadd.f32 %v2590_v31, %v1685_v11 }
 0x228   : > { %v2701_v62 = vmax.f32 %v2595_v7, %v2627_v17 }
 0x229   : > { %v2636_v41 = vmax.f32 %v2606_v56, %v2638_v9  ;;  %v1487_v51 = vpop.f32.mrf.mxu3 }
 0x22a   : > { %v2604_v8 = vadd.f32 %v2588_v30, %v1487_v51 }
 0x22b   : > { %v1589_v33 = vpop.f32.mrf.mxu1 }
 0x22c   : > { %v2710_v50 = vmax.f32 %v2604_v8, %v2636_v41  ;;  %v2613_v63 = vadd.f32 %v2589_v44, %v1589_v33 }
 0x22d   : > { %v1388_v54 = vpop.f32.mrf.mxu2 }
 0x22e   : > { %v2643_v38 = vmax.f32 %v2613_v63, %v2645_v39  ;;  %v2603_v46 = vadd.f32 %v2587_v40, %v1388_v54  ;;  %v1688_v47 = vpop.f32.mrf.mxu0  ;;  %3495 = vmatmul.msk.bf16.gmra.mxu3 %vm1224_vm5, %v4365_v6  ;;  %3513 = vmatmul.msk.bf16.gmra.mxu1 %vm1224_vm5, %v4365_v6 }
 0x22f   : > { %v2614_v49 = vadd.f32 %v2590_v31, %v1688_v47 }
 0x230   : > { %v2709_v4 = vmax.f32 %v2603_v46, %v2635_v28 }
 0x231   : > { %v2644_v5 = vmax.f32 %v2614_v49, %v2646_v35  ;;  %v1490_v16 = vpop.f32.mrf.mxu3  ;;  %3531 = vmatmul.msk.bf16.gmra.mxu0 %vm1224_vm5, %v4365_v6  ;;  %v3676_v35 = vld [vmem:[%s5756_s3 + $0x50] ss:$0 sm:$0xff] }
 0x232   : > { %v2612_v9 = vadd.f32 %v2588_v30, %v1490_v16  ;;  %3477 = vmatmul.msk.bf16.gmra.mxu2 %vm1224_vm5, %v4365_v6  ;;  %v3677_v6 = vld [vmem:[%s5756_s3 + $0x58] ss:$0 sm:$0xff] }
 0x233   : > { %v1591_v36 = vpop.f32.mrf.mxu1 }
 0x234   : > { %v2718_v42 = vmax.f32 %v2612_v9, %v2644_v5  ;;  %v2621_v2 = vadd.f32 %v2589_v44, %v1591_v36 }
 0x235   : > { %v1391_v32 = vpop.f32.mrf.mxu2 }
 0x236   : > { %v2651_v22 = vmax.f32 %v2621_v2, %v2653_v59  ;;  %v2611_v10 = vadd.f32 %v2587_v40, %v1391_v32  ;;  %v1690_v39 = vpop.f32.mrf.mxu0 }
 0x237   : > { %v2622_v21 = vadd.f32 %v2590_v31, %v1690_v39  ;;  %v3678_v31 = vld [vmem:[%s5756_s3 + $0x48] ss:$0 sm:$0xff] }
 0x238   : > { %v2717_v24 = vmax.f32 %v2611_v10, %v2643_v38 }
 0x239   : > { %v2652_v53 = vmax.f32 %v2622_v21, %v2654_v3  ;;  %v1492_v27 = vpop.f32.mrf.mxu3 }
 0x23a   : > { %v2620_v23 = vadd.f32 %v2588_v30, %v1492_v27 }
 0x23b   : > { %v1594_v12 = vpop.f32.mrf.mxu1 }
 0x23c   : > { %v2726_v17 = vmax.f32 %v2620_v23, %v2652_v53  ;;  %v2669_v44 = vadd.f32 %v3676_v35, %v1594_v12 }
 0x23d   : > { %v1393_v14 = vpop.f32.mrf.mxu2 }
 0x23e   : > { %v2699_v52 = vmax.f32 %v2669_v44, %v2701_v62  ;;  %v2619_v18 = vadd.f32 %v2587_v40, %v1393_v14  ;;  %v1693_v59 = vpop.f32.mrf.mxu0  ;;  %3496 = vmatmul.msk.bf16.gmra.mxu3 %vm1224_vm5, %v4405_v48  ;;  %3514 = vmatmul.msk.bf16.gmra.mxu1 %vm1224_vm5, %v4405_v48  ;;  %v3679_v40 = vld [vmem:[%s5756_s3 + $0x40] ss:$0 sm:$0xff] }
 0x23f   : > { %v2670_v3 = vadd.f32 %v3677_v6, %v1693_v59 }
 0x240   : > { %v2725_v30 = vmax.f32 %v2619_v18, %v2651_v22 }
 0x241   : > { %v2700_v20 = vmax.f32 %v2670_v3, %v2702_v55  ;;  %v1495_v43 = vpop.f32.mrf.mxu3  ;;  %3532 = vmatmul.msk.bf16.gmra.mxu0 %vm1224_vm5, %v4405_v48 }
 0x242   : > { %v2668_v1 = vadd.f32 %v3678_v31, %v1495_v43  ;;  %3478 = vmatmul.msk.bf16.gmra.mxu2 %vm1224_vm5, %v4405_v48  ;;  %v5021_v43 = vld [vmem:[%s5756_s3 + $0x30] sm:$0xff] }
 0x243   : > { %v1596_v58 = vpop.f32.mrf.mxu1 }
 0x244   : > { %v4952_v0 = vmax.f32 %v2700_v20, %v2668_v1  ;;  %v2677_v34 = vadd.f32 %v3676_v35, %v1596_v58  ;;  %v5028_v58 = vperm.slane %v5021_v43, 0 }
 0x245   : > { %v1396_v28 = vpop.f32.mrf.mxu2 }
 0x246   : > { %5766 = vst [vmem:[#allocation2_spill] sm:$0xff] %v4952_v0  ;;  %v4954_v7 = vmax.f32 %v2677_v34, %v2709_v4  ;;  %v2667_v55 = vadd.f32 %v3679_v40, %v1396_v28  ;;  %v1695_v11 = vpop.f32.mrf.mxu0  ;;  %v5033_v34 = vld [vmem:[%s5756_s3 + $0x38] sm:$0xff] }
 0x247   : > { %v2678_v56 = vadd.f32 %v3677_v6, %v1695_v11  ;;  %v5046_v11 = vld [vmem:[%s5756_s3 + $0x28] sm:$0xff] }
 0x248   : > { %5767 = vst [vmem:[#allocation3_spill] sm:$0xff] %v4954_v7  ;;  %v4956_v62 = vmax.f32 %v2699_v52, %v2667_v55  ;;  %v5041_v55 = vperm.slane %v5033_v34, 0 }
 0x249   : > { %v4958_v41 = vmax.f32 %v2678_v56, %v2710_v50  ;;  %v1497_v51 = vpop.f32.mrf.mxu3 }
 0x24a   : > { %5768 = vst [vmem:[#allocation4_spill] sm:$0xff] %v4956_v62  ;;  %v4960_v48 = vadd.f32 %v3678_v31, %v1497_v51  ;;  %v5049_v51 = vperm.slane %v5033_v34, 1 }
 0x24b   : > { %5769 = vst [vmem:[#allocation5_spill] sm:$0xff] %v4958_v41  ;;  %v1599_v8 = vpop.f32.mrf.mxu1 }
 0x24c   : > { %5770 = vst [vmem:[#allocation6_spill] sm:$0xff] %v4960_v48  ;;  %v2685_v63 = vadd.f32 %v3676_v35, %v1599_v8 }
 0x24d   : > { %v1398_v54 = vpop.f32.mrf.mxu2 }
 0x24e   : > { %v2715_v38 = vmax.f32 %v2685_v63, %v2717_v24  ;;  %v4964_v46 = vadd.f32 %v3679_v40, %v1398_v54  ;;  %v1698_v47 = vpop.f32.mrf.mxu0  ;;  %3497 = vmatmul.msk.bf16.gmra.mxu3 %vm1224_vm5, %v4421_v15  ;;  %3515 = vmatmul.msk.bf16.gmra.mxu1 %vm1224_vm5, %v4421_v15 }
 0x24f   : > { %v2686_v50 = vadd.f32 %v3677_v6, %v1698_v47 }
 0x250   : > { %5771 = vst [vmem:[#allocation7_spill] sm:$0xff] %v4964_v46 }
 0x251   : > { %v4972_v4 = vmax.f32 %v2686_v50, %v2718_v42  ;;  %v1500_v5 = vpop.f32.mrf.mxu3  ;;  %3533 = vmatmul.msk.bf16.gmra.mxu0 %vm1224_vm5, %v4421_v15 }
 0x252   : > { %v4976_v16 = vadd.f32 %v3678_v31, %v1500_v5  ;;  %3479 = vmatmul.msk.bf16.gmra.mxu2 %vm1224_vm5, %v4421_v15  ;;  %v5069_v5 = vperm.slane %v5046_v11, 1 }
 0x253   : > { %v1601_v9 = vpop.f32.mrf.mxu1 }
 0x254   : > { %v2693_v2 = vadd.f32 %v3676_v35, %v1601_v9 }
 0x255   : > { %v1401_v32 = vpop.f32.mrf.mxu2 }
 0x256   : > { %v4982_v22 = vmax.f32 %v2693_v2, %v2725_v30  ;;  %v2683_v10 = vadd.f32 %v3679_v40, %v1401_v32  ;;  %v1700_v42 = vpop.f32.mrf.mxu0  ;;  %v5077_v2 = vld [vmem:[%s5756_s3 + $0x20] sm:$0xff] }
 0x257   : > { %v2694_v39 = vadd.f32 %v3677_v6, %v1700_v42 }
 0x258   : > { %v4984_v21 = vmax.f32 %v2683_v10, %v2715_v38  ;;  %v5060_v38 = vperm.slane %v5046_v11, 0 }
 0x259   : > { %v4986_v24 = vmax.f32 %v2694_v39, %v2726_v17  ;;  %v1502_v53 = vpop.f32.mrf.mxu3 }
 0x25a   : > { %v4988_v27 = vadd.f32 %v3678_v31, %v1502_v53  ;;  %v2119_v53 = vperm.slane %v5077_v2, 0 }
 0x25b   : > { %v1910_v23 = vpop.f32.mrf.mxu1 }
 0x25c   : > { %v5052_v8 = vadd.f32 %v5028_v58, %v1910_v23 }
 0x25d   : > { %v1403_v12 = vpop.f32.mrf.mxu2 }
 0x25e   : > { %v4992_v44 = vadd.f32 %v3679_v40, %v1403_v12  ;;  %3498 = vmatmul.msk.bf16.gmra.mxu3 %vm1224_vm5, %v4460_v45  ;;  %3516 = vmatmul.msk.bf16.gmra.mxu1 %vm1224_vm5, %v4460_v45  ;;  %v2009_v35 = vpop.f32.mrf.mxu0  ;;  %v2159_v12 = vperm.slane %v5077_v2, 1 }
 0x25f   : > { %v5072_v9 = vadd.f32 %v5041_v55, %v2009_v35 }
 0x261   : > { %v1811_v17 = vpop.f32.mrf.mxu3  ;;  %3534 = vmatmul.msk.bf16.gmra.mxu0 %vm1224_vm5, %v4460_v45 }
 0x262   : > { %3480 = vmatmul.msk.bf16.gmra.mxu2 %vm1224_vm5, %v4460_v45  ;;  %v5087_v39 = vadd.f32 %v5060_v38, %v1811_v17 }
 0x263   : > { %v1912_v14 = vpop.f32.mrf.mxu1 }
 0x265   : > { %v1712_v52 = vpop.f32.mrf.mxu2 }
 0x266   : > { %v2011_v18 = vpop.f32.mrf.mxu0  ;;  %v5104_v33 = vadd.f32 %v2119_v53, %v1712_v52 }
 0x267   : > { %v5111_v6 = vadd.f32 %v5041_v55, %v2011_v18 }
 0x269   : > { %v1813_v59 = vpop.f32.mrf.mxu3 }
 0x26b   : > { %v1915_v31 = vpop.f32.mrf.mxu1 }
 0x26c   : > { %v5127_v18 = vadd.f32 %v5028_v58, %v1915_v31 }
 0x26d   : > { %v1714_v3 = vpop.f32.mrf.mxu2 }
 0x26e   : > { %3499 = vmatmul.msk.bf16.gmra.mxu3 %vm1224_vm5, %v4501_v25  ;;  %3517 = vmatmul.msk.bf16.gmra.mxu1 %vm1224_vm5, %v4501_v25  ;;  %v5008_v30 = vpop.f32.mrf.mxu0  ;;  %v5134_v47 = vadd.f32 %v2119_v53, %v1714_v3 }
 0x271   : > { %v5010_v20 = vpop.f32.mrf.mxu3  ;;  %3535 = vmatmul.msk.bf16.gmra.mxu0 %vm1224_vm5, %v4501_v25 }
 0x272   : > { %3481 = vmatmul.msk.bf16.gmra.mxu2 %vm1224_vm5, %v4501_v25  ;;  %v5036_v25 = vperm.slane %v5021_v43, 1 }
 0x273   : > { %v5016_v45 = vpop.f32.mrf.mxu1 }
 0x274   : > { %v5168_v3 = vadd.f32 %v5028_v58, %v5016_v45 }
 0x275   : > { %v5023_v1 = vpop.f32.mrf.mxu2 }
 0x276   : > { %v5025_v40 = vpop.f32.mrf.mxu0 }
 0x277   : > { %v5184_v45 = vadd.f32 %v5041_v55, %v5025_v40 }
 0x279   : > { %v5038_v28 = vpop.f32.mrf.mxu3 }
 0x27b   : > { %v1920_v56 = vpop.f32.mrf.mxu1 }
 0x27c   : > { %v5055_v63 = vadd.f32 %v5036_v25, %v1920_v56  ;;  %v5097_v56 = vadd.f32 %v5028_v58, %v1912_v14 }
 0x27d   : > { %v5057_v54 = vpop.f32.mrf.mxu2 }
 0x27e   : > { %3500 = vmatmul.msk.bf16.gmra.mxu3 %vm1224_vm5, %v4278_v37  ;;  %3518 = vmatmul.msk.bf16.gmra.mxu1 %vm1224_vm5, %v4278_v37  ;;  %v2019_v50 = vpop.f32.mrf.mxu0 }
 0x27f   : > { %v5080_v32 = vadd.f32 %v5049_v51, %v2019_v50  ;;  %v5121_v50 = vadd.f32 %v5060_v38, %v1813_v59 }
 0x281   : > { %v1821_v42 = vpop.f32.mrf.mxu3  ;;  %3536 = vmatmul.msk.bf16.gmra.mxu0 %vm1224_vm5, %v4278_v37 }
 0x282   : > { %3482 = vmatmul.msk.bf16.gmra.mxu2 %vm1224_vm5, %v4278_v37  ;;  %v5093_v23 = vadd.f32 %v5069_v5, %v1821_v42 }
 0x283   : > { %v1922_v35 = vpop.f32.mrf.mxu1 }
 0x284   : > { %v5102_v17 = vadd.f32 %v5036_v25, %v1922_v35 }
 0x285   : > { %v1722_v49 = vpop.f32.mrf.mxu2 }
 0x286   : > { %v5108_v42 = vadd.f32 %v2159_v12, %v1722_v49  ;;  %v2021_v15 = vpop.f32.mrf.mxu0 }
 0x287   : > { %v5114_v14 = vadd.f32 %v5049_v51, %v2021_v15  ;;  %v5159_v15 = vadd.f32 %v5060_v38, %v5010_v20  ;;  %v5176_v20 = vadd.f32 %v2119_v53, %v5023_v1 }
 0x289   : > { %v1823_v52 = vpop.f32.mrf.mxu3 }
 0x28a   : > { %v5124_v49 = vadd.f32 %v5069_v5, %v1823_v52  ;;  %v5146_v52 = vadd.f32 %v5041_v55, %v5008_v30 }
 0x28b   : > { %v1925_v37 = vpop.f32.mrf.mxu1 }
 0x28c   : > { %v5132_v10 = vadd.f32 %v5036_v25, %v1925_v37 }
 0x28d   : > { %v1724_v36 = vpop.f32.mrf.mxu2 }
 0x28e   : > { %v5138_v35 = vadd.f32 %v2159_v12, %v1724_v36  ;;  %3501 = vmatmul.msk.bf16.gmra.mxu3 %vm1224_vm5, %v4297_v60  ;;  %3519 = vmatmul.msk.bf16.gmra.mxu1 %vm1224_vm5, %v4297_v60  ;;  %v2024_v31 = vpop.f32.mrf.mxu0 }
 0x28f   : > { %v5149_v37 = vadd.f32 %v5049_v51, %v2024_v31 }
 0x291   : > { %v1826_v59 = vpop.f32.mrf.mxu3  ;;  %3537 = vmatmul.msk.bf16.gmra.mxu0 %vm1224_vm5, %v4297_v60 }
 0x292   : > { %3483 = vmatmul.msk.bf16.gmra.mxu2 %vm1224_vm5, %v4297_v60  ;;  %v5164_v30 = vadd.f32 %v5069_v5, %v1826_v59 }
 0x293   : > { %v1927_v31 = vpop.f32.mrf.mxu1 }
 0x294   : > { %v5173_v46 = vadd.f32 %v5036_v25, %v1927_v31  ;;  %v2233_v31 = vperm.slane %v5021_v43, 2 }
 0x295   : > { %v1727_v7 = vpop.f32.mrf.mxu2 }
 0x296   : > { %v5180_v59 = vadd.f32 %v2159_v12, %v1727_v7  ;;  %v2026_v48 = vpop.f32.mrf.mxu0  ;;  %v5196_v7 = vadd.f32 %v5060_v38, %v5038_v28 }
 0x297   : > { %v5187_v58 = vadd.f32 %v5049_v51, %v2026_v48  ;;  %v2234_v48 = vperm.slane %v5033_v34, 2 }
 0x298   : > { %v2215_v25 = vmax.f32 %v5176_v20, %v5180_v59  ;;  %v5205_v59 = vadd.f32 %v2119_v53, %v5057_v54 }
 0x299   : > { %v2226_v1 = vmax.f32 %v5184_v45, %v5187_v58  ;;  %v1828_v36 = vpop.f32.mrf.mxu3  ;;  %v5772_v45 = vmax.f32 %v5052_v8, %v5055_v63  ;;  %v5773_v8 = vmax.f32 %v5072_v9, %v5080_v32  ;;  %v5775_v32 = vmax.f32 %v5097_v56, %v5102_v17 }
 0x29a   : > { %v5199_v60 = vadd.f32 %v5069_v5, %v1828_v36  ;;  %v2232_v5 = vperm.slane %v5046_v11, 2  ;;  %v5778_v56 = vmax.f32 %v5121_v50, %v5124_v49  ;;  %v5780_v50 = vmax.f32 %v5134_v47, %v5138_v35 }
 0x29b   : > { %v1930_v40 = vpop.f32.mrf.mxu1 }
 0x29c   : > { %v2224_v55 = vmax.f32 %v5196_v7, %v5199_v60  ;;  %v2241_v51 = vadd.f32 %v2233_v31, %v1930_v40  ;;  %v2231_v60 = vperm.slane %v5077_v2, 2  ;;  %v5774_v40 = vmax.f32 %v5087_v39, %v5093_v23 }
 0x29d   : > { %v1729_v20 = vpop.f32.mrf.mxu2  ;;  %v5777_v39 = vmax.f32 %v5111_v6, %v5114_v14 }
 0x29e   : > { %v5210_v58 = vmax.f32 %v5772_v45, %v2241_v51  ;;  %v5212_v28 = vadd.f32 %v2159_v12, %v1729_v20  ;;  %3502 = vmatmul.msk.bf16.gmra.mxu3 %vm1224_vm5, %v4327_v26  ;;  %3520 = vmatmul.msk.bf16.gmra.mxu1 %vm1224_vm5, %v4327_v26  ;;  %v2029_v38 = vpop.f32.mrf.mxu0 }
 0x29f   : > { %v2242_v36 = vadd.f32 %v2234_v48, %v2029_v38 }
 0x2a0   : > { %v2223_v54 = vmax.f32 %v5205_v59, %v5212_v28 }
 0x2a1   : > { %v5224_v63 = vmax.f32 %v5773_v8, %v2242_v36  ;;  %v1831_v53 = vpop.f32.mrf.mxu3  ;;  %3538 = vmatmul.msk.bf16.gmra.mxu0 %vm1224_vm5, %v4327_v26 }
 0x2a2   : > { %3484 = vmatmul.msk.bf16.gmra.mxu2 %vm1224_vm5, %v4327_v26  ;;  %v2240_v12 = vadd.f32 %v2232_v5, %v1831_v53  ;;  %v5776_v26 = vmax.f32 %v5104_v33, %v5108_v42  ;;  %v5779_v33 = vmax.f32 %v5127_v18, %v5132_v10 }
 0x2a3   : > { %v1932_v7 = vpop.f32.mrf.mxu1 }
 0x2a4   : > { %v5234_v51 = vmax.f32 %v5774_v40, %v2240_v12  ;;  %v2249_v20 = vadd.f32 %v2233_v31, %v1932_v7 }
 0x2a5   : > { %v1732_v9 = vpop.f32.mrf.mxu2 }
 0x2a6   : > { %v5239_v59 = vmax.f32 %v5775_v32, %v2249_v20  ;;  %v2239_v45 = vadd.f32 %v2231_v60, %v1732_v9  ;;  %v2031_v28 = vpop.f32.mrf.mxu0  ;;  %v5781_v9 = vmax.f32 %v5146_v52, %v5149_v37  ;;  %v5783_v52 = vmax.f32 %v5168_v3, %v5173_v46 }
 0x2a7   : > { %v2250_v38 = vadd.f32 %v2234_v48, %v2031_v28  ;;  %v5782_v28 = vmax.f32 %v5159_v15, %v5164_v30 }
 0x2a8   : > { %v5244_v36 = vmax.f32 %v5776_v26, %v2239_v45 }
 0x2a9   : > { %v5249_v23 = vmax.f32 %v5777_v39, %v2250_v38  ;;  %v1833_v8 = vpop.f32.mrf.mxu3 }
 0x2aa   : > { %v2248_v53 = vadd.f32 %v2232_v5, %v1833_v8 }
 0x2ab   : > { %v1935_v12 = vpop.f32.mrf.mxu1 }
 0x2ac   : > { %v5254_v17 = vmax.f32 %v5778_v56, %v2248_v53  ;;  %v2257_v7 = vadd.f32 %v2233_v31, %v1935_v12 }
 0x2ad   : > { %v1734_v40 = vpop.f32.mrf.mxu2 }
 0x2ae   : > { %v5259_v42 = vmax.f32 %v5779_v33, %v2257_v7  ;;  %v2247_v20 = vadd.f32 %v2231_v60, %v1734_v40  ;;  %3503 = vmatmul.msk.bf16.gmra.mxu3 %vm1224_vm5, %v4357_v57  ;;  %3521 = vmatmul.msk.bf16.gmra.mxu1 %vm1224_vm5, %v4357_v57  ;;  %v2034_v6 = vpop.f32.mrf.mxu0 }
 0x2af   : > { %v2258_v14 = vadd.f32 %v2234_v48, %v2034_v6 }
 0x2b0   : > { %v5268_v49 = vmax.f32 %v5780_v50, %v2247_v20 }
 0x2b1   : > { %v5273_v10 = vmax.f32 %v5781_v9, %v2258_v14  ;;  %v1836_v18 = vpop.f32.mrf.mxu3  ;;  %3539 = vmatmul.msk.bf16.gmra.mxu0 %vm1224_vm5, %v4357_v57 }
 0x2b2   : > { %3485 = vmatmul.msk.bf16.gmra.mxu2 %vm1224_vm5, %v4357_v57  ;;  %v2256_v32 = vadd.f32 %v2232_v5, %v1836_v18  ;;  %v2305_v57 = vperm.slane %v5021_v43, 3 }
 0x2b3   : > { %v1937_v45 = vpop.f32.mrf.mxu1 }
 0x2b4   : > { %v5282_v47 = vmax.f32 %v5782_v28, %v2256_v32  ;;  %v2265_v35 = vadd.f32 %v2233_v31, %v1937_v45  ;;  %v2306_v31 = vperm.slane %v5033_v34, 3 }
 0x2b5   : > { %v1737_v38 = vpop.f32.mrf.mxu2 }
 0x2b6   : > { %v5287_v37 = vmax.f32 %v5783_v52, %v2265_v35  ;;  %v2255_v26 = vadd.f32 %v2231_v60, %v1737_v38  ;;  %v2036_v39 = vpop.f32.mrf.mxu0 }
 0x2b7   : > { %v2266_v8 = vadd.f32 %v2234_v48, %v2036_v39 }
 0x2b8   : > { %v5289_v53 = vmax.f32 %v2215_v25, %v2255_v26 }
 0x2b9   : > { %v5292_v12 = vmax.f32 %v2226_v1, %v2266_v8  ;;  %v1838_v56 = vpop.f32.mrf.mxu3  ;;  %v2304_v1 = vperm.slane %v5046_v11, 3 }
 0x2ba   : > { %v2264_v15 = vadd.f32 %v2232_v5, %v1838_v56 }
 0x2bb   : > { %v1940_v30 = vpop.f32.mrf.mxu1 }
 0x2bc   : > { %v5295_v7 = vmax.f32 %v2224_v55, %v2264_v15  ;;  %v5297_v40 = vadd.f32 %v2305_v57, %v1940_v30 }
 0x2bd   : > { %v1739_v46 = vpop.f32.mrf.mxu2 }
 0x2be   : > { %v2345_v3 = vmax.f32 %v5210_v58, %v5297_v40  ;;  %v2263_v48 = vadd.f32 %v2231_v60, %v1739_v46  ;;  %3504 = vmatmul.msk.bf16.gmra.mxu3 %vm1224_vm5, %v4375_v19  ;;  %3522 = vmatmul.msk.bf16.gmra.mxu1 %vm1224_vm5, %v4375_v19  ;;  %v2039_v25 = vpop.f32.mrf.mxu0  ;;  %v2303_v60 = vperm.slane %v5077_v2, 3 }
 0x2bf   : > { %v5306_v5 = vadd.f32 %v2306_v31, %v2039_v25 }
 0x2c0   : > { %v5308_v55 = vmax.f32 %v2223_v54, %v2263_v48 }
 0x2c1   : > { %v2346_v33 = vmax.f32 %v5224_v63, %v5306_v5  ;;  %v1841_v20 = vpop.f32.mrf.mxu3  ;;  %3540 = vmatmul.msk.bf16.gmra.mxu0 %vm1224_vm5, %v4375_v19  ;;  %v2377_v5 = vperm.slane %v5021_v43, 4 }
 0x2c2   : > { %3486 = vmatmul.msk.bf16.gmra.mxu2 %vm1224_vm5, %v4375_v19  ;;  %v5316_v58 = vadd.f32 %v2304_v1, %v1841_v20 }
 0x2c3   : > { %v1942_v6 = vpop.f32.mrf.mxu1 }
 0x2c4   : > { %v2344_v14 = vmax.f32 %v5234_v51, %v5316_v58  ;;  %v5321_v54 = vadd.f32 %v2305_v57, %v1942_v6  ;;  %v2378_v6 = vperm.slane %v5033_v34, 4 }
 0x2c5   : > { %v1742_v50 = vpop.f32.mrf.mxu2 }
 0x2c6   : > { %v2353_v63 = vmax.f32 %v5239_v59, %v5321_v54  ;;  %v5325_v9 = vadd.f32 %v2303_v60, %v1742_v50  ;;  %v2041_v18 = vpop.f32.mrf.mxu0 }
 0x2c7   : > { %v5327_v32 = vadd.f32 %v2306_v31, %v2041_v18 }
 0x2c8   : > { %v2343_v19 = vmax.f32 %v5244_v36, %v5325_v9 }
 0x2c9   : > { %v2354_v45 = vmax.f32 %v5249_v23, %v5327_v32  ;;  %v1843_v28 = vpop.f32.mrf.mxu3 }
 0x2ca   : > { %v5333_v35 = vadd.f32 %v2304_v1, %v1843_v28 }
 0x2cb   : > { %v1945_v51 = vpop.f32.mrf.mxu1 }
 0x2cc   : > { %v2352_v38 = vmax.f32 %v5254_v17, %v5333_v35  ;;  %v5337_v52 = vadd.f32 %v2305_v57, %v1945_v51 }
 0x2cd   : > { %v1744_v59 = vpop.f32.mrf.mxu2 }
 0x2ce   : > { %v2361_v26 = vmax.f32 %v5259_v42, %v5337_v52  ;;  %v5341_v39 = vadd.f32 %v2303_v60, %v1744_v59  ;;  %3505 = vmatmul.msk.bf16.gmra.mxu3 %vm1224_vm5, %v4415_v61  ;;  %3523 = vmatmul.msk.bf16.gmra.mxu1 %vm1224_vm5, %v4415_v61  ;;  %v2044_v36 = vpop.f32.mrf.mxu0 }
 0x2cf   : > { %v5347_v23 = vadd.f32 %v2306_v31, %v2044_v36 }
 0x2d0   : > { %v2351_v17 = vmax.f32 %v5268_v49, %v5341_v39 }
 0x2d1   : > { %v2362_v8 = vmax.f32 %v5273_v10, %v5347_v23  ;;  %v1846_v56 = vpop.f32.mrf.mxu3  ;;  %3541 = vmatmul.msk.bf16.gmra.mxu0 %vm1224_vm5, %v4415_v61 }
 0x2d2   : > { %3487 = vmatmul.msk.bf16.gmra.mxu2 %vm1224_vm5, %v4415_v61  ;;  %v5357_v42 = vadd.f32 %v2304_v1, %v1846_v56 }
 0x2d3   : > { %v1947_v15 = vpop.f32.mrf.mxu1 }
 0x2d4   : > { %v2360_v30 = vmax.f32 %v5282_v47, %v5357_v42  ;;  %v5361_v40 = vadd.f32 %v2305_v57, %v1947_v15 }
 0x2d5   : > { %v1747_v46 = vpop.f32.mrf.mxu2 }
 0x2d6   : > { %v2369_v49 = vmax.f32 %v5287_v37, %v5361_v40  ;;  %v5365_v10 = vadd.f32 %v2303_v60, %v1747_v46  ;;  %v2046_v48 = vpop.f32.mrf.mxu0 }
 0x2d7   : > { %v5367_v25 = vadd.f32 %v2306_v31, %v2046_v48 }
 0x2d8   : > { %v2359_v61 = vmax.f32 %v5289_v53, %v5365_v10 }
 0x2d9   : > { %v2370_v20 = vmax.f32 %v5292_v12, %v5367_v25  ;;  %v1848_v47 = vpop.f32.mrf.mxu3  ;;  %v2376_v12 = vperm.slane %v5046_v11, 4 }
 0x2da   : > { %v5374_v57 = vadd.f32 %v2304_v1, %v1848_v47 }
 0x2db   : > { %v1950_v58 = vpop.f32.mrf.mxu1 }
 0x2dc   : > { %v2368_v37 = vmax.f32 %v5295_v7, %v5374_v57  ;;  %v2385_v54 = vadd.f32 %v2377_v5, %v1950_v58 }
 0x2dd   : > { %v1749_v31 = vpop.f32.mrf.mxu2 }
 0x2de   : > { %v5379_v50 = vmax.f32 %v2345_v3, %v2385_v54  ;;  %v5381_v9 = vadd.f32 %v2303_v60, %v1749_v31  ;;  %3506 = vmatmul.msk.bf16.gmra.mxu3 %vm1224_vm5, %v4438_v29  ;;  %3524 = vmatmul.msk.bf16.gmra.mxu1 %vm1224_vm5, %v4438_v29  ;;  %v2049_v53 = vpop.f32.mrf.mxu0  ;;  %v2375_v60 = vperm.slane %v5077_v2, 4 }
 0x2df   : > { %v2386_v1 = vadd.f32 %v2378_v6, %v2049_v53  ;;  %v2449_v53 = vperm.slane %v5021_v43, 5 }
 0x2e0   : > { %v2367_v18 = vmax.f32 %v5308_v55, %v5381_v9 }
 0x2e1   : > { %v5390_v7 = vmax.f32 %v2346_v33, %v2386_v1  ;;  %v1851_v32 = vpop.f32.mrf.mxu3  ;;  %3542 = vmatmul.msk.bf16.gmra.mxu0 %vm1224_vm5, %v4438_v29 }
 0x2e2   : > { %3488 = vmatmul.msk.bf16.gmra.mxu2 %vm1224_vm5, %v4438_v29  ;;  %v2384_v3 = vadd.f32 %v2376_v12, %v1851_v32 }
 0x2e3   : > { %v1952_v28 = vpop.f32.mrf.mxu1 }
 0x2e4   : > { %v5397_v35 = vmax.f32 %v2344_v14, %v2384_v3  ;;  %v2393_v51 = vadd.f32 %v2377_v5, %v1952_v28  ;;  %v2450_v28 = vperm.slane %v5033_v34, 5 }
 0x2e5   : > { %v1752_v52 = vpop.f32.mrf.mxu2 }
 0x2e6   : > { %v5399_v59 = vmax.f32 %v2353_v63, %v2393_v51  ;;  %v2383_v55 = vadd.f32 %v2375_v60, %v1752_v52  ;;  %v2051_v33 = vpop.f32.mrf.mxu0 }
 0x2e7   : > { %v2394_v39 = vadd.f32 %v2378_v6, %v2051_v33 }
 0x2e8   : > { %v5401_v36 = vmax.f32 %v2343_v19, %v2383_v55 }
 0x2e9   : > { %v5403_v23 = vmax.f32 %v2354_v45, %v2394_v39  ;;  %v1853_v56 = vpop.f32.mrf.mxu3 }
 0x2ea   : > { %v2392_v42 = vadd.f32 %v2376_v12, %v1853_v56  ;;  %v2447_v56 = vperm.slane %v5077_v2, 5 }
 0x2eb   : > { %v1955_v29 = vpop.f32.mrf.mxu1 }
 0x2ec   : > { %v5405_v15 = vmax.f32 %v2352_v38, %v2392_v42  ;;  %v2401_v40 = vadd.f32 %v2377_v5, %v1955_v29 }
 0x2ed   : > { %v1754_v46 = vpop.f32.mrf.mxu2 }
 0x2ee   : > { %v5407_v14 = vmax.f32 %v2361_v26, %v2401_v40  ;;  %v2391_v10 = vadd.f32 %v2375_v60, %v1754_v46  ;;  %3507 = vmatmul.msk.bf16.gmra.mxu3 %vm1224_vm5, %v4477_v13  ;;  %3525 = vmatmul.msk.bf16.gmra.mxu1 %vm1224_vm5, %v4477_v13  ;;  %v2054_v63 = vpop.f32.mrf.mxu0 }
 0x2ef   : > { %v2402_v19 = vadd.f32 %v2378_v6, %v2054_v63 }
 0x2f0   : > { %v5413_v45 = vmax.f32 %v2351_v17, %v2391_v10 }
 0x2f1   : > { %v5415_v48 = vmax.f32 %v2362_v8, %v2402_v19  ;;  %v1856_v25 = vpop.f32.mrf.mxu3  ;;  %3543 = vmatmul.msk.bf16.gmra.mxu0 %vm1224_vm5, %v4477_v13 }
 0x2f2   : > { %5784 = vst [vmem:[#allocation8_spill] sm:$0xff] %v5413_v45  ;;  %3489 = vmatmul.msk.bf16.gmra.mxu2 %vm1224_vm5, %v4477_v13  ;;  %v2400_v38 = vadd.f32 %v2376_v12, %v1856_v25  ;;  %vm2755_vm5 = vcmask 334848  }
 0x2f3   : > { %5785 = vst [vmem:[#allocation9_spill] sm:$0xff] %v5415_v48  ;;  %v1957_v26 = vpop.f32.mrf.mxu1  ;;  %v5536_v48 = vperm.slane %v5046_v11, 7 }
 0x2f4   : > { %v5421_v47 = vmax.f32 %v2360_v30, %v2400_v38  ;;  %v2409_v57 = vadd.f32 %v2377_v5, %v1957_v26 }
 0x2f5   : > { %v1757_v58 = vpop.f32.mrf.mxu2 }
 0x2f6   : > { %v5423_v54 = vmax.f32 %v2369_v49, %v2409_v57  ;;  %v2399_v31 = vadd.f32 %v2375_v60, %v1757_v58  ;;  %v2056_v17 = vpop.f32.mrf.mxu0 }
 0x2f7   : > { %v2410_v9 = vadd.f32 %v2378_v6, %v2056_v17 }
 0x2f8   : > { %v5425_v8 = vmax.f32 %v2359_v61, %v2399_v31  ;;  %v2448_v61 = vperm.slane %v5046_v11, 5 }
 0x2f9   : > { %v5428_v1 = vmax.f32 %v2370_v20, %v2410_v9  ;;  %v1858_v32 = vpop.f32.mrf.mxu3 }
 0x2fa   : > { %v2408_v3 = vadd.f32 %v2376_v12, %v1858_v32 }
 0x2fb   : > { %v1960_v13 = vpop.f32.mrf.mxu1 }
 0x2fc   : > { %v5431_v30 = vmax.f32 %v2368_v37, %v2408_v3  ;;  %v2457_v5 = vadd.f32 %v2449_v53, %v1960_v13 }
 0x2fd   : > { %v1759_v51 = vpop.f32.mrf.mxu2 }
 0x2fe   : > { %v2489_v49 = vmax.f32 %v5379_v50, %v2457_v5  ;;  %v2407_v52 = vadd.f32 %v2375_v60, %v1759_v51  ;;  %v2059_v55 = vpop.f32.mrf.mxu0 }
 0x2ff   : > { %v2458_v6 = vadd.f32 %v2450_v28, %v2059_v55 }
 0x300   : > { %v5435_v33 = vmax.f32 %v2367_v18, %v2407_v52 }
 0x301   : > { %v2490_v20 = vmax.f32 %v5390_v7, %v2458_v6  ;;  %v1861_v39 = vpop.f32.mrf.mxu3 }
 0x302   : > { %v5438_v12 = vadd.f32 %v2448_v61, %v1861_v39 }
 0x303   : > { %v1962_v37 = vpop.f32.mrf.mxu1 }
 0x304   : > { %v2465_v29 = vadd.f32 %v2449_v53, %v1962_v37 }
 0x305   : > { %v1762_v50 = vpop.f32.mrf.mxu2 }
 0x306   : > { %v2497_v60 = vmax.f32 %v5399_v59, %v2465_v29  ;;  %v5444_v40 = vadd.f32 %v2447_v56, %v1762_v50  ;;  %v2061_v46 = vpop.f32.mrf.mxu0  ;;  %v5477_v50 = vperm.slane %v5021_v43, 6 }
 0x307   : > { %v2466_v18 = vadd.f32 %v2450_v28, %v2061_v46 }
 0x309   : > { %v2498_v10 = vmax.f32 %v5403_v23, %v2466_v18  ;;  %v1863_v63 = vpop.f32.mrf.mxu3 }
 0x30a   : > { %v5449_v19 = vadd.f32 %v2448_v61, %v1863_v63 }
 0x30b   : > { %v1965_v25 = vpop.f32.mrf.mxu1 }
 0x30c   : > { %v5453_v26 = vadd.f32 %v2449_v53, %v1965_v25 }
 0x30d   : > { %v1764_v57 = vpop.f32.mrf.mxu2 }
 0x30e   : > { %v5457_v58 = vadd.f32 %v2447_v56, %v1764_v57  ;;  %v2064_v31 = vpop.f32.mrf.mxu0 }
 0x30f   : > { %v5459_v17 = vadd.f32 %v2450_v28, %v2064_v31 }
 0x310   : > { %5786 = vst [vmem:[#allocation10_spill] sm:$0xff] %v5457_v58 }
 0x311   : > { %5787 = vst [vmem:[#allocation11_spill] sm:$0xff] %v5459_v17  ;;  %v1866_v32 = vpop.f32.mrf.mxu3 }
 0x312   : > { %v2472_v3 = vadd.f32 %v2448_v61, %v1866_v32 }
 0x313   : > { %v1967_v13 = vpop.f32.mrf.mxu1 }
 0x314   : > { %v2504_v5 = vmax.f32 %v5421_v47, %v2472_v3  ;;  %v5466_v51 = vadd.f32 %v2449_v53, %v1967_v13 }
 0x315   : > { %v1767_v52 = vpop.f32.mrf.mxu2 }
 0x316   : > { %v2513_v55 = vmax.f32 %v5423_v54, %v5466_v51  ;;  %v5470_v6 = vadd.f32 %v2447_v56, %v1767_v52  ;;  %v2066_v39 = vpop.f32.mrf.mxu0  ;;  %v5484_v54 = vperm.slane %v5033_v34, 6 }
 0x317   : > { %v5472_v37 = vadd.f32 %v2450_v28, %v2066_v39 }
 0x318   : > { %v2503_v29 = vmax.f32 %v5425_v8, %v5470_v6 }
 0x319   : > { %v1868_v53 = vpop.f32.mrf.mxu3 }
 0x31a   : > { %v5481_v46 = vadd.f32 %v2448_v61, %v1868_v53  ;;  %v2520_v61 = vperm.slane %v5046_v11, 6 }
 0x31b   : > { %v1970_v18 = vpop.f32.mrf.mxu1 }
 0x31c   : > { %v2529_v63 = vadd.f32 %v5477_v50, %v1970_v18 }
 0x31d   : > { %v1769_v25 = vpop.f32.mrf.mxu2 }
 0x31e   : > { %v5489_v8 = vmax.f32 %v2489_v49, %v2529_v63  ;;  %v5491_v57 = vadd.f32 %v2447_v56, %v1769_v25  ;;  %v2069_v31 = vpop.f32.mrf.mxu0 }
 0x31f   : > { %v2530_v32 = vadd.f32 %v5484_v54, %v2069_v31 }
 0x321   : > { %v5496_v3 = vmax.f32 %v2490_v20, %v2530_v32  ;;  %v5498_v13 = vpop.f32.mrf.mxu3 }
 0x323   : > { %v1972_v51 = vpop.f32.mrf.mxu1 }
 0x324   : > { %v2537_v52 = vadd.f32 %v5477_v50, %v1972_v51 }
 0x325   : > { %v5501_v6 = vpop.f32.mrf.mxu2 }
 0x326   : > { %v5503_v39 = vmax.f32 %v2497_v60, %v2537_v52  ;;  %v2071_v49 = vpop.f32.mrf.mxu0 }
 0x327   : > { %v2538_v56 = vadd.f32 %v5484_v54, %v2071_v49 }
 0x328   : > { %5788 = vst [vmem:[#allocation12_spill] sm:$0xff] %v5503_v39  ;;  %v5532_v39 = vperm.slane %v5077_v2, 6 }
 0x329   : > { %v5506_v53 = vmax.f32 %v2498_v10, %v2538_v56  ;;  %v5508_v18 = vpop.f32.mrf.mxu3 }
 0x32b   : > { %5789 = vst [vmem:[#allocation13_spill] sm:$0xff] %v5506_v53  ;;  %v5510_v63 = vpop.f32.mrf.mxu1  ;;  %v5540_v53 = vperm.slane %v5021_v43, 7  ;;  %v5794_v43 = vmax.f32 %v4972_v4, %v4976_v16  ;;  %v5797_v4 = vmax.f32 %v5431_v30, %v5481_v46  ;;  %v5579_v30 = vld [vmem:[%s5756_s3 + $0x78] ss:$0 sm:$0xff] }
 0x32d   : > { %v5512_v20 = vpop.f32.mrf.mxu2 }
 0x32e   : > { %v5514_v25 = vpop.f32.mrf.mxu0 }
 0x32f   : > { %5790 = vst [vmem:[#allocation14_spill] sm:$0xff] %v5514_v25  ;;  %v5545_v25 = vperm.slane %v5077_v2, 7  ;;  %v5795_v2 = vmax.f32 %v5428_v1, %v5472_v37  ;;  %v5798_v37 = vmax.f32 %v4986_v24, %v4988_v27 }
 0x331   : > { %v1876_v31 = vpop.f32.mrf.mxu3 }
 0x332   : > { %v2544_v47 = vadd.f32 %v2520_v61, %v1876_v31 }
 0x333   : > { %v1977_v32 = vpop.f32.mrf.mxu1 }
 0x334   : > { %v2553_v17 = vadd.f32 %v5477_v50, %v1977_v32  ;;  %v2576_v45 = vmax.f32 %v2504_v5, %v2544_v47 }
 0x335   : > { %v1777_v51 = vpop.f32.mrf.mxu2 }
 0x336   : > { %v2076_v9 = vpop.f32.mrf.mxu0  ;;  %v2543_v62 = vadd.f32 %v5532_v39, %v1777_v51  ;;  %v5549_v51 = vperm.slane %v5033_v34, 7 }
 0x337   : > { %v2554_v31 = vadd.f32 %v5484_v54, %v2076_v9 }
 0x338   : > { %v2575_v0 = vmax.f32 %v2503_v29, %v2543_v62 }
 0x339   : > { %v1878_v23 = vpop.f32.mrf.mxu3 }
 0x33a   : > { %v2552_v47 = vadd.f32 %v2520_v61, %v1878_v23 }
 0x33b   : > { %v5516_v60 = vpop.f32.mrf.mxu1 }
 0x33c   : > { %v2584_v16 = vmax.f32 %v5797_v4, %v2552_v47  ;;  %v5592_v47 = vld [vmem:[%s5756_s3 + $0x68] ss:$0 sm:$0xff] }
 0x33d   : > { %v1779_v52 = vpop.f32.mrf.mxu2 }
 0x33e   : > { %v2079_v59 = vpop.f32.mrf.mxu0 }
 0x33f   : > { %v2602_v46 = vadd.f32 %v5549_v51, %v2079_v59  ;;  %v5800_v59 = vmax.f32 %v5397_v35, %v5438_v12 }
 0x341   : > { %v1881_v49 = vpop.f32.mrf.mxu3 }
 0x343   : > { %v5518_v10 = vpop.f32.mrf.mxu1 }
 0x344   : > { %5791 = vst [vmem:[#allocation15_spill] sm:$0xff] %v5518_v10  ;;  %v2585_v10 = vmax.f32 %v2513_v55, %v2553_v17 }
 0x345   : > { %v1782_v56 = vpop.f32.mrf.mxu2 }
 0x346   : > { %v5520_v38 = vpop.f32.mrf.mxu0  ;;  %v2599_v35 = vadd.f32 %v5545_v25, %v1782_v56 }
 0x349   : > { %v5522_v7 = vpop.f32.mrf.mxu3 }
 0x34b   : > { %v5524_v42 = vpop.f32.mrf.mxu1 }
 0x34d   : > { %v5527_v28 = vpop.f32.mrf.mxu2 }
 0x34e   : > { %5792 = vst [vmem:[#allocation16_spill] sm:$0xff] %v5527_v28  ;;  %v5529_v41 = vpop.f32.mrf.mxu0 }
 0x34f   : > { %5793 = vst [vmem:[#allocation17_spill] sm:$0xff] %v5529_v41 }
 0x351   : > { %v1886_v58 = vpop.f32.mrf.mxu3 }
 0x352   : > { %v2616_v28 = vadd.f32 %v5536_v48, %v1886_v58 }
 0x353   : > { %v1987_v41 = vpop.f32.mrf.mxu1 }
 0x354   : > { %v2648_v32 = vmax.f32 %v2576_v45, %v2616_v28  ;;  %v2625_v11 = vadd.f32 %v5540_v53, %v1987_v41  ;;  %v2586_v45 = vmax.f32 %v5795_v2, %v2554_v31  ;;  %v5796_v41 = vmax.f32 %v4992_v44, %v4982_v22 }
 0x355   : > { %v1787_v5 = vpop.f32.mrf.mxu2 }
 0x356   : > { %v5554_v58 = vmax.f32 %v2648_v32, %v5794_v43  ;;  %v2657_v9 = vmax.f32 %v2585_v10, %v2625_v11  ;;  %v2615_v17 = vadd.f32 %v5545_v25, %v1787_v5  ;;  %v2086_v55 = vpop.f32.mrf.mxu0  ;;  %v2551_v10 = vadd.f32 %v5532_v39, %v1779_v52 }
 0x357   : > { %v2626_v62 = vadd.f32 %v5549_v51, %v2086_v55  ;;  %v2600_v5 = vadd.f32 %v5536_v48, %v1881_v49  ;;  %v2634_v55 = vmax.f32 %v5496_v3, %v2602_v46  ;;  %v5801_v3 = vmax.f32 %v5401_v36, %v5444_v40  ;;  %v5805_v46 = vld [vmem:[#allocation14_spill] sm:$0xff] }
 0x358   : > { %v2727_v34 = vmax.f32 %v2657_v9, %v5796_v41  ;;  %v2647_v23 = vmax.f32 %v2575_v0, %v2615_v17  ;;  %v2528_v0 = vadd.f32 %v2520_v61, %v5498_v13  ;;  %v2601_v17 = vadd.f32 %v5540_v53, %v5516_v60 }
 0x359   : > { %v2658_v29 = vmax.f32 %v2586_v45, %v2626_v62  ;;  %v1888_v28 = vpop.f32.mrf.mxu3  ;;  %v5615_v62 = vld [vmem:[%s5756_s3 + $0x60] ss:$0 sm:$0xff]  ;;  %v2536_v41 = vadd.f32 %v2520_v61, %v5508_v18  ;;  %v2545_v60 = vadd.f32 %v5477_v50, %v5510_v63  ;;  %v2608_v61 = vadd.f32 %v5536_v48, %v5522_v7 }
 0x35a   : > { %v5569_v32 = vmax.f32 %v2647_v23, %v4984_v21  ;;  %v2624_v1 = vadd.f32 %v5536_v48, %v1888_v28  ;;  %v5799_v21 = vmax.f32 %v5435_v33, %v5491_v57  ;;  %v2560_v43 = vmax.f32 %v5800_v59, %v2528_v0  ;;  %v5602_v57 = vld [vmem:[%s5756_s3 + $0x70] ss:$0 sm:$0xff]  ;;  %v5804_v48 = vld [vmem:[#allocation2_spill] sm:$0xff] }
 0x35b   : > { %v2730_v31 = vmax.f32 %v2658_v29, %v5798_v37  ;;  %v1990_v22 = vpop.f32.mrf.mxu1  ;;  %v2527_v33 = vadd.f32 %v5532_v39, %v5501_v6  ;;  %v2633_v4 = vmax.f32 %v5489_v8, %v2601_v17  ;;  %v5802_v36 = vmax.f32 %v5405_v15, %v5449_v19  ;;  %v5806_v19 = vld [vmem:[#allocation15_spill] sm:$0xff] }
 0x35c   : > { %v2656_v44 = vmax.f32 %v2584_v16, %v2624_v1  ;;  %v2583_v11 = vmax.f32 %v5799_v21, %v2551_v10  ;;  %v2632_v45 = vmax.f32 %v2560_v43, %v2600_v5  ;;  %v2673_v56 = vadd.f32 %v5602_v57, %v1990_v22  ;;  %v5808_v21 = vld [vmem:[#allocation16_spill] sm:$0xff] }
 0x35d   : > { %v1789_v52 = vpop.f32.mrf.mxu2  ;;  %v2559_v29 = vmax.f32 %v5801_v3, %v2527_v33  ;;  %v2610_v16 = vadd.f32 %v5549_v51, %v5520_v38  ;;  %v2568_v40 = vmax.f32 %v5802_v36, %v2536_v41  ;;  %v5803_v37 = vmax.f32 %v5407_v14, %v5453_v26  ;;  %v5807_v26 = vld [vmem:[#allocation13_spill] sm:$0xff]  ;;  %v5817_v3 = vld [vmem:[#allocation12_spill] sm:$0xff] }
 0x35e   : > { %v5586_v24 = vmax.f32 %v2656_v44, %v2730_v31  ;;  %v2623_v27 = vadd.f32 %v5545_v25, %v1789_v52  ;;  %v2089_v13 = vpop.f32.mrf.mxu0  ;;  %v2535_v38 = vadd.f32 %v5532_v39, %v5512_v20  ;;  %v2617_v31 = vadd.f32 %v5540_v53, %v5524_v42 }
 0x35f   : > { %v2674_v9 = vadd.f32 %v5579_v30, %v2089_v13  ;;  %v2631_v1 = vmax.f32 %v2559_v29, %v2599_v35  ;;  %v2577_v8 = vmax.f32 %v5803_v37, %v2545_v60  ;;  %v2705_v22 = vmax.f32 %v2633_v4, %v2673_v56  ;;  %v5810_v13 = vld [vmem:[#allocation10_spill] sm:$0xff]  ;;  %v5814_v35 = vld [vmem:[#allocation9_spill] sm:$0xff] }
 0x360   : > { %v2655_v49 = vmax.f32 %v2583_v11, %v2623_v27  ;;  %v2546_v15 = vadd.f32 %v5484_v54, %v5805_v46  ;;  %v2609_v14 = vadd.f32 %v5540_v53, %v5806_v19  ;;  %v2642_v52 = vmax.f32 %v5807_v26, %v2610_v16  ;;  %v5809_v27 = vld [vmem:[#allocation8_spill] sm:$0xff]  ;;  %v5812_v54 = vld [vmem:[#allocation17_spill] sm:$0xff]  ;;  %v5822_v46 = vld [vmem:[#allocation7_spill] sm:$0xff] }
 0x361   : > { %v1891_v2 = vpop.f32.mrf.mxu3  ;;  %v2607_v39 = vadd.f32 %v5545_v25, %v5808_v21  ;;  %v2640_v42 = vmax.f32 %v2568_v40, %v2608_v61  ;;  %v5811_v59 = vmax.f32 %v5809_v27, %v5810_v13  ;;  %v2649_v33 = vmax.f32 %v2577_v8, %v2617_v31 }
 0x362   : > { %v5609_v12 = vmax.f32 %v2727_v34, %v2655_v49  ;;  %v2672_v6 = vadd.f32 %v5592_v47, %v1891_v2  ;;  %v2706_v34 = vmax.f32 %v2634_v55, %v2674_v9  ;;  %v2618_v49 = vadd.f32 %v5549_v51, %v5812_v54  ;;  %v5813_v2 = vld [vmem:[#allocation4_spill] sm:$0xff] }
 0x363   : > { %v1992_v23 = vpop.f32.mrf.mxu1  ;;  %v2567_v43 = vmax.f32 %v5811_v59, %v2535_v38  ;;  %v2641_v29 = vmax.f32 %v5817_v3, %v2609_v14 }
 0x364   : > { %v2704_v28 = vmax.f32 %v2632_v45, %v2672_v6  ;;  %v2681_v53 = vadd.f32 %v5602_v57, %v1992_v23  ;;  %v5815_v6 = vld [vmem:[#allocation11_spill] sm:$0xff] }
 0x365   : > { %v1792_v10 = vpop.f32.mrf.mxu2  ;;  %v5816_v41 = vmax.f32 %v5814_v35, %v5815_v6  ;;  %v2639_v56 = vmax.f32 %v2567_v43, %v2607_v39 }
 0x366   : > { %v2740_v50 = vmax.f32 %v2704_v28, %v2706_v34  ;;  %v2671_v18 = vadd.f32 %v5615_v62, %v1792_v10  ;;  %v2091_v63 = vpop.f32.mrf.mxu0 }
 0x367   : > { %v2682_v44 = vadd.f32 %v5579_v30, %v2091_v63  ;;  %v2578_v60 = vmax.f32 %v5816_v41, %v2546_v15  ;;  %v5819_v63 = vld [vmem:[#allocation6_spill] sm:$0xff] }
 0x368   : > { %v5641_v7 = vmax.f32 %v5804_v48, %v2740_v50  ;;  %v2703_v0 = vmax.f32 %v2631_v1, %v2671_v18  ;;  %v2713_v50 = vmax.f32 %v2641_v29, %v2681_v53  ;;  %v5818_v18 = vld [vmem:[#allocation5_spill] sm:$0xff] }
 0x369   : > { %v1893_v20 = vpop.f32.mrf.mxu3  ;;  %v2714_v17 = vmax.f32 %v2642_v52, %v2682_v44  ;;  %v2650_v1 = vmax.f32 %v2578_v60, %v2618_v49  ;;  %v5820_v36 = vmax.f32 %v5818_v18, %v5819_v63  ;;  %v5821_v44 = vld [vmem:[#allocation3_spill] sm:$0xff] }
 0x36a   : > { %v2680_v11 = vadd.f32 %v5592_v47, %v1893_v20  ;;  %v2739_v5 = vmax.f32 %v2703_v0, %v2705_v22  ;;  %v2756_v51 = vsel %vm2755_vm5, %v5641_v7, 0.0  ;;  %v5823_v15 = vmax.f32 %v5821_v44, %v5822_v46 }
 0x36b   : > { %v1995_v9 = vpop.f32.mrf.mxu1 }
 0x36c   : > { %v2712_v55 = vmax.f32 %v2640_v42, %v2680_v11  ;;  %v2689_v25 = vadd.f32 %v5602_v57, %v1995_v9  ;;  %v2747_v45 = vmax.f32 %v5813_v2, %v2739_v5 }
 0x36d   : > { %v1794_v34 = vpop.f32.mrf.mxu2 }
 0x36e   : > { %v2742_v28 = vmax.f32 %v2712_v55, %v2714_v17  ;;  %v2721_v23 = vmax.f32 %v2649_v33, %v2689_v25  ;;  %v2679_v4 = vadd.f32 %v5615_v62, %v1794_v34  ;;  %v2094_v16 = vpop.f32.mrf.mxu0  ;;  %v2757_v10 = vadd.f32 %v2756_v51, %v2747_v45 }
 0x36f   : > { %v2690_v61 = vadd.f32 %v5579_v30, %v2094_v16  ;;  %v3703_v55 = vmov 169.0  }
 0x370   : > { %v2750_v40 = vmax.f32 %v5820_v36, %v2742_v28  ;;  %v2743_v37 = vmax.f32 %v5569_v32, %v2721_v23  ;;  %v2711_v8 = vmax.f32 %v2639_v56, %v2679_v4  ;;  %2758 = vadd.xlane.f32.xlu0 %v2757_v10  ;;  %3684 = vrcp.f32 %v3703_v55 }
 0x371   : > { %v2722_v38 = vmax.f32 %v2650_v1, %v2690_v61  ;;  %v1896_v31 = vpop.f32.mrf.mxu3 }
 0x372   : > { %v2741_v22 = vmax.f32 %v2711_v8, %v2713_v50  ;;  %v2688_v48 = vadd.f32 %v5592_v47, %v1896_v31  ;;  %v2760_v52 = vsel %vm2755_vm5, %v2750_v40, 0.0 }
 0x373   : > { %v2744_v0 = vmax.f32 %v5554_v58, %v2722_v38  ;;  %v1997_v20 = vpop.f32.mrf.mxu1 }
 0x374   : > { %v2749_v19 = vmax.f32 %v5823_v15, %v2741_v22  ;;  %v2697_v13 = vadd.f32 %v5602_v57, %v1997_v20 }
 0x375   : > { %v2752_v14 = vmax.f32 %v2688_v48, %v2744_v0  ;;  %v1797_v26 = vpop.f32.mrf.mxu2 }
 0x376   : > { %v2687_v21 = vadd.f32 %v5615_v62, %v1797_v26  ;;  %v2096_v32 = vpop.f32.mrf.mxu0  ;;  %v2761_v39 = vadd.f32 %v2760_v52, %v2749_v19  ;;  %v2737_v49 = vmax.f32 %v2697_v13, %v5609_v12 }
 0x377   : > { %v2698_v42 = vadd.f32 %v5579_v30, %v2096_v32  ;;  %v2764_v11 = vsel %vm2755_vm5, %v2752_v14, 0.0 }
 0x378   : > { %v2751_v5 = vmax.f32 %v2687_v21, %v2743_v37  ;;  %2762 = vadd.xlane.f32.xlu0 %v2761_v39 }
 0x379   : > { %v2746_v58 = vmax.f32 %v5586_v24, %v2698_v42  ;;  %v1898_v27 = vpop.f32.mrf.mxu3  ;;  %v3685_v24 = vpop.eup %3684 }
 0x37a   : > { %v2696_v59 = vadd.f32 %v5592_v47, %v1898_v27  ;;  %v2765_v43 = vadd.f32 %v2764_v11, %v2751_v5  ;;  %v2773_v25 = vmul.f32 169.0, %v3685_v24  ;;  %vm2777_vm10 = vweird.f32 %v3685_v24 }
 0x37c   : > { %2766 = vadd.xlane.f32.xlu1 %v2765_v43  ;;  %v2754_v33 = vmax.f32 %v2696_v59, %v2746_v58  ;;  %v2774_v57 = vsub.f32 1.0, %v2773_v25 }
 0x37d   : > { %v1799_v54 = vpop.f32.mrf.mxu2 }
 0x37e   : > { %v2695_v53 = vadd.f32 %v5615_v62, %v1799_v54  ;;  %v2768_v9 = vsel %vm2755_vm5, %v2754_v33, 0.0  ;;  %v2775_v2 = vmul.f32 %v3685_v24, %v2774_v57 }
 0x380   : > { %v2753_v30 = vmax.f32 %v2737_v49, %v2695_v53  ;;  %v2776_v47 = vadd.f32 %v3685_v24, %v2775_v2 }
 0x382   : > { %v2769_v17 = vadd.f32 %v2768_v9, %v2753_v30  ;;  %v2778_v35 = vsel %vm2777_vm10, %v3685_v24, %v2776_v47 }
 0x384   : > { %2770 = vadd.xlane.f32.xlu1 %v2769_v17 }
 0x3e3   : > { %v2759_v6 = vpop.xlane.xlu0 %2758 }
 0x3e4   : > { %v2779_v41 = vmul.f32 %v2778_v35, %v2759_v6 }
 0x3e6   : > { %v5687_v60 = vsub.f32 %v2747_v45, %v2779_v41  ;;  %v5690_v12 = vsub.f32 %v5641_v7, %v2779_v41 }
 0x3e8   : > { %v2791_v62 = vmul.f32 %v5687_v60, %v5687_v60  ;;  %v2792_v3 = vmul.f32 %v5690_v12, %v5690_v12 }
 0x3ea   : > { %v2799_v29 = vsel %vm2755_vm5, %v2792_v3, 0.0 }
 0x3eb   : > { %v2763_v56 = vpop.xlane.xlu0 %2762  ;;  %v2800_v34 = vadd.f32 %v2799_v29, %v2791_v62 }
 0x3ec   : > { %v2780_v51 = vmul.f32 %v2778_v35, %v2763_v56 }
 0x3ed   : > { %2801 = vadd.xlane.f32.xlu2 %v2800_v34 }
 0x3ee   : > { %v5697_v28 = vsub.f32 %v2749_v19, %v2780_v51  ;;  %v5699_v23 = vsub.f32 %v2750_v40, %v2780_v51 }
 0x3ef   : > { %v2767_v45 = vpop.xlane.xlu1 %2766 }
 0x3f0   : > { %v2781_v4 = vmul.f32 %v2778_v35, %v2767_v45  ;;  %v2793_v7 = vmul.f32 %v5697_v28, %v5697_v28  ;;  %v2794_v16 = vmul.f32 %v5699_v23, %v5699_v23 }
 0x3f2   : > { %v5705_v10 = vsub.f32 %v2751_v5, %v2781_v4  ;;  %v5707_v1 = vsub.f32 %v2752_v14, %v2781_v4  ;;  %v2803_v61 = vsel %vm2755_vm5, %v2794_v16, 0.0 }
 0x3f3   : > { %v2804_v50 = vadd.f32 %v2803_v61, %v2793_v7 }
 0x3f4   : > { %v2795_v18 = vmul.f32 %v5705_v10, %v5705_v10  ;;  %v2796_v63 = vmul.f32 %v5707_v1, %v5707_v1 }
 0x3f5   : > { %2805 = vadd.xlane.f32.xlu2 %v2804_v50 }
 0x3f6   : > { %v2807_v36 = vsel %vm2755_vm5, %v2796_v63, 0.0 }
 0x3f7   : > { %v2771_v40 = vpop.xlane.xlu1 %2770  ;;  %v2808_v37 = vadd.f32 %v2807_v36, %v2795_v18 }
 0x3f8   : > { %v2782_v8 = vmul.f32 %v2778_v35, %v2771_v40 }
 0x3f9   : > { %2809 = vadd.xlane.f32.xlu0 %v2808_v37 }
 0x3fa   : > { %v5715_v38 = vsub.f32 %v2753_v30, %v2782_v8  ;;  %v5717_v31 = vsub.f32 %v2754_v33, %v2782_v8 }
 0x3fc   : > { %v2797_v22 = vmul.f32 %v5715_v38, %v5715_v38  ;;  %v2798_v48 = vmul.f32 %v5717_v31, %v5717_v31 }
 0x3fe   : > { %v2811_v0 = vsel %vm2755_vm5, %v2798_v48, 0.0 }
 0x3ff   : > { %v2812_v44 = vadd.f32 %v2811_v0, %v2797_v22 }
 0x401   : > { %2813 = vadd.xlane.f32.xlu1 %v2812_v44 }
 0x460   : > { %v2802_v46 = vpop.xlane.xlu2 %2801 }
 0x461   : > { %v2815_v15 = vmul.f32 %v2802_v46, %v2778_v35 }
 0x463   : > { %v2819_v19 = vmul.f32 1.00001, %v2815_v15 }
 0x465   : > { %v2823_v14 = vadd.f32 1e-10, %v2819_v19 }
 0x467   : > { %3686 = vrsqrt.f32 %v2823_v14  ;;  %vm2833_vm12 = vweird.f32 %v2823_v14 }
 0x468   : > { %v2806_v26 = vpop.xlane.xlu2 %2805 }
 0x469   : > { %v2816_v52 = vmul.f32 %v2806_v26, %v2778_v35 }
 0x46b   : > { %v2820_v21 = vmul.f32 1.00001, %v2816_v52 }
 0x46c   : > { %v2810_v32 = vpop.xlane.xlu0 %2809 }
 0x46d   : > { %v3687_v39 = vpop.eup %3686  ;;  %v2824_v20 = vadd.f32 1e-10, %v2820_v21  ;;  %v2817_v42 = vmul.f32 %v2810_v32, %v2778_v35 }
 0x46e   : > { %v2828_v11 = vmul.f32 %v3687_v39, %v2823_v14  ;;  %vm2834_vm11 = vweird.f32 %v3687_v39 }
 0x46f   : > { %3688 = vrsqrt.f32 %v2824_v20  ;;  %v2821_v5 = vmul.f32 1.00001, %v2817_v42  ;;  %vm2835_vm13 = vmor %vm2833_vm12, %vm2834_vm11  ;;  %vm2843_vm15 = vweird.f32 %v2824_v20 }
 0x470   : > { %v2829_v58 = vmul.f32 %v3687_v39, %v2828_v11 }
 0x471   : > { %v2825_v27 = vadd.f32 1e-10, %v2821_v5 }
 0x472   : > { %v2830_v13 = vmul.f32 0.5, %v2829_v58 }
 0x473   : > { %3690 = vrsqrt.f32 %v2825_v27  ;;  %vm2853_vm2 = vweird.f32 %v2825_v27 }
 0x474   : > { %v2831_v59 = vsub.f32 1.5, %v2830_v13  ;;  %v2814_v43 = vpop.xlane.xlu1 %2813 }
 0x475   : > { %v3689_v33 = vpop.eup %3688  ;;  %v2818_v54 = vmul.f32 %v2814_v43, %v2778_v35 }
 0x476   : > { %v2832_v49 = vmul.f32 %v3687_v39, %v2831_v59  ;;  %v2838_v53 = vmul.f32 %v3689_v33, %v2824_v20  ;;  %vm2844_vm14 = vweird.f32 %v3689_v33 }
 0x477   : > { %v2822_v30 = vmul.f32 1.00001, %v2818_v54  ;;  %vm2845_vm0 = vmor %vm2843_vm15, %vm2844_vm14 }
 0x478   : > { %v2836_v9 = vsel %vm2835_vm13, %v3687_v39, %v2832_v49  ;;  %v2839_v17 = vmul.f32 %v3689_v33, %v2838_v53 }
 0x479   : > { %v3691_v55 = vpop.eup %3690  ;;  %v2867_v24 = vmul.f32 %v2836_v9, %v5687_v60  ;;  %v2868_v25 = vmul.f32 %v2836_v9, %v5690_v12  ;;  %v2826_v57 = vadd.f32 1e-10, %v2822_v30 }
 0x47a   : > { %v2840_v2 = vmul.f32 0.5, %v2839_v17  ;;  %v2848_v47 = vmul.f32 %v3691_v55, %v2825_v27  ;;  %vm2854_vm1 = vweird.f32 %v3691_v55 }
 0x47b   : > { %2875 = vst [vmem:[%s5728_s26] sm:$0xff] %v2867_v24  ;;  %3692 = vrsqrt.f32 %v2826_v57  ;;  %vm2855_vm3 = vmor %vm2853_vm2, %vm2854_vm1  ;;  %vm2863_vm6 = vweird.f32 %v2826_v57 }
 0x47c   : > { %2876 = vst.msk [vmem:[%s5728_s26 + $0x8] sm:$0xff] %vm2755_vm5, %v2868_v25  ;;  %v2841_v35 = vsub.f32 1.5, %v2840_v2  ;;  %v2849_v6 = vmul.f32 %v3691_v55, %v2848_v47 }
 0x47e   : > { %v2842_v41 = vmul.f32 %v3689_v33, %v2841_v35  ;;  %v2850_v62 = vmul.f32 0.5, %v2849_v6 }
 0x480   : > { %v2846_v3 = vsel %vm2845_vm0, %v3689_v33, %v2842_v41  ;;  %v2851_v60 = vsub.f32 1.5, %v2850_v62 }
 0x481   : > { %v3693_v12 = vpop.eup %3692  ;;  %v2869_v29 = vmul.f32 %v2846_v3, %v5697_v28  ;;  %v2870_v56 = vmul.f32 %v2846_v3, %v5699_v23 }
 0x482   : > { %v2852_v34 = vmul.f32 %v3691_v55, %v2851_v60  ;;  %v2858_v51 = vmul.f32 %v3693_v12, %v2826_v57  ;;  %vm2864_vm4 = vweird.f32 %v3693_v12 }
 0x483   : > { %2877 = vst [vmem:[%s5728_s26 + $0x10] sm:$0xff] %v2869_v29  ;;  %vm2865_vm7 = vmor %vm2863_vm6, %vm2864_vm4 }
 0x484   : > { %2878 = vst.msk [vmem:[%s5728_s26 + $0x18] sm:$0xff] %vm2755_vm5, %v2870_v56  ;;  %v2856_v45 = vsel %vm2855_vm3, %v3691_v55, %v2852_v34  ;;  %v2859_v4 = vmul.f32 %v3693_v12, %v2858_v51 }
 0x485   : > { %v2871_v7 = vmul.f32 %v2856_v45, %v5705_v10  ;;  %v2872_v16 = vmul.f32 %v2856_v45, %v5707_v1 }
 0x486   : > { %v2860_v61 = vmul.f32 0.5, %v2859_v4 }
 0x487   : > { %2879 = vst [vmem:[%s5728_s26 + $0x20] sm:$0xff] %v2871_v7 }
 0x488   : > { %2880 = vst.msk [vmem:[%s5728_s26 + $0x28] sm:$0xff] %vm2755_vm5, %v2872_v16  ;;  %v2861_v28 = vsub.f32 1.5, %v2860_v61 }
 0x48a   : > { %v2862_v23 = vmul.f32 %v3693_v12, %v2861_v28 }
 0x48c   : > { %v2866_v50 = vsel %vm2865_vm7, %v3693_v12, %v2862_v23 }
 0x48d   : > { %v2873_v18 = vmul.f32 %v2866_v50, %v5715_v38  ;;  %v2874_v63 = vmul.f32 %v2866_v50, %v5717_v31 }
 0x48f   : > { %2881 = vst [vmem:[%s5728_s26 + $0x30] sm:$0xff] %v2873_v18 }
 0x490   : > { %2882 = vst.msk [vmem:[%s5728_s26 + $0x38] sm:$0xff] %vm2755_vm5, %v2874_v63 }
 0x491 PF: > { %s14_s15 = sadd.s32 1, %s3700_s15  }
 0x492   : > { %p11_p4 = scmp.ge.s32.totalorder %s14_s15, 4  }
 0x494   :  { %13 = sbr.rel (!%p11_p4) target bundleno = 1 (0x1), region = 66 }

</bundles_post_ra>
